<compile_context>
chip_gen: v5e
topology: v5e:2x2
jax: 0.10.0
libtpu: 0.0.40
codegen_flags: <defaults>
</compile_context>

<pallas_src>
import functools
import math

import jax
import jax.numpy as jnp
from jax.experimental import pallas as pl
from jax.experimental.pallas import tpu as pltpu


_ACT_DTYPE = jnp.bfloat16          # MXU activation / weight stream dtype


def _detect_vmem_capacity():
    try:
        info_fn = getattr(pltpu, "get_tpu_info", None)
        if info_fn is not None:
            cap = getattr(info_fn(), "vmem_capacity_bytes", None)
            if cap:
                return int(cap)
    except Exception:
        pass
    return 64 * 1024 * 1024        # conservative (v7x per-TC VMEM)


_VMEM_CAP = _detect_vmem_capacity()
_BIG_VMEM = _VMEM_CAP >= 96 * 1024 * 1024            # v5e / v6e: 128 MiB, v7x: 64 MiB
_VMEM_LIMIT_BYTES = (64 if _BIG_VMEM else 28) * 1024 * 1024
_TM_CAP = 512 if _BIG_VMEM else 256                   # matmul row-tile cap
_TN_CAP = 1024 if _BIG_VMEM else 512                  # matmul col-tile cap
_TK_CAP = 512                                         # matmul K-tile cap
_TKV_CAP = 512 if _BIG_VMEM else 256                  # attention kv-tile cap


def _pick_k_tile(K, cap):
    """K is a reduction axis -> tile must divide K exactly (or be the full K)."""
    if K <= cap:
        return K
    for c in (cap, 512, 384, 256, 128):
        if c <= cap and K % c == 0:
            return c
    return K


# --------------------------- fused matmul kernel -----------------------------

def _make_matmul_kernel(*, n_k, activation, fuse_ln, has_residual, eps, use_acc):
    def kernel(*refs):
        it = iter(refs)
        x_ref = next(it)
        w_ref = next(it)
        b_ref = next(it)
        g_ref = be_ref = None
        if fuse_ln:
            g_ref = next(it)
            be_ref = next(it)
        r_ref = next(it) if has_residual else None
        o_ref = next(it)
        xn_ref = next(it) if fuse_ln else None
        acc_ref = next(it) if use_acc else None

        if fuse_ln:
            # Normalize the x row-tile ONCE per row-tile (j == 0) and cache it in
            # VMEM scratch; every other j-step reuses the cached bf16 tile.
            @pl.when(pl.program_id(1) == 0)
            def _():
                xf = x_ref[...].astype(jnp.float32)
                mean = jnp.mean(xf, axis=-1, keepdims=True)
                var = jnp.mean(jnp.square(xf - mean), axis=-1, keepdims=True)
                xf = (xf - mean) * jax.lax.rsqrt(var + eps)
                xf = xf * g_ref[...].astype(jnp.float32) + be_ref[...].astype(jnp.float32)
                xn_ref[...] = xf.astype(xn_ref.dtype)

            x = xn_ref[...]
        else:
            x = x_ref[...]

        part = jnp.dot(x, w_ref[...], preferred_element_type=jnp.float32)

        def finalize(acc):
            acc = acc + b_ref[...].astype(jnp.float32)
            if activation == "gelu":
                # TODO(synk): torch.nn.GELU default is exact erf; tanh approximation
                # is used for guaranteed Mosaic lowering (|diff| ~1e-3).
                acc = jax.nn.gelu(acc, approximate=True)
            if has_residual:
                acc = acc + r_ref[...].astype(jnp.float32)
            o_ref[...] = acc.astype(o_ref.dtype)

        if use_acc:
            @pl.when(pl.program_id(2) == 0)
            def _():
                acc_ref[...] = jnp.zeros_like(acc_ref)

            acc_ref[...] += part

            @pl.when(pl.program_id(2) == n_k - 1)
            def _():
                finalize(acc_ref[...])
        else:
            finalize(part)

    return kernel


def fused_matmul(x, w, b, *, ln=None, residual=None, activation=None,
                 out_dtype=None, eps=1e-6):
    """y = [gelu]( LN?(x) @ w + b ) [+ residual] with a tiled 3-D grid."""
    M, K = x.shape
    K2, N = w.shape
    assert K == K2
    out_dtype = out_dtype if out_dtype is not None else x.dtype
    fuse_ln = ln is not None
    has_res = residual is not None

    tm = M if M <= _TM_CAP else _TM_CAP
    tn = N if N <= _TN_CAP else _TN_CAP
    tk = K if fuse_ln else _pick_k_tile(K, _TK_CAP)   # LN needs the full row
    n_m, n_n, n_k = pl.cdiv(M, tm), pl.cdiv(N, tn), K // tk
    use_acc = n_k > 1

    in_specs = [
        pl.BlockSpec((tm, tk), lambda i, j, k: (i, k)),
        pl.BlockSpec((tk, tn), lambda i, j, k: (k, j)),
        pl.BlockSpec((1, tn), lambda i, j, k: (0, j)),
    ]
    inputs = [x, w, b.reshape(1, N).astype(jnp.float32)]
    bytes_accessed = (M * K * x.dtype.itemsize + K * N * w.dtype.itemsize + N * 4
                      + M * N * jnp.dtype(out_dtype).itemsize)

    if fuse_ln:
        g, be = ln
        in_specs += [pl.BlockSpec((1, tk), lambda i, j, k: (0, k)),
                     pl.BlockSpec((1, tk), lambda i, j, k: (0, k))]
        inputs += [g.reshape(1, K).astype(jnp.float32),
                   be.reshape(1, K).astype(jnp.float32)]
        bytes_accessed += 2 * K * 4
    if has_res:
        in_specs.append(pl.BlockSpec((tm, tn), lambda i, j, k: (i, j)))
        inputs.append(residual)
        bytes_accessed += M * N * residual.dtype.itemsize

    scratch = []
    if fuse_ln:
        scratch.append(pltpu.VMEM((tm, K), _ACT_DTYPE))     # cached normalized x tile
    if use_acc:
        scratch.append(pltpu.VMEM((tm, tn), jnp.float32))   # K accumulator

    # The LN cache is reused across the j (N) axis, so that axis must not be
    # split across TensorCores; the row axis stays parallel for megacore.
    dims = ("parallel", "arbitrary" if fuse_ln else "parallel", "arbitrary")

    cost = pl.CostEstimate(
        flops=2 * M * N * K,
        transcendentals=(M * N if activation == "gelu" else 0),
        bytes_accessed=bytes_accessed)

    kernel = _make_matmul_kernel(n_k=n_k, activation=activation, fuse_ln=fuse_ln,
                                 has_residual=has_res, eps=eps, use_acc=use_acc)
    return pl.pallas_call(
        kernel,
        out_shape=jax.ShapeDtypeStruct((M, N), out_dtype),
        grid=(n_m, n_n, n_k),
        in_specs=in_specs,
        out_specs=pl.BlockSpec((tm, tn), lambda i, j, k: (i, j)),
        scratch_shapes=scratch,
        compiler_params=pltpu.CompilerParams(
            dimension_semantics=dims,
            vmem_limit_bytes=_VMEM_LIMIT_BYTES),
        cost_estimate=cost,
    )(*inputs)


# ------------------------------ layernorm kernel ------------------------------

def _layernorm_kernel(x_ref, g_ref, b_ref, o_ref, *, eps):
    x = x_ref[...].astype(jnp.float32)
    mean = jnp.mean(x, axis=-1, keepdims=True)
    var = jnp.mean(jnp.square(x - mean), axis=-1, keepdims=True)
    y = (x - mean) * jax.lax.rsqrt(var + eps)
    y = y * g_ref[...].astype(jnp.float32) + b_ref[...].astype(jnp.float32)
    o_ref[...] = y.astype(o_ref.dtype)


def layernorm(x, gamma, beta, *, eps=1e-6, out_dtype=None):
    M, D = x.shape
    out_dtype = out_dtype if out_dtype is not None else x.dtype
    tm = M if M <= 512 else 512
    return pl.pallas_call(
        functools.partial(_layernorm_kernel, eps=eps),
        out_shape=jax.ShapeDtypeStruct((M, D), out_dtype),
        grid=(pl.cdiv(M, tm),),
        in_specs=[pl.BlockSpec((tm, D), lambda i: (i, 0)),
                  pl.BlockSpec((1, D), lambda i: (0, 0)),
                  pl.BlockSpec((1, D), lambda i: (0, 0))],
        out_specs=pl.BlockSpec((tm, D), lambda i: (i, 0)),
        compiler_params=pltpu.CompilerParams(
            dimension_semantics=("parallel",),
            vmem_limit_bytes=_VMEM_LIMIT_BYTES),
        cost_estimate=pl.CostEstimate(
            flops=8 * M * D, transcendentals=0,
            bytes_accessed=M * D * (x.dtype.itemsize + jnp.dtype(out_dtype).itemsize)),
    )(x, gamma.reshape(1, D).astype(jnp.float32), beta.reshape(1, D).astype(jnp.float32))


# ------------------------- token assembly (cls + pos) -------------------------

def _assemble_tokens_kernel(patch_ref, tok0_ref, pos_ref, o_ref):
    # out[b] = concat([cls + pos[0], patch[b] + pos[1:]], axis=0) in one pass.
    patches = patch_ref[0].astype(jnp.float32) + pos_ref[0].astype(jnp.float32)
    toks = jnp.concatenate([tok0_ref[0].astype(jnp.float32), patches], axis=0)
    o_ref[0] = toks.astype(o_ref.dtype)


def assemble_tokens(patch_tok, tok0, pos_patch):
    """patch_tok: (B, N, D); tok0: (1, 1, D) = cls+pos0; pos_patch: (1, N, D)."""
    B, N, D = patch_tok.shape
    S = N + 1
    return pl.pallas_call(
        _assemble_tokens_kernel,
        out_shape=jax.ShapeDtypeStruct((B, S, D), jnp.float32),
        grid=(B,),
        in_specs=[pl.BlockSpec((1, N, D), lambda b: (b, 0, 0)),
                  pl.BlockSpec((1, 1, D), lambda b: (0, 0, 0)),
                  pl.BlockSpec((1, N, D), lambda b: (0, 0, 0))],
        out_specs=pl.BlockSpec((1, S, D), lambda b: (b, 0, 0)),
        compiler_params=pltpu.CompilerParams(
            dimension_semantics=("parallel",),
            vmem_limit_bytes=_VMEM_LIMIT_BYTES),
        cost_estimate=pl.CostEstimate(
            flops=2 * B * S * D, transcendentals=0,
            bytes_accessed=B * N * D * patch_tok.dtype.itemsize
                           + (S + N) * D * 4 + B * S * D * 4),
    )(patch_tok, tok0, pos_patch)


# --------------------------- flash attention kernel ---------------------------

def _flash_attn_kernel(q_ref, k_ref, v_ref, o_ref, m_sc, l_sc, acc_sc,
                       *, seq_len, tkv, need_mask):
    kv = pl.program_id(2)

    @pl.when(kv == 0)
    def _():
        m_sc[...] = jnp.full_like(m_sc, -jnp.inf)
        l_sc[...] = jnp.zeros_like(l_sc)
        acc_sc[...] = jnp.zeros_like(acc_sc)

    q = q_ref[0]                                   # (tq, Dh); 1/sqrt(Dh) already folded in
    k = k_ref[0]
    v = v_ref[0]
    s = jax.lax.dot_general(q, k, (((1,), (1,)), ((), ())),
                            preferred_element_type=jnp.float32)   # (tq, tkv)
    if need_mask:
        col = kv * tkv + jax.lax.broadcasted_iota(jnp.int32, s.shape, 1)
        s = jnp.where(col < seq_len, s, -jnp.inf)

    m_prev = m_sc[...]
    m_new = jnp.maximum(m_prev, jnp.max(s, axis=-1, keepdims=True))
    alpha = jnp.exp(m_prev - m_new)
    p = jnp.exp(s - m_new)
    l_sc[...] = alpha * l_sc[...] + jnp.sum(p, axis=-1, keepdims=True)
    acc_sc[...] = alpha * acc_sc[...] + jnp.dot(p.astype(v.dtype), v,
                                                preferred_element_type=jnp.float32)
    m_sc[...] = m_new

    @pl.when(kv == pl.num_programs(2) - 1)
    def _():
        inv = pl.reciprocal(l_sc[...], approx=True)
        o_ref[0] = (acc_sc[...] * inv).astype(o_ref.dtype)


def flash_attention(q, k, v):
    """q/k/v: (B*H, S, Dh) head-major slabs -> (B*H, S, Dh) attention output."""
    BH, S, Dh = q.shape
    tq = S if S <= 256 else 256
    tkv = S if S <= _TKV_CAP else _TKV_CAP
    n_q, n_kv = pl.cdiv(S, tq), pl.cdiv(S, tkv)
    need_mask = (S % tkv) != 0

    cost = pl.CostEstimate(
        flops=4 * BH * S * S * Dh,
        transcendentals=BH * S * S,
        bytes_accessed=4 * BH * S * Dh * q.dtype.itemsize)

    return pl.pallas_call(
        functools.partial(_flash_attn_kernel, seq_len=S, tkv=tkv, need_mask=need_mask),
        out_shape=jax.ShapeDtypeStruct((BH, S, Dh), q.dtype),
        grid=(BH, n_q, n_kv),
        in_specs=[pl.BlockSpec((1, tq, Dh), lambda b, qi, ki: (b, qi, 0)),
                  pl.BlockSpec((1, tkv, Dh), lambda b, qi, ki: (b, ki, 0)),
                  pl.BlockSpec((1, tkv, Dh), lambda b, qi, ki: (b, ki, 0))],
        out_specs=pl.BlockSpec((1, tq, Dh), lambda b, qi, ki: (b, qi, 0)),
        scratch_shapes=[pltpu.VMEM((tq, 1), jnp.float32),
                        pltpu.VMEM((tq, 1), jnp.float32),
                        pltpu.VMEM((tq, Dh), jnp.float32)],
        compiler_params=pltpu.CompilerParams(
            dimension_semantics=("parallel", "parallel", "arbitrary"),
            vmem_limit_bytes=_VMEM_LIMIT_BYTES),
        cost_estimate=cost,
    )(q, k, v)


# --------------------------- model (glue + params) ----------------------------

def adjust_image_size(size):
    """Same semantics as VisualBackbone._adjust_image_size (multiple of 14)."""
    if size % 14 != 0:
        return (size + 13) // 14 * 14
    return size


def init_params(key, *, img_size, in_chans, patch_size, embed_dim, depth,
                num_heads, mlp_ratio):
    """Synthetic f32 'checkpoint' with the DINOv2 ViT forward structure."""
    n = img_size // patch_size
    num_patches = n * n
    hidden = embed_dim * mlp_ratio
    keys = iter(jax.random.split(key, 8 + depth * 6))

    def nrm(k, shape, std=0.02):
        return (std * jax.random.normal(k, shape)).astype(jnp.float32)

    params = {
        "patch_w": nrm(next(keys), (in_chans * patch_size * patch_size, embed_dim)),
        "patch_b": jnp.zeros((embed_dim,), jnp.float32),
        "cls_token": nrm(next(keys), (1, 1, embed_dim)),
        "pos_embed": nrm(next(keys), (1, num_patches + 1, embed_dim)),
        "ln_g": jnp.ones((embed_dim,), jnp.float32),
        "ln_b": jnp.zeros((embed_dim,), jnp.float32),
        "blocks": [],
    }
    for _ in range(depth):
        params["blocks"].append({
            "ln1_g": jnp.ones((embed_dim,), jnp.float32),
            "ln1_b": jnp.zeros((embed_dim,), jnp.float32),
            "qkv_w": nrm(next(keys), (embed_dim, 3 * embed_dim)),
            "qkv_b": jnp.zeros((3 * embed_dim,), jnp.float32),
            "proj_w": nrm(next(keys), (embed_dim, embed_dim)),
            "proj_b": jnp.zeros((embed_dim,), jnp.float32),
            "ln2_g": jnp.ones((embed_dim,), jnp.float32),
            "ln2_b": jnp.zeros((embed_dim,), jnp.float32),
            "fc1_w": nrm(next(keys), (embed_dim, hidden)),
            "fc1_b": jnp.zeros((hidden,), jnp.float32),
            "fc2_w": nrm(next(keys), (hidden, embed_dim)),
            "fc2_b": jnp.zeros((embed_dim,), jnp.float32),
        })
    return params


def prepare_params(params, *, num_heads):
    """One-time inference-side transforms: fold softmax scale into q weights,
    zero-pad the patch-embed K dim to a 128 multiple, cast weights to bf16,
    pre-add cls + pos[0]."""
    D = params["pos_embed"].shape[-1]
    Dh = D // num_heads
    scale = 1.0 / math.sqrt(Dh)

    k_raw = params["patch_w"].shape[0]
    k_pad = ((k_raw + 127) // 128) * 128
    patch_w = params["patch_w"]
    if k_pad > k_raw:
        patch_w = jnp.pad(patch_w, ((0, k_pad - k_raw), (0, 0)))

    col_scale = jnp.concatenate([jnp.full((D,), scale, jnp.float32),
                                 jnp.ones((2 * D,), jnp.float32)])

    prepared = {
        "patch_w": patch_w.astype(_ACT_DTYPE),
        "patch_b": params["patch_b"],
        "tok0": params["cls_token"] + params["pos_embed"][:, :1],     # (1, 1, D) f32
        "pos_patch": params["pos_embed"][:, 1:],                      # (1, N, D) f32
        "ln_g": params["ln_g"],
        "ln_b": params["ln_b"],
        "blocks": [],
    }
    for blk in params["blocks"]:
        prepared["blocks"].append({
            "ln1_g": blk["ln1_g"], "ln1_b": blk["ln1_b"],
            "qkv_w": (blk["qkv_w"] * col_scale[None, :]).astype(_ACT_DTYPE),
            "qkv_b": blk["qkv_b"] * col_scale,
            "proj_w": blk["proj_w"].astype(_ACT_DTYPE), "proj_b": blk["proj_b"],
            "ln2_g": blk["ln2_g"], "ln2_b": blk["ln2_b"],
            "fc1_w": blk["fc1_w"].astype(_ACT_DTYPE), "fc1_b": blk["fc1_b"],
            "fc2_w": blk["fc2_w"].astype(_ACT_DTYPE), "fc2_b": blk["fc2_b"],
        })
    return prepared


def visual_backbone_forward(params, x, *, patch_size, embed_dim, num_heads):
    """DINOv2 branch of VisualBackbone.forward: returns {'vit_out': (B, D, n, n)}."""
    B, C, H, W = x.shape
    P = patch_size
    n = H // P
    N = n * n
    D = embed_dim
    S = N + 1
    Dh = D // num_heads

    # Patch extraction (glue): (B, C, H, W) -> (B*N, C*P*P); matches a Conv2d
    # patch-embed whose weight is flattened as (D, C*P*P).
    patches = (x.reshape(B, C, n, P, n, P)
                 .transpose(0, 2, 4, 1, 3, 5)
                 .reshape(B * N, C * P * P)).astype(_ACT_DTYPE)
    k_pad = params["patch_w"].shape[0]
    if k_pad > patches.shape[1]:
        patches = jnp.pad(patches, ((0, 0), (0, k_pad - patches.shape[1])))

    tok = fused_matmul(patches, params["patch_w"], params["patch_b"],
                       out_dtype=_ACT_DTYPE)                              # (B*N, D) bf16
    # cls prepend + pos-embed add fused in one kernel; residual stream stays f32.
    x_tok = assemble_tokens(tok.reshape(B, N, D),
                            params["tok0"], params["pos_patch"])          # (B, S, D) f32
    x_tok = x_tok.reshape(B * S, D)

    # TODO(synk): DINOv2 LayerScale gammas and pos-embed interpolation for
    # non-native image sizes come from the checkpoint and are omitted.
    for blk in params["blocks"]:
        # LN1 fused into the QKV matmul (normalized tile cached in VMEM scratch).
        qkv = fused_matmul(x_tok, blk["qkv_w"], blk["qkv_b"],
                           ln=(blk["ln1_g"], blk["ln1_b"]),
                           out_dtype=_ACT_DTYPE)                           # (B*S, 3D)
        # Head-major layout (B*H, S, Dh) so every attention block is lane-dense.
        # TODO(synk): this split/merge is a single XLA transpose per direction;
        # folding it into BlockSpecs would force sub-128-lane (Dh-wide) blocks.
        qkv_h = qkv.reshape(B, S, 3, num_heads, Dh).transpose(2, 0, 3, 1, 4)
        q = qkv_h[0].reshape(B * num_heads, S, Dh)
        k = qkv_h[1].reshape(B * num_heads, S, Dh)
        v = qkv_h[2].reshape(B * num_heads, S, Dh)
        attn = flash_attention(q, k, v)                                    # (B*H, S, Dh)
        attn = (attn.reshape(B, num_heads, S, Dh)
                    .transpose(0, 2, 1, 3).reshape(B * S, D))
        # proj matmul with the residual add fused; residual stream kept f32.
        x_tok = fused_matmul(attn, blk["proj_w"], blk["proj_b"],
                             residual=x_tok, out_dtype=jnp.float32)
        # LN2 fused into fc1 (+GELU epilogue); fc2 with residual fused, f32 out.
        h = fused_matmul(x_tok, blk["fc1_w"], blk["fc1_b"],
                         ln=(blk["ln2_g"], blk["ln2_b"]), activation="gelu",
                         out_dtype=_ACT_DTYPE)
        x_tok = fused_matmul(h, blk["fc2_w"], blk["fc2_b"],
                             residual=x_tok, out_dtype=jnp.float32)

    x_tok = layernorm(x_tok, params["ln_g"], params["ln_b"],
                      out_dtype=jnp.float32)                               # x_norm
    tokens = x_tok.reshape(B, S, D)
    patch_tokens = tokens[:, 1:, :]                                        # x_norm_patchtokens

    # n_patch_x_row = int(sqrt(N)); permute(0,2,1); view(B, D, n, n)
    n_patch_x_row = int(patch_tokens.shape[1] ** 0.5)
    vit_out = patch_tokens.transpose(0, 2, 1).reshape(B, D, n_patch_x_row, n_patch_x_row)
    return {"vit_out": vit_out}


# --------------------------------- main ---------------------------------------

if __name__ == "__main__":
    PATCH_SIZE = 14
    EMBED_DIM = 128
    DEPTH = 2
    NUM_HEADS = 2          # head_dim = 64, matching DINOv2-small head size
    MLP_RATIO = 2
    B, C = 2, 3
    IMG_SIZE = adjust_image_size(56)     # multiple of 14 -> 4x4 = 16 patches

    key = jax.random.PRNGKey(0)
    k_params, k_x = jax.random.split(key)
    raw_params = init_params(
        k_params, img_size=IMG_SIZE, in_chans=C, patch_size=PATCH_SIZE,
        embed_dim=EMBED_DIM, depth=DEPTH, num_heads=NUM_HEADS, mlp_ratio=MLP_RATIO)
    params = prepare_params(raw_params, num_heads=NUM_HEADS)

    x = jax.random.normal(k_x, (B, C, IMG_SIZE, IMG_SIZE), dtype=jnp.float32)  # NCHW

    fwd = jax.jit(functools.partial(
        visual_backbone_forward,
        patch_size=PATCH_SIZE, embed_dim=EMBED_DIM, num_heads=NUM_HEADS))
    feat = fwd(params, x)
    jax.block_until_ready(feat["vit_out"])

    n = IMG_SIZE // PATCH_SIZE
    assert feat["vit_out"].shape == (B, EMBED_DIM, n, n)
    assert feat["vit_out"].dtype == jnp.float32
    assert jnp.all(jnp.isfinite(feat["vit_out"]))
    print("KERNEL_OK")
</pallas_src>

<mosaic_0001>
module attributes {stable_mosaic.version = 11 : i64} {
  func.func @kernel(%arg0: i32, %arg1: i32, %arg2: i32, %arg3: memref<32x128xbf16, #tpu.memory_space<vmem>>, %arg4: memref<128x128xbf16, #tpu.memory_space<vmem>>, %arg5: memref<1x128xf32, #tpu.memory_space<vmem>>, %arg6: memref<32x128xbf16, #tpu.memory_space<vmem>>, %arg7: memref<32x128xf32, #tpu.memory_space<vmem>>) attributes {dimension_semantics = [#tpu.dimension_semantics<parallel>, #tpu.dimension_semantics<parallel>, #tpu.dimension_semantics<arbitrary>], iteration_bounds = array<i64: 1, 1, 5>, scalar_prefetch = 0 : i64, scratch_operands = 1 : i64, tpu.core_type = #tpu.core_type<tc>, window_params = [{transform_indices = @transform_0, window_bounds = array<i64: 32, 128>}, {transform_indices = @transform_1, window_bounds = array<i64: 128, 128>}, {transform_indices = @transform_2, window_bounds = array<i64: 1, 128>}, {transform_indices = @transform_3, window_bounds = array<i64: 32, 128>}]} {
    %c0 = arith.constant 0 : index
    %c0_0 = arith.constant 0 : index
    %0 = vector.load %arg3[%c0, %c0_0] : memref<32x128xbf16, #tpu.memory_space<vmem>>, vector<32x128xbf16>
    %c0_1 = arith.constant 0 : index
    %c0_2 = arith.constant 0 : index
    %1 = vector.load %arg4[%c0_1, %c0_2] : memref<128x128xbf16, #tpu.memory_space<vmem>>, vector<128x128xbf16>
    %cst = arith.constant dense<0.000000e+00> : vector<32x128xf32>
    %2 = tpu.matmul %0, %1, %cst {dimension_numbers = #tpu.dot_dimension_numbers<[1], [0], [0], [1], [0, 0, 1, 1], [], []>} : vector<32x128xbf16>, vector<128x128xbf16>, vector<32x128xf32> -> vector<32x128xf32>
    %c0_i32 = arith.constant 0 : i32
    %3 = arith.cmpi eq, %arg2, %c0_i32 : i32
    %4 = arith.extui %3 : i1 to i32
    %c0_i32_3 = arith.constant 0 : i32
    %5 = arith.cmpi ne, %4, %c0_i32_3 : i32
    scf.if %5 {
      %cst_9 = arith.constant 0.000000e+00 : f32
      %12 = vector.broadcast %cst_9 : f32 to vector<32x128xf32>
      %c0_10 = arith.constant 0 : index
      %c0_11 = arith.constant 0 : index
      %13 = vector.load %arg7[%c0_10, %c0_11] : memref<32x128xf32, #tpu.memory_space<vmem>>, vector<32x128xf32>
      tpu.vector_store %arg7[%c0_10, %c0_11], %12 {strides = array<i32>} : memref<32x128xf32, #tpu.memory_space<vmem>>, vector<32x128xf32>,
    } else {
    }
    %c0_4 = arith.constant 0 : index
    %c0_5 = arith.constant 0 : index
    %6 = vector.load %arg7[%c0_4, %c0_5] : memref<32x128xf32, #tpu.memory_space<vmem>>, vector<32x128xf32>
    %7 = arith.addf %6, %2 : vector<32x128xf32>
    %c0_6 = arith.constant 0 : index
    %c0_7 = arith.constant 0 : index
    %8 = vector.load %arg7[%c0_6, %c0_7] : memref<32x128xf32, #tpu.memory_space<vmem>>, vector<32x128xf32>
    tpu.vector_store %arg7[%c0_6, %c0_7], %7 {strides = array<i32>} : memref<32x128xf32, #tpu.memory_space<vmem>>, vector<32x128xf32>,
    %c4_i32 = arith.constant 4 : i32
    %9 = arith.cmpi eq, %arg2, %c4_i32 : i32
    %10 = arith.extui %9 : i1 to i32
    %c0_i32_8 = arith.constant 0 : i32
    %11 = arith.cmpi ne, %10, %c0_i32_8 : i32
    scf.if %11 {
      %c0_9 = arith.constant 0 : index
      %c0_10 = arith.constant 0 : index
      %12 = vector.load %arg7[%c0_9, %c0_10] : memref<32x128xf32, #tpu.memory_space<vmem>>, vector<32x128xf32>
      %c0_11 = arith.constant 0 : index
      %c0_12 = arith.constant 0 : index
      %13 = vector.load %arg5[%c0_11, %c0_12] : memref<1x128xf32, #tpu.memory_space<vmem>>, vector<1x128xf32>
      %14 = vector.broadcast %13 : vector<1x128xf32> to vector<32x128xf32>
      %15 = arith.addf %12, %14 : vector<32x128xf32>
      %16 = arith.truncf %15 : vector<32x128xf32> to vector<32x128xbf16>
      %c0_13 = arith.constant 0 : index
      %c0_14 = arith.constant 0 : index
      %17 = vector.load %arg6[%c0_13, %c0_14] : memref<32x128xbf16, #tpu.memory_space<vmem>>, vector<32x128xbf16>
      tpu.vector_store %arg6[%c0_13, %c0_14], %16 {strides = array<i32>} : memref<32x128xbf16, #tpu.memory_space<vmem>>, vector<32x128xbf16>,
    } else {
    }
    return
  }
  func.func @transform_0(%arg0: i32, %arg1: i32, %arg2: i32) -> (i32, i32) {
    %c0_i32 = arith.constant 0 : i32
    return %arg0, %arg2 : i32, i32
  }
  func.func @transform_1(%arg0: i32, %arg1: i32, %arg2: i32) -> (i32, i32) {
    %c0_i32 = arith.constant 0 : i32
    return %arg2, %arg1 : i32, i32
  }
  func.func @transform_2(%arg0: i32, %arg1: i32, %arg2: i32) -> (i32, i32) {
    %c0_i32 = arith.constant 0 : i32
    %c0_i32_0 = arith.constant 0 : i32
    return %c0_i32, %arg1 : i32, i32
  }
  func.func @transform_3(%arg0: i32, %arg1: i32, %arg2: i32) -> (i32, i32) {
    %c0_i32 = arith.constant 0 : i32
    return %arg0, %arg1 : i32, i32
  }
}

module attributes {stable_mosaic.version = 11 : i64} {
  func.func @_assemble_tokens_kernel(%arg0: i32, %arg1: memref<1x16x128xbf16, #tpu.memory_space<vmem>>, %arg2: memref<1x1x128xf32, #tpu.memory_space<vmem>>, %arg3: memref<1x16x128xf32, #tpu.memory_space<vmem>>, %arg4: memref<1x17x128xf32, #tpu.memory_space<vmem>>) attributes {dimension_semantics = [#tpu.dimension_semantics<parallel>], iteration_bounds = array<i64: 2>, scalar_prefetch = 0 : i64, scratch_operands = 0 : i64, tpu.core_type = #tpu.core_type<tc>, window_params = [{transform_indices = @transform_0, window_bounds = array<i64: 1, 16, 128>}, {pipeline_mode = #tpu.pipeline_mode<synchronous>, transform_indices = @transform_1, window_bounds = array<i64: 1, 1, 128>}, {pipeline_mode = #tpu.pipeline_mode<synchronous>, transform_indices = @transform_2, window_bounds = array<i64: 1, 16, 128>}, {transform_indices = @transform_3, window_bounds = array<i64: 1, 17, 128>}]} {
    %c0 = arith.constant 0 : index
    %c0_0 = arith.constant 0 : index
    %c0_1 = arith.constant 0 : index
    %0 = vector.load %arg1[%c0, %c0_0, %c0_1] : memref<1x16x128xbf16, #tpu.memory_space<vmem>>, vector<1x16x128xbf16>
    %1 = vector.shape_cast %0 : vector<1x16x128xbf16> to vector<16x128xbf16>
    %2 = arith.extf %1 : vector<16x128xbf16> to vector<16x128xf32>
    %c0_2 = arith.constant 0 : index
    %c0_3 = arith.constant 0 : index
    %c0_4 = arith.constant 0 : index
    %3 = vector.load %arg3[%c0_2, %c0_3, %c0_4] : memref<1x16x128xf32, #tpu.memory_space<vmem>>, vector<1x16x128xf32>
    %4 = vector.shape_cast %3 : vector<1x16x128xf32> to vector<16x128xf32>
    %5 = arith.addf %2, %4 : vector<16x128xf32>
    %c0_5 = arith.constant 0 : index
    %c0_6 = arith.constant 0 : index
    %c0_7 = arith.constant 0 : index
    %6 = vector.load %arg2[%c0_5, %c0_6, %c0_7] : memref<1x1x128xf32, #tpu.memory_space<vmem>>, vector<1x1x128xf32>
    %7 = vector.shape_cast %6 : vector<1x1x128xf32> to vector<1x128xf32>
    %8 = tpu.concatenate %7, %5 in 0 : vector<1x128xf32>, vector<16x128xf32> -> vector<17x128xf32>
    %c0_8 = arith.constant 0 : index
    %c0_9 = arith.constant 0 : index
    %c0_10 = arith.constant 0 : index
    %9 = vector.load %arg4[%c0_8, %c0_9, %c0_10] : memref<1x17x128xf32, #tpu.memory_space<vmem>>, vector<1x17x128xf32>
    %10 = vector.shape_cast %9 : vector<1x17x128xf32> to vector<17x128xf32>
    %11 = vector.shape_cast %8 : vector<17x128xf32> to vector<1x17x128xf32>
    tpu.vector_store %arg4[%c0_8, %c0_9, %c0_10], %11 {strides = array<i32>} : memref<1x17x128xf32, #tpu.memory_space<vmem>>, vector<1x17x128xf32>,
    return
  }
  func.func @transform_0(%arg0: i32) -> (i32, i32, i32) {
    %c0_i32 = arith.constant 0 : i32
    %c0_i32_0 = arith.constant 0 : i32
    %c0_i32_1 = arith.constant 0 : i32
    return %arg0, %c0_i32, %c0_i32_0 : i32, i32, i32
  }
  func.func @transform_1(%arg0: i32) -> (i32, i32, i32) {
    %c0_i32 = arith.constant 0 : i32
    %c0_i32_0 = arith.constant 0 : i32
    %c0_i32_1 = arith.constant 0 : i32
    %c0_i32_2 = arith.constant 0 : i32
    return %c0_i32, %c0_i32_0, %c0_i32_1 : i32, i32, i32
  }
  func.func @transform_2(%arg0: i32) -> (i32, i32, i32) {
    %c0_i32 = arith.constant 0 : i32
    %c0_i32_0 = arith.constant 0 : i32
    %c0_i32_1 = arith.constant 0 : i32
    %c0_i32_2 = arith.constant 0 : i32
    return %c0_i32, %c0_i32_0, %c0_i32_1 : i32, i32, i32
  }
  func.func @transform_3(%arg0: i32) -> (i32, i32, i32) {
    %c0_i32 = arith.constant 0 : i32
    %c0_i32_0 = arith.constant 0 : i32
    %c0_i32_1 = arith.constant 0 : i32
    return %arg0, %c0_i32, %c0_i32_0 : i32, i32, i32
  }
}

module attributes {stable_mosaic.version = 11 : i64} {
  func.func @kernel(%arg0: i32, %arg1: i32, %arg2: i32, %arg3: memref<34x128xf32, #tpu.memory_space<vmem>>, %arg4: memref<128x384xbf16, #tpu.memory_space<vmem>>, %arg5: memref<1x384xf32, #tpu.memory_space<vmem>>, %arg6: memref<1x128xf32, #tpu.memory_space<vmem>>, %arg7: memref<1x128xf32, #tpu.memory_space<vmem>>, %arg8: memref<34x384xbf16, #tpu.memory_space<vmem>>, %arg9: memref<34x128xbf16, #tpu.memory_space<vmem>>) attributes {dimension_semantics = [#tpu.dimension_semantics<parallel>, #tpu.dimension_semantics<arbitrary>, #tpu.dimension_semantics<arbitrary>], iteration_bounds = array<i64: 1, 1, 1>, scalar_prefetch = 0 : i64, scratch_operands = 1 : i64, tpu.core_type = #tpu.core_type<tc>, window_params = [{transform_indices = @transform_0, window_bounds = array<i64: 34, 128>}, {transform_indices = @transform_1, window_bounds = array<i64: 128, 384>}, {transform_indices = @transform_2, window_bounds = array<i64: 1, 384>}, {transform_indices = @transform_3, window_bounds = array<i64: 1, 128>}, {transform_indices = @transform_4, window_bounds = array<i64: 1, 128>}, {transform_indices = @transform_5, window_bounds = array<i64: 34, 384>}]} {
    %c0_i32 = arith.constant 0 : i32
    %0 = arith.cmpi eq, %arg1, %c0_i32 : i32
    %1 = arith.extui %0 : i1 to i32
    %c0_i32_0 = arith.constant 0 : i32
    %2 = arith.cmpi ne, %1, %c0_i32_0 : i32
    scf.if %2 {
      %c0_8 = arith.constant 0 : index
      %c0_9 = arith.constant 0 : index
      %11 = vector.load %arg3[%c0_8, %c0_9] : memref<34x128xf32, #tpu.memory_space<vmem>>, vector<34x128xf32>
      %cst_10 = arith.constant dense<0.000000e+00> : vector<34xf32>
      %12 = vector.multi_reduction <add>, %11, %cst_10 [1] : vector<34x128xf32> to vector<34xf32>
      %13 = vector.shape_cast %12 : vector<34xf32> to vector<34x1xf32>
      %cst_11 = arith.constant 1.280000e+02 : f32
      %14 = vector.broadcast %cst_11 : f32 to vector<34x1xf32>
      %15 = arith.divf %13, %14 : vector<34x1xf32>
      %16 = vector.broadcast %15 : vector<34x1xf32> to vector<34x128xf32>
      %17 = arith.subf %11, %16 : vector<34x128xf32>
      %18 = arith.mulf %17, %17 : vector<34x128xf32>
      %cst_12 = arith.constant dense<0.000000e+00> : vector<34xf32>
      %19 = vector.multi_reduction <add>, %18, %cst_12 [1] : vector<34x128xf32> to vector<34xf32>
      %20 = vector.shape_cast %19 : vector<34xf32> to vector<34x1xf32>
      %cst_13 = arith.constant 1.280000e+02 : f32
      %21 = vector.broadcast %cst_13 : f32 to vector<34x1xf32>
      %22 = arith.divf %20, %21 : vector<34x1xf32>
      %23 = vector.broadcast %15 : vector<34x1xf32> to vector<34x128xf32>
      %24 = arith.subf %11, %23 : vector<34x128xf32>
      %cst_14 = arith.constant 9.99999997E-7 : f32
      %25 = vector.broadcast %cst_14 : f32 to vector<34x1xf32>
      %26 = arith.addf %22, %25 : vector<34x1xf32>
      %27 = math.rsqrt %26 : vector<34x1xf32>
      %28 = vector.broadcast %27 : vector<34x1xf32> to vector<34x128xf32>
      %29 = arith.mulf %24, %28 : vector<34x128xf32>
      %c0_15 = arith.constant 0 : index
      %c0_16 = arith.constant 0 : index
      %30 = vector.load %arg6[%c0_15, %c0_16] : memref<1x128xf32, #tpu.memory_space<vmem>>, vector<1x128xf32>
      %31 = vector.broadcast %30 : vector<1x128xf32> to vector<34x128xf32>
      %32 = arith.mulf %29, %31 : vector<34x128xf32>
      %c0_17 = arith.constant 0 : index
      %c0_18 = arith.constant 0 : index
      %33 = vector.load %arg7[%c0_17, %c0_18] : memref<1x128xf32, #tpu.memory_space<vmem>>, vector<1x128xf32>
      %34 = vector.broadcast %33 : vector<1x128xf32> to vector<34x128xf32>
      %35 = arith.addf %32, %34 : vector<34x128xf32>
      %36 = arith.truncf %35 : vector<34x128xf32> to vector<34x128xbf16>
      %c0_19 = arith.constant 0 : index
      %c0_20 = arith.constant 0 : index
      %37 = vector.load %arg9[%c0_19, %c0_20] : memref<34x128xbf16, #tpu.memory_space<vmem>>, vector<34x128xbf16>
      tpu.vector_store %arg9[%c0_19, %c0_20], %36 {strides = array<i32>} : memref<34x128xbf16, #tpu.memory_space<vmem>>, vector<34x128xbf16>,
    } else {
    }
    %c0 = arith.constant 0 : index
    %c0_1 = arith.constant 0 : index
    %3 = vector.load %arg9[%c0, %c0_1] : memref<34x128xbf16, #tpu.memory_space<vmem>>, vector<34x128xbf16>
    %c0_2 = arith.constant 0 : index
    %c0_3 = arith.constant 0 : index
    %4 = vector.load %arg4[%c0_2, %c0_3] : memref<128x384xbf16, #tpu.memory_space<vmem>>, vector<128x384xbf16>
    %cst = arith.constant dense<0.000000e+00> : vector<34x384xf32>
    %5 = tpu.matmul %3, %4, %cst {dimension_numbers = #tpu.dot_dimension_numbers<[1], [0], [0], [1], [0, 0, 1, 1], [], []>} : vector<34x128xbf16>, vector<128x384xbf16>, vector<34x384xf32> -> vector<34x384xf32>
    %c0_4 = arith.constant 0 : index
    %c0_5 = arith.constant 0 : index
    %6 = vector.load %arg5[%c0_4, %c0_5] : memref<1x384xf32, #tpu.memory_space<vmem>>, vector<1x384xf32>
    %7 = vector.broadcast %6 : vector<1x384xf32> to vector<34x384xf32>
    %8 = arith.addf %5, %7 : vector<34x384xf32>
    %9 = arith.truncf %8 : vector<34x384xf32> to vector<34x384xbf16>
    %c0_6 = arith.constant 0 : index
    %c0_7 = arith.constant 0 : index
    %10 = vector.load %arg8[%c0_6, %c0_7] : memref<34x384xbf16, #tpu.memory_space<vmem>>, vector<34x384xbf16>
    tpu.vector_store %arg8[%c0_6, %c0_7], %9 {strides = array<i32>} : memref<34x384xbf16, #tpu.memory_space<vmem>>, vector<34x384xbf16>,
    return
  }
  func.func @transform_0(%arg0: i32, %arg1: i32, %arg2: i32) -> (i32, i32) {
    %c0_i32 = arith.constant 0 : i32
    return %arg0, %arg2 : i32, i32
  }
  func.func @transform_1(%arg0: i32, %arg1: i32, %arg2: i32) -> (i32, i32) {
    %c0_i32 = arith.constant 0 : i32
    return %arg2, %arg1 : i32, i32
  }
  func.func @transform_2(%arg0: i32, %arg1: i32, %arg2: i32) -> (i32, i32) {
    %c0_i32 = arith.constant 0 : i32
    %c0_i32_0 = arith.constant 0 : i32
    return %c0_i32, %arg1 : i32, i32
  }
  func.func @transform_3(%arg0: i32, %arg1: i32, %arg2: i32) -> (i32, i32) {
    %c0_i32 = arith.constant 0 : i32
    %c0_i32_0 = arith.constant 0 : i32
    return %c0_i32, %arg2 : i32, i32
  }
  func.func @transform_4(%arg0: i32, %arg1: i32, %arg2: i32) -> (i32, i32) {
    %c0_i32 = arith.constant 0 : i32
    %c0_i32_0 = arith.constant 0 : i32
    return %c0_i32, %arg2 : i32, i32
  }
  func.func @transform_5(%arg0: i32, %arg1: i32, %arg2: i32) -> (i32, i32) {
    %c0_i32 = arith.constant 0 : i32
    return %arg0, %arg1 : i32, i32
  }
}

module attributes {stable_mosaic.version = 11 : i64} {
  func.func @_flash_attn_kernel(%arg0: i32, %arg1: i32, %arg2: i32, %arg3: memref<1x17x64xbf16, #tpu.memory_space<vmem>>, %arg4: memref<1x17x64xbf16, #tpu.memory_space<vmem>>, %arg5: memref<1x17x64xbf16, #tpu.memory_space<vmem>>, %arg6: memref<1x17x64xbf16, #tpu.memory_space<vmem>>, %arg7: memref<17x1xf32, #tpu.memory_space<vmem>>, %arg8: memref<17x1xf32, #tpu.memory_space<vmem>>, %arg9: memref<17x64xf32, #tpu.memory_space<vmem>>) attributes {dimension_semantics = [#tpu.dimension_semantics<parallel>, #tpu.dimension_semantics<parallel>, #tpu.dimension_semantics<arbitrary>], iteration_bounds = array<i64: 4, 1, 1>, scalar_prefetch = 0 : i64, scratch_operands = 3 : i64, tpu.core_type = #tpu.core_type<tc>, window_params = [{transform_indices = @transform_0, window_bounds = array<i64: 1, 17, 64>}, {transform_indices = @transform_1, window_bounds = array<i64: 1, 17, 64>}, {transform_indices = @transform_2, window_bounds = array<i64: 1, 17, 64>}, {transform_indices = @transform_3, window_bounds = array<i64: 1, 17, 64>}]} {
    %c0_i32 = arith.constant 0 : i32
    %0 = arith.cmpi eq, %arg2, %c0_i32 : i32
    %1 = arith.extui %0 : i1 to i32
    %c0_i32_0 = arith.constant 0 : i32
    %2 = arith.cmpi ne, %1, %c0_i32_0 : i32
    scf.if %2 {
      %cst_26 = arith.constant 0xFF800000 : f32
      %36 = vector.broadcast %cst_26 : f32 to vector<17x1xf32>
      %c0_27 = arith.constant 0 : index
      %c0_28 = arith.constant 0 : index
      %37 = vector.load %arg7[%c0_27, %c0_28] : memref<17x1xf32, #tpu.memory_space<vmem>>, vector<17x1xf32>
      tpu.vector_store %arg7[%c0_27, %c0_28], %36 {strides = array<i32>} : memref<17x1xf32, #tpu.memory_space<vmem>>, vector<17x1xf32>,
      %cst_29 = arith.constant 0.000000e+00 : f32
      %38 = vector.broadcast %cst_29 : f32 to vector<17x1xf32>
      %c0_30 = arith.constant 0 : index
      %c0_31 = arith.constant 0 : index
      %39 = vector.load %arg8[%c0_30, %c0_31] : memref<17x1xf32, #tpu.memory_space<vmem>>, vector<17x1xf32>
      tpu.vector_store %arg8[%c0_30, %c0_31], %38 {strides = array<i32>} : memref<17x1xf32, #tpu.memory_space<vmem>>, vector<17x1xf32>,
      %cst_32 = arith.constant 0.000000e+00 : f32
      %40 = vector.broadcast %cst_32 : f32 to vector<17x64xf32>
      %c0_33 = arith.constant 0 : index
      %c0_34 = arith.constant 0 : index
      %41 = vector.load %arg9[%c0_33, %c0_34] : memref<17x64xf32, #tpu.memory_space<vmem>>, vector<17x64xf32>
      tpu.vector_store %arg9[%c0_33, %c0_34], %40 {strides = array<i32>} : memref<17x64xf32, #tpu.memory_space<vmem>>, vector<17x64xf32>,
    } else {
    }
    %c0 = arith.constant 0 : index
    %c0_1 = arith.constant 0 : index
    %c0_2 = arith.constant 0 : index
    %3 = vector.load %arg3[%c0, %c0_1, %c0_2] : memref<1x17x64xbf16, #tpu.memory_space<vmem>>, vector<1x17x64xbf16>
    %4 = vector.shape_cast %3 : vector<1x17x64xbf16> to vector<17x64xbf16>
    %c0_3 = arith.constant 0 : index
    %c0_4 = arith.constant 0 : index
    %c0_5 = arith.constant 0 : index
    %5 = vector.load %arg4[%c0_3, %c0_4, %c0_5] : memref<1x17x64xbf16, #tpu.memory_space<vmem>>, vector<1x17x64xbf16>
    %6 = vector.shape_cast %5 : vector<1x17x64xbf16> to vector<17x64xbf16>
    %c0_6 = arith.constant 0 : index
    %c0_7 = arith.constant 0 : index
    %c0_8 = arith.constant 0 : index
    %7 = vector.load %arg5[%c0_6, %c0_7, %c0_8] : memref<1x17x64xbf16, #tpu.memory_space<vmem>>, vector<1x17x64xbf16>
    %8 = vector.shape_cast %7 : vector<1x17x64xbf16> to vector<17x64xbf16>
    %cst = arith.constant dense<0.000000e+00> : vector<17x17xf32>
    %9 = tpu.matmul %4, %6, %cst {dimension_numbers = #tpu.dot_dimension_numbers<[1], [1], [0], [0], [0, 0, 1, 0], [], []>} : vector<17x64xbf16>, vector<17x64xbf16>, vector<17x17xf32> -> vector<17x17xf32>
    %c0_9 = arith.constant 0 : index
    %c0_10 = arith.constant 0 : index
    %10 = vector.load %arg7[%c0_9, %c0_10] : memref<17x1xf32, #tpu.memory_space<vmem>>, vector<17x1xf32>
    %cst_11 = arith.constant dense<0xFF800000> : vector<17xf32>
    %11 = vector.multi_reduction <maximumf>, %9, %cst_11 [1] : vector<17x17xf32> to vector<17xf32>
    %12 = vector.shape_cast %11 : vector<17xf32> to vector<17x1xf32>
    %13 = arith.maximumf %10, %12 : vector<17x1xf32>
    %14 = arith.subf %10, %13 : vector<17x1xf32>
    %15 = math.exp %14 : vector<17x1xf32>
    %16 = vector.broadcast %13 : vector<17x1xf32> to vector<17x17xf32>
    %17 = arith.subf %9, %16 : vector<17x17xf32>
    %18 = math.exp %17 : vector<17x17xf32>
    %c0_12 = arith.constant 0 : index
    %c0_13 = arith.constant 0 : index
    %19 = vector.load %arg8[%c0_12, %c0_13] : memref<17x1xf32, #tpu.memory_space<vmem>>, vector<17x1xf32>
    %20 = arith.mulf %15, %19 : vector<17x1xf32>
    %cst_14 = arith.constant dense<0.000000e+00> : vector<17xf32>
    %21 = vector.multi_reduction <add>, %18, %cst_14 [1] : vector<17x17xf32> to vector<17xf32>
    %22 = vector.shape_cast %21 : vector<17xf32> to vector<17x1xf32>
    %23 = arith.addf %20, %22 : vector<17x1xf32>
    %c0_15 = arith.constant 0 : index
    %c0_16 = arith.constant 0 : index
    %24 = vector.load %arg8[%c0_15, %c0_16] : memref<17x1xf32, #tpu.memory_space<vmem>>, vector<17x1xf32>
    tpu.vector_store %arg8[%c0_15, %c0_16], %23 {strides = array<i32>} : memref<17x1xf32, #tpu.memory_space<vmem>>, vector<17x1xf32>,
    %c0_17 = arith.constant 0 : index
    %c0_18 = arith.constant 0 : index
    %25 = vector.load %arg9[%c0_17, %c0_18] : memref<17x64xf32, #tpu.memory_space<vmem>>, vector<17x64xf32>
    %26 = vector.broadcast %15 : vector<17x1xf32> to vector<17x64xf32>
    %27 = arith.mulf %26, %25 : vector<17x64xf32>
    %28 = arith.truncf %18 : vector<17x17xf32> to vector<17x17xbf16>
    %cst_19 = arith.constant dense<0.000000e+00> : vector<17x64xf32>
    %29 = tpu.matmul %28, %8, %cst_19 {dimension_numbers = #tpu.dot_dimension_numbers<[1], [0], [0], [1], [0, 0, 1, 1], [], []>} : vector<17x17xbf16>, vector<17x64xbf16>, vector<17x64xf32> -> vector<17x64xf32>
    %30 = arith.addf %27, %29 : vector<17x64xf32>
    %c0_20 = arith.constant 0 : index
    %c0_21 = arith.constant 0 : index
    %31 = vector.load %arg9[%c0_20, %c0_21] : memref<17x64xf32, #tpu.memory_space<vmem>>, vector<17x64xf32>
    tpu.vector_store %arg9[%c0_20, %c0_21], %30 {strides = array<i32>} : memref<17x64xf32, #tpu.memory_space<vmem>>, vector<17x64xf32>,
    %c0_22 = arith.constant 0 : index
    %c0_23 = arith.constant 0 : index
    %32 = vector.load %arg7[%c0_22, %c0_23] : memref<17x1xf32, #tpu.memory_space<vmem>>, vector<17x1xf32>
    tpu.vector_store %arg7[%c0_22, %c0_23], %13 {strides = array<i32>} : memref<17x1xf32, #tpu.memory_space<vmem>>, vector<17x1xf32>,
    %c0_i32_24 = arith.constant 0 : i32
    %33 = arith.cmpi eq, %arg2, %c0_i32_24 : i32
    %34 = arith.extui %33 : i1 to i32
    %c0_i32_25 = arith.constant 0 : i32
    %35 = arith.cmpi ne, %34, %c0_i32_25 : i32
    scf.if %35 {
      %c0_26 = arith.constant 0 : index
      %c0_27 = arith.constant 0 : index
      %36 = vector.load %arg8[%c0_26, %c0_27] : memref<17x1xf32, #tpu.memory_space<vmem>>, vector<17x1xf32>
      %37 = tpu.reciprocal %36 {approx = true} : vector<17x1xf32> -> vector<17x1xf32>
      %c0_28 = arith.constant 0 : index
      %c0_29 = arith.constant 0 : index
      %38 = vector.load %arg9[%c0_28, %c0_29] : memref<17x64xf32, #tpu.memory_space<vmem>>, vector<17x64xf32>
      %39 = vector.broadcast %37 : vector<17x1xf32> to vector<17x64xf32>
      %40 = arith.mulf %38, %39 : vector<17x64xf32>
      %41 = arith.truncf %40 : vector<17x64xf32> to vector<17x64xbf16>
      %c0_30 = arith.constant 0 : index
      %c0_31 = arith.constant 0 : index
      %c0_32 = arith.constant 0 : index
      %42 = vector.load %arg6[%c0_30, %c0_31, %c0_32] : memref<1x17x64xbf16, #tpu.memory_space<vmem>>, vector<1x17x64xbf16>
      %43 = vector.shape_cast %42 : vector<1x17x64xbf16> to vector<17x64xbf16>
      %44 = vector.shape_cast %41 : vector<17x64xbf16> to vector<1x17x64xbf16>
      tpu.vector_store %arg6[%c0_30, %c0_31, %c0_32], %44 {strides = array<i32>} : memref<1x17x64xbf16, #tpu.memory_space<vmem>>, vector<1x17x64xbf16>,
    } else {
    }
    return
  }
  func.func @transform_0(%arg0: i32, %arg1: i32, %arg2: i32) -> (i32, i32, i32) {
    %c0_i32 = arith.constant 0 : i32
    %c0_i32_0 = arith.constant 0 : i32
    return %arg0, %arg1, %c0_i32 : i32, i32, i32
  }
  func.func @transform_1(%arg0: i32, %arg1: i32, %arg2: i32) -> (i32, i32, i32) {
    %c0_i32 = arith.constant 0 : i32
    %c0_i32_0 = arith.constant 0 : i32
    return %arg0, %arg2, %c0_i32 : i32, i32, i32
  }
  func.func @transform_2(%arg0: i32, %arg1: i32, %arg2: i32) -> (i32, i32, i32) {
    %c0_i32 = arith.constant 0 : i32
    %c0_i32_0 = arith.constant 0 : i32
    return %arg0, %arg2, %c0_i32 : i32, i32, i32
  }
  func.func @transform_3(%arg0: i32, %arg1: i32, %arg2: i32) -> (i32, i32, i32) {
    %c0_i32 = arith.constant 0 : i32
    %c0_i32_0 = arith.constant 0 : i32
    return %arg0, %arg1, %c0_i32 : i32, i32, i32
  }
}

module attributes {stable_mosaic.version = 11 : i64} {
  func.func @kernel(%arg0: i32, %arg1: i32, %arg2: i32, %arg3: memref<34x128xbf16, #tpu.memory_space<vmem>>, %arg4: memref<128x128xbf16, #tpu.memory_space<vmem>>, %arg5: memref<1x128xf32, #tpu.memory_space<vmem>>, %arg6: memref<34x128xf32, #tpu.memory_space<vmem>>, %arg7: memref<34x128xf32, #tpu.memory_space<vmem>>) attributes {dimension_semantics = [#tpu.dimension_semantics<parallel>, #tpu.dimension_semantics<parallel>, #tpu.dimension_semantics<arbitrary>], iteration_bounds = array<i64: 1, 1, 1>, scalar_prefetch = 0 : i64, scratch_operands = 0 : i64, tpu.core_type = #tpu.core_type<tc>, window_params = [{transform_indices = @transform_0, window_bounds = array<i64: 34, 128>}, {transform_indices = @transform_1, window_bounds = array<i64: 128, 128>}, {transform_indices = @transform_2, window_bounds = array<i64: 1, 128>}, {transform_indices = @transform_3, window_bounds = array<i64: 34, 128>}, {transform_indices = @transform_4, window_bounds = array<i64: 34, 128>}]} {
    %c0 = arith.constant 0 : index
    %c0_0 = arith.constant 0 : index
    %0 = vector.load %arg3[%c0, %c0_0] : memref<34x128xbf16, #tpu.memory_space<vmem>>, vector<34x128xbf16>
    %c0_1 = arith.constant 0 : index
    %c0_2 = arith.constant 0 : index
    %1 = vector.load %arg4[%c0_1, %c0_2] : memref<128x128xbf16, #tpu.memory_space<vmem>>, vector<128x128xbf16>
    %cst = arith.constant dense<0.000000e+00> : vector<34x128xf32>
    %2 = tpu.matmul %0, %1, %cst {dimension_numbers = #tpu.dot_dimension_numbers<[1], [0], [0], [1], [0, 0, 1, 1], [], []>} : vector<34x128xbf16>, vector<128x128xbf16>, vector<34x128xf32> -> vector<34x128xf32>
    %c0_3 = arith.constant 0 : index
    %c0_4 = arith.constant 0 : index
    %3 = vector.load %arg5[%c0_3, %c0_4] : memref<1x128xf32, #tpu.memory_space<vmem>>, vector<1x128xf32>
    %4 = vector.broadcast %3 : vector<1x128xf32> to vector<34x128xf32>
    %5 = arith.addf %2, %4 : vector<34x128xf32>
    %c0_5 = arith.constant 0 : index
    %c0_6 = arith.constant 0 : index
    %6 = vector.load %arg6[%c0_5, %c0_6] : memref<34x128xf32, #tpu.memory_space<vmem>>, vector<34x128xf32>
    %7 = arith.addf %5, %6 : vector<34x128xf32>
    %c0_7 = arith.constant 0 : index
    %c0_8 = arith.constant 0 : index
    %8 = vector.load %arg7[%c0_7, %c0_8] : memref<34x128xf32, #tpu.memory_space<vmem>>, vector<34x128xf32>
    tpu.vector_store %arg7[%c0_7, %c0_8], %7 {strides = array<i32>} : memref<34x128xf32, #tpu.memory_space<vmem>>, vector<34x128xf32>,
    return
  }
  func.func @transform_0(%arg0: i32, %arg1: i32, %arg2: i32) -> (i32, i32) {
    %c0_i32 = arith.constant 0 : i32
    return %arg0, %arg2 : i32, i32
  }
  func.func @transform_1(%arg0: i32, %arg1: i32, %arg2: i32) -> (i32, i32) {
    %c0_i32 = arith.constant 0 : i32
    return %arg2, %arg1 : i32, i32
  }
  func.func @transform_2(%arg0: i32, %arg1: i32, %arg2: i32) -> (i32, i32) {
    %c0_i32 = arith.constant 0 : i32
    %c0_i32_0 = arith.constant 0 : i32
    return %c0_i32, %arg1 : i32, i32
  }
  func.func @transform_3(%arg0: i32, %arg1: i32, %arg2: i32) -> (i32, i32) {
    %c0_i32 = arith.constant 0 : i32
    return %arg0, %arg1 : i32, i32
  }
  func.func @transform_4(%arg0: i32, %arg1: i32, %arg2: i32) -> (i32, i32) {
    %c0_i32 = arith.constant 0 : i32
    return %arg0, %arg1 : i32, i32
  }
}

module attributes {stable_mosaic.version = 11 : i64} {
  func.func @kernel(%arg0: i32, %arg1: i32, %arg2: i32, %arg3: memref<34x128xf32, #tpu.memory_space<vmem>>, %arg4: memref<128x256xbf16, #tpu.memory_space<vmem>>, %arg5: memref<1x256xf32, #tpu.memory_space<vmem>>, %arg6: memref<1x128xf32, #tpu.memory_space<vmem>>, %arg7: memref<1x128xf32, #tpu.memory_space<vmem>>, %arg8: memref<34x256xbf16, #tpu.memory_space<vmem>>, %arg9: memref<34x128xbf16, #tpu.memory_space<vmem>>) attributes {dimension_semantics = [#tpu.dimension_semantics<parallel>, #tpu.dimension_semantics<arbitrary>, #tpu.dimension_semantics<arbitrary>], iteration_bounds = array<i64: 1, 1, 1>, scalar_prefetch = 0 : i64, scratch_operands = 1 : i64, tpu.core_type = #tpu.core_type<tc>, window_params = [{transform_indices = @transform_0, window_bounds = array<i64: 34, 128>}, {transform_indices = @transform_1, window_bounds = array<i64: 128, 256>}, {transform_indices = @transform_2, window_bounds = array<i64: 1, 256>}, {transform_indices = @transform_3, window_bounds = array<i64: 1, 128>}, {transform_indices = @transform_4, window_bounds = array<i64: 1, 128>}, {transform_indices = @transform_5, window_bounds = array<i64: 34, 256>}]} {
    %c0_i32 = arith.constant 0 : i32
    %0 = arith.cmpi eq, %arg1, %c0_i32 : i32
    %1 = arith.extui %0 : i1 to i32
    %c0_i32_0 = arith.constant 0 : i32
    %2 = arith.cmpi ne, %1, %c0_i32_0 : i32
    scf.if %2 {
      %c0_12 = arith.constant 0 : index
      %c0_13 = arith.constant 0 : index
      %24 = vector.load %arg3[%c0_12, %c0_13] : memref<34x128xf32, #tpu.memory_space<vmem>>, vector<34x128xf32>
      %cst_14 = arith.constant dense<0.000000e+00> : vector<34xf32>
      %25 = vector.multi_reduction <add>, %24, %cst_14 [1] : vector<34x128xf32> to vector<34xf32>
      %26 = vector.shape_cast %25 : vector<34xf32> to vector<34x1xf32>
      %cst_15 = arith.constant 1.280000e+02 : f32
      %27 = vector.broadcast %cst_15 : f32 to vector<34x1xf32>
      %28 = arith.divf %26, %27 : vector<34x1xf32>
      %29 = vector.broadcast %28 : vector<34x1xf32> to vector<34x128xf32>
      %30 = arith.subf %24, %29 : vector<34x128xf32>
      %31 = arith.mulf %30, %30 : vector<34x128xf32>
      %cst_16 = arith.constant dense<0.000000e+00> : vector<34xf32>
      %32 = vector.multi_reduction <add>, %31, %cst_16 [1] : vector<34x128xf32> to vector<34xf32>
      %33 = vector.shape_cast %32 : vector<34xf32> to vector<34x1xf32>
      %cst_17 = arith.constant 1.280000e+02 : f32
      %34 = vector.broadcast %cst_17 : f32 to vector<34x1xf32>
      %35 = arith.divf %33, %34 : vector<34x1xf32>
      %36 = vector.broadcast %28 : vector<34x1xf32> to vector<34x128xf32>
      %37 = arith.subf %24, %36 : vector<34x128xf32>
      %cst_18 = arith.constant 9.99999997E-7 : f32
      %38 = vector.broadcast %cst_18 : f32 to vector<34x1xf32>
      %39 = arith.addf %35, %38 : vector<34x1xf32>
      %40 = math.rsqrt %39 : vector<34x1xf32>
      %41 = vector.broadcast %40 : vector<34x1xf32> to vector<34x128xf32>
      %42 = arith.mulf %37, %41 : vector<34x128xf32>
      %c0_19 = arith.constant 0 : index
      %c0_20 = arith.constant 0 : index
      %43 = vector.load %arg6[%c0_19, %c0_20] : memref<1x128xf32, #tpu.memory_space<vmem>>, vector<1x128xf32>
      %44 = vector.broadcast %43 : vector<1x128xf32> to vector<34x128xf32>
      %45 = arith.mulf %42, %44 : vector<34x128xf32>
      %c0_21 = arith.constant 0 : index
      %c0_22 = arith.constant 0 : index
      %46 = vector.load %arg7[%c0_21, %c0_22] : memref<1x128xf32, #tpu.memory_space<vmem>>, vector<1x128xf32>
      %47 = vector.broadcast %46 : vector<1x128xf32> to vector<34x128xf32>
      %48 = arith.addf %45, %47 : vector<34x128xf32>
      %49 = arith.truncf %48 : vector<34x128xf32> to vector<34x128xbf16>
      %c0_23 = arith.constant 0 : index
      %c0_24 = arith.constant 0 : index
      %50 = vector.load %arg9[%c0_23, %c0_24] : memref<34x128xbf16, #tpu.memory_space<vmem>>, vector<34x128xbf16>
      tpu.vector_store %arg9[%c0_23, %c0_24], %49 {strides = array<i32>} : memref<34x128xbf16, #tpu.memory_space<vmem>>, vector<34x128xbf16>,
    } else {
    }
    %c0 = arith.constant 0 : index
    %c0_1 = arith.constant 0 : index
    %3 = vector.load %arg9[%c0, %c0_1] : memref<34x128xbf16, #tpu.memory_space<vmem>>, vector<34x128xbf16>
    %c0_2 = arith.constant 0 : index
    %c0_3 = arith.constant 0 : index
    %4 = vector.load %arg4[%c0_2, %c0_3] : memref<128x256xbf16, #tpu.memory_space<vmem>>, vector<128x256xbf16>
    %cst = arith.constant dense<0.000000e+00> : vector<34x256xf32>
    %5 = tpu.matmul %3, %4, %cst {dimension_numbers = #tpu.dot_dimension_numbers<[1], [0], [0], [1], [0, 0, 1, 1], [], []>} : vector<34x128xbf16>, vector<128x256xbf16>, vector<34x256xf32> -> vector<34x256xf32>
    %c0_4 = arith.constant 0 : index
    %c0_5 = arith.constant 0 : index
    %6 = vector.load %arg5[%c0_4, %c0_5] : memref<1x256xf32, #tpu.memory_space<vmem>>, vector<1x256xf32>
    %7 = vector.broadcast %6 : vector<1x256xf32> to vector<34x256xf32>
    %8 = arith.addf %5, %7 : vector<34x256xf32>
    %9 = arith.mulf %8, %8 : vector<34x256xf32>
    %10 = arith.mulf %8, %9 : vector<34x256xf32>
    %cst_6 = arith.constant 4.471500e-02 : f32
    %11 = vector.broadcast %cst_6 : f32 to vector<34x256xf32>
    %12 = arith.mulf %11, %10 : vector<34x256xf32>
    %13 = arith.addf %8, %12 : vector<34x256xf32>
    %cst_7 = arith.constant 0.797884583 : f32
    %14 = vector.broadcast %cst_7 : f32 to vector<34x256xf32>
    %15 = arith.mulf %14, %13 : vector<34x256xf32>
    %16 = math.tanh %15 : vector<34x256xf32>
    %cst_8 = arith.constant 1.000000e+00 : f32
    %17 = vector.broadcast %cst_8 : f32 to vector<34x256xf32>
    %18 = arith.addf %17, %16 : vector<34x256xf32>
    %cst_9 = arith.constant 5.000000e-01 : f32
    %19 = vector.broadcast %cst_9 : f32 to vector<34x256xf32>
    %20 = arith.mulf %19, %18 : vector<34x256xf32>
    %21 = arith.mulf %8, %20 : vector<34x256xf32>
    %22 = arith.truncf %21 : vector<34x256xf32> to vector<34x256xbf16>
    %c0_10 = arith.constant 0 : index
    %c0_11 = arith.constant 0 : index
    %23 = vector.load %arg8[%c0_10, %c0_11] : memref<34x256xbf16, #tpu.memory_space<vmem>>, vector<34x256xbf16>
    tpu.vector_store %arg8[%c0_10, %c0_11], %22 {strides = array<i32>} : memref<34x256xbf16, #tpu.memory_space<vmem>>, vector<34x256xbf16>,
    return
  }
  func.func @transform_0(%arg0: i32, %arg1: i32, %arg2: i32) -> (i32, i32) {
    %c0_i32 = arith.constant 0 : i32
    return %arg0, %arg2 : i32, i32
  }
  func.func @transform_1(%arg0: i32, %arg1: i32, %arg2: i32) -> (i32, i32) {
    %c0_i32 = arith.constant 0 : i32
    return %arg2, %arg1 : i32, i32
  }
  func.func @transform_2(%arg0: i32, %arg1: i32, %arg2: i32) -> (i32, i32) {
    %c0_i32 = arith.constant 0 : i32
    %c0_i32_0 = arith.constant 0 : i32
    return %c0_i32, %arg1 : i32, i32
  }
  func.func @transform_3(%arg0: i32, %arg1: i32, %arg2: i32) -> (i32, i32) {
    %c0_i32 = arith.constant 0 : i32
    %c0_i32_0 = arith.constant 0 : i32
    return %c0_i32, %arg2 : i32, i32
  }
  func.func @transform_4(%arg0: i32, %arg1: i32, %arg2: i32) -> (i32, i32) {
    %c0_i32 = arith.constant 0 : i32
    %c0_i32_0 = arith.constant 0 : i32
    return %c0_i32, %arg2 : i32, i32
  }
  func.func @transform_5(%arg0: i32, %arg1: i32, %arg2: i32) -> (i32, i32) {
    %c0_i32 = arith.constant 0 : i32
    return %arg0, %arg1 : i32, i32
  }
}

module attributes {stable_mosaic.version = 11 : i64} {
  func.func @_layernorm_kernel(%arg0: i32, %arg1: memref<34x128xf32, #tpu.memory_space<vmem>>, %arg2: memref<1x128xf32, #tpu.memory_space<vmem>>, %arg3: memref<1x128xf32, #tpu.memory_space<vmem>>, %arg4: memref<34x128xf32, #tpu.memory_space<vmem>>) attributes {dimension_semantics = [#tpu.dimension_semantics<parallel>], iteration_bounds = array<i64: 1>, scalar_prefetch = 0 : i64, scratch_operands = 0 : i64, tpu.core_type = #tpu.core_type<tc>, window_params = [{transform_indices = @transform_0, window_bounds = array<i64: 34, 128>}, {pipeline_mode = #tpu.pipeline_mode<synchronous>, transform_indices = @transform_1, window_bounds = array<i64: 1, 128>}, {pipeline_mode = #tpu.pipeline_mode<synchronous>, transform_indices = @transform_2, window_bounds = array<i64: 1, 128>}, {transform_indices = @transform_3, window_bounds = array<i64: 34, 128>}]} {
    %c0 = arith.constant 0 : index
    %c0_0 = arith.constant 0 : index
    %0 = vector.load %arg1[%c0, %c0_0] : memref<34x128xf32, #tpu.memory_space<vmem>>, vector<34x128xf32>
    %cst = arith.constant dense<0.000000e+00> : vector<34xf32>
    %1 = vector.multi_reduction <add>, %0, %cst [1] : vector<34x128xf32> to vector<34xf32>
    %2 = vector.shape_cast %1 : vector<34xf32> to vector<34x1xf32>
    %cst_1 = arith.constant 1.280000e+02 : f32
    %3 = vector.broadcast %cst_1 : f32 to vector<34x1xf32>
    %4 = arith.divf %2, %3 : vector<34x1xf32>
    %5 = vector.broadcast %4 : vector<34x1xf32> to vector<34x128xf32>
    %6 = arith.subf %0, %5 : vector<34x128xf32>
    %7 = arith.mulf %6, %6 : vector<34x128xf32>
    %cst_2 = arith.constant dense<0.000000e+00> : vector<34xf32>
    %8 = vector.multi_reduction <add>, %7, %cst_2 [1] : vector<34x128xf32> to vector<34xf32>
    %9 = vector.shape_cast %8 : vector<34xf32> to vector<34x1xf32>
    %cst_3 = arith.constant 1.280000e+02 : f32
    %10 = vector.broadcast %cst_3 : f32 to vector<34x1xf32>
    %11 = arith.divf %9, %10 : vector<34x1xf32>
    %12 = vector.broadcast %4 : vector<34x1xf32> to vector<34x128xf32>
    %13 = arith.subf %0, %12 : vector<34x128xf32>
    %cst_4 = arith.constant 9.99999997E-7 : f32
    %14 = vector.broadcast %cst_4 : f32 to vector<34x1xf32>
    %15 = arith.addf %11, %14 : vector<34x1xf32>
    %16 = math.rsqrt %15 : vector<34x1xf32>
    %17 = vector.broadcast %16 : vector<34x1xf32> to vector<34x128xf32>
    %18 = arith.mulf %13, %17 : vector<34x128xf32>
    %c0_5 = arith.constant 0 : index
    %c0_6 = arith.constant 0 : index
    %19 = vector.load %arg2[%c0_5, %c0_6] : memref<1x128xf32, #tpu.memory_space<vmem>>, vector<1x128xf32>
    %20 = vector.broadcast %19 : vector<1x128xf32> to vector<34x128xf32>
    %21 = arith.mulf %18, %20 : vector<34x128xf32>
    %c0_7 = arith.constant 0 : index
    %c0_8 = arith.constant 0 : index
    %22 = vector.load %arg3[%c0_7, %c0_8] : memref<1x128xf32, #tpu.memory_space<vmem>>, vector<1x128xf32>
    %23 = vector.broadcast %22 : vector<1x128xf32> to vector<34x128xf32>
    %24 = arith.addf %21, %23 : vector<34x128xf32>
    %c0_9 = arith.constant 0 : index
    %c0_10 = arith.constant 0 : index
    %25 = vector.load %arg4[%c0_9, %c0_10] : memref<34x128xf32, #tpu.memory_space<vmem>>, vector<34x128xf32>
    tpu.vector_store %arg4[%c0_9, %c0_10], %24 {strides = array<i32>} : memref<34x128xf32, #tpu.memory_space<vmem>>, vector<34x128xf32>,
    return
  }
  func.func @transform_0(%arg0: i32) -> (i32, i32) {
    %c0_i32 = arith.constant 0 : i32
    %c0_i32_0 = arith.constant 0 : i32
    return %arg0, %c0_i32 : i32, i32
  }
  func.func @transform_1(%arg0: i32) -> (i32, i32) {
    %c0_i32 = arith.constant 0 : i32
    %c0_i32_0 = arith.constant 0 : i32
    %c0_i32_1 = arith.constant 0 : i32
    return %c0_i32, %c0_i32_0 : i32, i32
  }
  func.func @transform_2(%arg0: i32) -> (i32, i32) {
    %c0_i32 = arith.constant 0 : i32
    %c0_i32_0 = arith.constant 0 : i32
    %c0_i32_1 = arith.constant 0 : i32
    return %c0_i32, %c0_i32_0 : i32, i32
  }
  func.func @transform_3(%arg0: i32) -> (i32, i32) {
    %c0_i32 = arith.constant 0 : i32
    %c0_i32_0 = arith.constant 0 : i32
    return %arg0, %c0_i32 : i32, i32
  }
}

module attributes {stable_mosaic.version = 11 : i64} {
  func.func @kernel(%arg0: i32, %arg1: i32, %arg2: i32, %arg3: memref<34x256xbf16, #tpu.memory_space<vmem>>, %arg4: memref<256x128xbf16, #tpu.memory_space<vmem>>, %arg5: memref<1x128xf32, #tpu.memory_space<vmem>>, %arg6: memref<34x128xf32, #tpu.memory_space<vmem>>, %arg7: memref<34x128xf32, #tpu.memory_space<vmem>>) attributes {dimension_semantics = [#tpu.dimension_semantics<parallel>, #tpu.dimension_semantics<parallel>, #tpu.dimension_semantics<arbitrary>], iteration_bounds = array<i64: 1, 1, 1>, scalar_prefetch = 0 : i64, scratch_operands = 0 : i64, tpu.core_type = #tpu.core_type<tc>, window_params = [{transform_indices = @transform_0, window_bounds = array<i64: 34, 256>}, {transform_indices = @transform_1, window_bounds = array<i64: 256, 128>}, {transform_indices = @transform_2, window_bounds = array<i64: 1, 128>}, {transform_indices = @transform_3, window_bounds = array<i64: 34, 128>}, {transform_indices = @transform_4, window_bounds = array<i64: 34, 128>}]} {
    %c0 = arith.constant 0 : index
    %c0_0 = arith.constant 0 : index
    %0 = vector.load %arg3[%c0, %c0_0] : memref<34x256xbf16, #tpu.memory_space<vmem>>, vector<34x256xbf16>
    %c0_1 = arith.constant 0 : index
    %c0_2 = arith.constant 0 : index
    %1 = vector.load %arg4[%c0_1, %c0_2] : memref<256x128xbf16, #tpu.memory_space<vmem>>, vector<256x128xbf16>
    %cst = arith.constant dense<0.000000e+00> : vector<34x128xf32>
    %2 = tpu.matmul %0, %1, %cst {dimension_numbers = #tpu.dot_dimension_numbers<[1], [0], [0], [1], [0, 0, 1, 1], [], []>} : vector<34x256xbf16>, vector<256x128xbf16>, vector<34x128xf32> -> vector<34x128xf32>
    %c0_3 = arith.constant 0 : index
    %c0_4 = arith.constant 0 : index
    %3 = vector.load %arg5[%c0_3, %c0_4] : memref<1x128xf32, #tpu.memory_space<vmem>>, vector<1x128xf32>
    %4 = vector.broadcast %3 : vector<1x128xf32> to vector<34x128xf32>
    %5 = arith.addf %2, %4 : vector<34x128xf32>
    %c0_5 = arith.constant 0 : index
    %c0_6 = arith.constant 0 : index
    %6 = vector.load %arg6[%c0_5, %c0_6] : memref<34x128xf32, #tpu.memory_space<vmem>>, vector<34x128xf32>
    %7 = arith.addf %5, %6 : vector<34x128xf32>
    %c0_7 = arith.constant 0 : index
    %c0_8 = arith.constant 0 : index
    %8 = vector.load %arg7[%c0_7, %c0_8] : memref<34x128xf32, #tpu.memory_space<vmem>>, vector<34x128xf32>
    tpu.vector_store %arg7[%c0_7, %c0_8], %7 {strides = array<i32>} : memref<34x128xf32, #tpu.memory_space<vmem>>, vector<34x128xf32>,
    return
  }
  func.func @transform_0(%arg0: i32, %arg1: i32, %arg2: i32) -> (i32, i32) {
    %c0_i32 = arith.constant 0 : i32
    return %arg0, %arg2 : i32, i32
  }
  func.func @transform_1(%arg0: i32, %arg1: i32, %arg2: i32) -> (i32, i32) {
    %c0_i32 = arith.constant 0 : i32
    return %arg2, %arg1 : i32, i32
  }
  func.func @transform_2(%arg0: i32, %arg1: i32, %arg2: i32) -> (i32, i32) {
    %c0_i32 = arith.constant 0 : i32
    %c0_i32_0 = arith.constant 0 : i32
    return %c0_i32, %arg1 : i32, i32
  }
  func.func @transform_3(%arg0: i32, %arg1: i32, %arg2: i32) -> (i32, i32) {
    %c0_i32 = arith.constant 0 : i32
    return %arg0, %arg1 : i32, i32
  }
  func.func @transform_4(%arg0: i32, %arg1: i32, %arg2: i32) -> (i32, i32) {
    %c0_i32 = arith.constant 0 : i32
    return %arg0, %arg1 : i32, i32
  }
}

</mosaic_0001>

<bundles_post_ra>
// kernel: visual_backbone_forward.14
= control target key start
LH: loop header
LB: loop body
LE: loop exit
PB: predicated region body
PF: predicated region fallthrough
CT: control target
= control target key end

     0   :  { %s300_s12 = smov 0   ;;  %s326_s0 = inlined_call_operand.vmem [shape: bf16[2,16,128], index: 0, kind: input, shape index: {}]   ;;  %s327_s1 = inlined_call_operand.vmem [shape: f32[1,1,128], index: 1, kind: input, shape index: {}]   ;;  %s328_s2 = inlined_call_operand.vmem [shape: f32[1,16,128], index: 2, kind: input, shape index: {}]   ;;  %s329_s3 = inlined_call_operand.vmem [shape: f32[2,17,128], index: 3, kind: output, shape index: {}]  }
   0x1 LB: > { %s248_s13 = sadd.s32 4294967295, %s278_s12   ;;  %p252_p0 = scmp.ge.s32.totalorder %s278_s12, 1  ;;  %s278_s12 = sphi %s300_s12, %s13_s12  }
   0x2   : > { %p137_p1 = scmp.lt.s32.totalorder %s278_s12, 3 }
   0x4   : > { %p138_p2 = pnand %p252_p0, %p137_p1 }
   0x5   : > { %p161_p3 = scmp.lt.s32.totalorder (!%p138_p2), %s248_s13, 1 }
   0x6   : > { %141 = sbr.rel (%p138_p2) target bundleno = 24 (0x18), region = 32 }
   0xb   : > { %s331_s13 = smov (!%p161_p3, %s248_s13), 1  ;;  %v175_v1 = vld [vmem:[%s328_s2] sm:$0xff]  ;;  %v176_v2 = vld [vmem:[%s328_s2 + $0x8] sm:$0xff]  ;;  %vm182_vm0 = vcmask 1040384  }
   0xc   : > { %s258_s14 = sshll.u32 %s331_s13, 3  ;;  %s263_s18 = smul.u32 24, %s331_s13  ;;  %v179_v7 = vld [vmem:[%s327_s1] sm:$0x1] }
   0xd   : > { %s165_s17 = scalar_lea.vmem %s326_s0, %s258_s14 }
   0xe   : > { %v260_v0 = vld [vmem:[%s165_s17] sm:$0xff]   ;;  %s170_s25 = scalar_lea.vmem %s329_s3, %s263_s18 }
   0xf   : > { %v261_v3 = vunpack.c.l.bf16 %v260_v0  ;;  %v262_v4 = vunpack.c.h.bf16 %v260_v0 }
  0x11   : > { %v177_v5 = vadd.f32 %v261_v3, %v175_v1  ;;  %v178_v6 = vadd.f32 %v262_v4, %v176_v2 }
  0x13   : > { %v183_v8 = vrot.slane %v177_v5, 7  ;;  %v184_v9 = vrot.slane %v178_v6, 7 }
  0x15   : > { %v189_v10 = vsel %vm182_vm0, %v179_v7, %v183_v8  ;;  %v185_v11 = vsel %vm182_vm0, %v183_v8, %v184_v9  ;;  %192 = vst [vmem:[%s170_s25 + $0x10] sm:$0x1] %v184_v9 }
  0x16   : > { %190 = vst [vmem:[%s170_s25] sm:$0xff] %v189_v10 }
  0x17   : > { %191 = vst [vmem:[%s170_s25 + $0x8] sm:$0xff] %v185_v11 }
  0x18 PF: > { %s13_s12 = sadd.s32 1, %s278_s12  }
  0x19   : > { %p10_p4 = scmp.ge.s32.totalorder %s13_s12, 4  }
  0x1b   :  { %12 = sbr.rel (!%p10_p4) target bundleno = 1 (0x1), region = 62 }

// kernel: visual_backbone_forward.13
= control target key start
LH: loop header
LB: loop body
LE: loop exit
PB: predicated region body
PF: predicated region fallthrough
CT: control target
= control target key end

     0   :  { %s748_s12 = smov 0   ;;  %s750_s13 = smov 0   ;;  %s824_s0 = inlined_call_operand.vmem [shape: bf16[32,640], index: 0, kind: input, shape index: {}]   ;;  %s825_s1 = inlined_call_operand.vmem [shape: bf16[640,128], index: 1, kind: input, shape index: {}]   ;;  %s826_s2 = inlined_call_operand.vmem [shape: f32[1,128], index: 2, kind: input, shape index: {}]   ;;  %s827_s3 = inlined_call_operand.vmem [shape: bf16[32,128], index: 3, kind: output, shape index: {}]  }
   0x1   :  { %s752_s14 = smov 0   ;;  %s754_s15 = smov 0  }
   0x2   :  { %s756_s16 = smov 0  }
   0x3 LB: > { %s25_s17 = sadd.s32 1, %s721_s15  ;;  %p48_p1 = scmp.ne.s32.totalorder %s713_s13, %s709_s12  ;;  %s725_s16 = sphi %s756_s16, %s13_s16   ;;  %s721_s15 = sphi %s754_s15, %s831_s15   ;;  %s717_s14 = sphi %s752_s14, %s830_s14   ;;  %s713_s13 = sphi %s750_s13, %s829_s13   ;;  %s709_s12 = sphi %s748_s12, %s828_s12  }
   0x4   : > { %p26_p0 = scmp.ge.s32.totalorder %s25_s17, 5  ;;  %p49_p2 = scmp.eq.s32.totalorder %s725_s16, 0 }
   0x5   : > { %s41_s19 = sadd.s32 1, %s713_s13  ;;  %p563_p5 = scmp.ge.s32.totalorder %s725_s16, 5 }
   0x6   : > { %s833_s17 = smov (%p26_p0, %s25_s17), 0  ;;  %p50_p3 = por %p49_p2, %p48_p1 }
   0x7   : > { %s37_s18 = ssub.s32 %s721_s15, %s833_s17  ;;  %162 = sbr.rel (%p563_p5) target bundleno = 20 (0x14), region = 20 }
   0x8   : > { %p39_p4 = scmp.eq.s32.totalorder %s37_s18, 0 }
   0xa   : > { %s783_s20 = scalar_select %p39_p4, %s713_s13, %s41_s19  }
   0xc   : > { %165 = sbr.rel (!%p50_p3) target bundleno = 20 (0x14), region = 24  ;;  %s167_s21 = sand.u32 (%p50_p3), 1, %s713_s13  }
   0xd   : > { %s565_s22 = sshll.u32 (%p50_p3), %s721_s15, 2  ;;  %s564_s23 = sshll.u32 (%p50_p3), %s167_s21, 4 }
   0xe   : > { %s174_s26 = scalar_lea.vmem (%p50_p3), %s824_s0, %s565_s22  ;;  %s169_s27 = scalar_lea.vmem (%p50_p3), [#allocation3], %s564_s23 }
   0xf   : > { %v191_v0 = vld [vmem:[%s174_s26] sm:$0xf] (%p50_p3)  ;;  %v193_v1 = vld [vmem:[%s174_s26 + $0x14] sm:$0xf] (%p50_p3)  ;;  %v195_v2 = vld [vmem:[%s174_s26 + $0x28] sm:$0xf] (%p50_p3) }
  0x10   : > { %192 = vst [vmem:[%s169_s27] sm:$0xf] (%p50_p3), %v191_v0  ;;  %v197_v3 = vld [vmem:[%s174_s26 + $0x3c] sm:$0xf] (%p50_p3) }
  0x11   : > { %194 = vst [vmem:[%s169_s27 + $0x4] sm:$0xf] %v193_v1 }
  0x12   : > { %196 = vst [vmem:[%s169_s27 + $0x8] sm:$0xf] %v195_v2 }
  0x13   : > { %198 = vst [vmem:[%s169_s27 + $0xc] sm:$0xf] %v197_v3 }
  0x14 PF: > { %p566_p6 = scmp.ge.s32.totalorder %s725_s16, 1  ;;  %p241_p7 = scmp.lt.s32.totalorder %s725_s16, 6 }
  0x16   : > { %p242_p8 = pnand %p566_p6, %p241_p7 }
  0x17   : > { %s568_s28 = sshll.u32 (!%p242_p8), %s717_s14, 4  ;;  %s248_s6 = sand.u32 (!%p242_p8), 1, %s709_s12  }
  0x18   : > { %245 = sbr.rel (%p242_p8) target bundleno = 225 (0xe1), region = 69  ;;  %p287_p9 = scmp.lt.s32.totalorder (!%p242_p8), %s568_s28, 79 }
  0x19   : > { %s567_s7 = sshll.u32 (!%p242_p8), %s248_s6, 4  ;;  %p610_p10 = scmp.ne.s32.totalorder (!%p242_p8), %s717_s14, 0 }
  0x1a   : > { %s250_s8 = scalar_lea.vmem (!%p242_p8), [#allocation3], %s567_s7 }
  0x1d   : > { %s835_s28 = smov (!%p287_p9, %s568_s28), 79  ;;  %v616_v12 = vld [vmem:[%s250_s8] sm:$0xff]  ;;  %v617_v13 = vld [vmem:[%s250_s8 + $0x8] sm:$0xff] }
  0x1e   : > { %s569_s29 = sshll.u32 %s835_s28, 2 }
  0x1f   : > { %s293_s5 = scalar_lea.vmem %s825_s1, %s569_s29 }
  0x20   : > { %v625_v4 = vld [vmem:[%s293_s5 + $0x38] sm:$0xff]  ;;  %v624_v5 = vld [vmem:[%s293_s5 + $0x30] sm:$0xff]  ;;  %v623_v6 = vld [vmem:[%s293_s5 + $0x28] sm:$0xff] }
  0x21   : > { %387 = vmatpush.bf16.msra.mxu0 %v625_v4  ;;  %637 = vmatpush.bf16.msra.mxu1 %v625_v4  ;;  %v622_v7 = vld [vmem:[%s293_s5 + $0x20] sm:$0xff]  ;;  %v621_v8 = vld [vmem:[%s293_s5 + $0x18] sm:$0xff]  ;;  %v620_v9 = vld [vmem:[%s293_s5 + $0x10] sm:$0xff] }
  0x22   : > { %v619_v10 = vld [vmem:[%s293_s5 + $0x8] sm:$0xff]  ;;  %v618_v11 = vld [vmem:[%s293_s5] sm:$0xff] }
  0x25   : > { %388 = vmatpush.bf16.msra.mxu0 %v624_v5  ;;  %638 = vmatpush.bf16.msra.mxu1 %v624_v5 }
  0x29   : > { %389 = vmatpush.bf16.msra.mxu0 %v623_v6  ;;  %639 = vmatpush.bf16.msra.mxu1 %v623_v6 }
  0x2d   : > { %390 = vmatpush.bf16.msra.mxu0 %v622_v7  ;;  %640 = vmatpush.bf16.msra.mxu1 %v622_v7 }
  0x31   : > { %391 = vmatpush.bf16.msra.mxu0 %v621_v8  ;;  %641 = vmatpush.bf16.msra.mxu1 %v621_v8 }
  0x35   : > { %392 = vmatpush.bf16.msra.mxu0 %v620_v9  ;;  %642 = vmatpush.bf16.msra.mxu1 %v620_v9 }
  0x39   : > { %393 = vmatpush.bf16.msra.mxu0 %v619_v10  ;;  %643 = vmatpush.bf16.msra.mxu1 %v619_v10 }
  0x3d   : > { %394 = vmatpush.bf16.msra.mxu0 %v618_v11  ;;  %644 = vmatpush.bf16.msra.mxu1 %v618_v11 }
  0x40   : > { %395 = vmatmul.bf16.vlgmr.msra.gmra.mxu0 %v616_v12  ;;  %400 = vmatmul.bf16.vlgmr.msra.gmra.mxu1 %v617_v13 }
  0xbd   : > { %v396_v14 = vpop.f32.mrf.mxu0  ;;  %v401_v15 = vpop.f32.mrf.mxu1 }
  0xc1   : > { %409 = sbr.rel (%p610_p10) target bundleno = 203 (0xcb), region = 77 }
  0xc5   : > { %v398_v16 = vpop.f32.mrf.mxu0  ;;  %v403_v17 = vpop.f32.mrf.mxu1 }
  0xc6   : > { %v727_v18 = vmov 0.0  }
  0xc7   : > { %410 = vst [vmem:[#allocation2 + $0x10] sm:$0xff] %v727_v18 }
  0xc8   : > { %411 = vst [vmem:[#allocation2] sm:$0xff] %v727_v18 }
  0xc9   : > { %412 = vst [vmem:[#allocation2 + $0x18] sm:$0xff] %v727_v18 }
  0xca   : > { %413 = vst [vmem:[#allocation2 + $0x8] sm:$0xff] %v727_v18 }
  0xcb PF: > { %p611_p11 = scmp.ne.s32.totalorder %s717_s14, 4 }
  0xce   : > { %v414_v19 = vld [vmem:[#allocation2 + $0x10] sm:$0xff] }
  0xcf   : > { %v415_v20 = vld [vmem:[#allocation2] sm:$0xff]  ;;  %v418_v22 = vadd.f32 %v414_v19, %v396_v14 }
  0xd0   : > { %v416_v21 = vld [vmem:[#allocation2 + $0x18] sm:$0xff]  ;;  %v419_v23 = vadd.f32 %v415_v20, %v398_v16  ;;  %429 = sbr.rel (%p611_p11) target bundleno = 225 (0xe1), region = 81 }
  0xd1   : > { %v420_v24 = vadd.f32 %v416_v21, %v401_v15  ;;  %v417_v25 = vld [vmem:[#allocation2 + $0x8] sm:$0xff]  ;;  %422 = vst [vmem:[#allocation2 + $0x10] sm:$0xff] %v418_v22 }
  0xd2   : > { %v421_v26 = vadd.f32 %v417_v25, %v403_v17  ;;  %423 = vst [vmem:[#allocation2] sm:$0xff] %v419_v23 }
  0xd3   : > { %424 = vst [vmem:[#allocation2 + $0x18] sm:$0xff] %v420_v24 }
  0xd4   : > { %425 = vst [vmem:[#allocation2 + $0x8] sm:$0xff] %v421_v26 }
  0xd5   : > { %v686_v29 = vld [vmem:[%s826_s2] ss:$0 sm:$0xff] }
  0xd8   : > { %v430_v27 = vld [vmem:[#allocation2 + $0x10] sm:$0xff] }
  0xd9   : > { %v431_v28 = vld [vmem:[#allocation2] sm:$0xff]  ;;  %v438_v32 = vadd.f32 %v686_v29, %v430_v27 }
  0xda   : > { %v432_v30 = vld [vmem:[#allocation2 + $0x18] sm:$0xff]  ;;  %v439_v33 = vadd.f32 %v686_v29, %v431_v28 }
  0xdb   : > { %v433_v31 = vld [vmem:[#allocation2 + $0x8] sm:$0xff]  ;;  %v440_v34 = vadd.f32 %v686_v29, %v432_v30 }
  0xdc   : > { %v441_v35 = vadd.f32 %v686_v29, %v433_v31  ;;  %v629_v36 = vpack.c.bf16 %v439_v33, %v438_v32 }
  0xde   : > { %v634_v37 = vpack.c.bf16 %v441_v35, %v440_v34  ;;  %630 = vst [vmem:[%s827_s3] sm:$0xff] %v629_v36  }
  0xe0   : > { %636 = vst [vmem:[%s827_s3 + $0x8] sm:$0xff] %v634_v37  }
  0xe1 PF: > { %s13_s16 = sadd.s32 1, %s725_s16   ;;  %s828_s12 = smov %s713_s13 }
  0xe2   : > { %p10_p12 = scmp.ge.s32.totalorder %s13_s16, 7   ;;  %s829_s13 = smov %s783_s20 }
  0xe3   : > { %s830_s14 = smov %s721_s15  ;;  %s831_s15 = smov %s833_s17 }
  0xe4   :  { %12 = sbr.rel (!%p10_p12) target bundleno = 3 (0x3), region = 122 }

// kernel: visual_backbone_forward.15
= control target key start
LH: loop header
LB: loop body
LE: loop exit
PB: predicated region body
PF: predicated region fallthrough
CT: control target
= control target key end

     0   :  { %vm37_vm0 = vcmask 1041408   ;;  %v613_v6 = vmov 128.0   ;;  %s902_s0 = inlined_call_operand.vmem [shape: f32[34,128], index: 0, kind: input, shape index: {}]   ;;  %s903_s3 = inlined_call_operand.vmem [shape: f32[1,128], index: 3, kind: input, shape index: {}]   ;;  %s904_s4 = inlined_call_operand.vmem [shape: f32[1,128], index: 4, kind: input, shape index: {}]   ;;  %s905_s1 = inlined_call_operand.vmem [shape: bf16[128,384], index: 1, kind: input, shape index: {}]   ;;  %s906_s2 = inlined_call_operand.vmem [shape: f32[1,384], index: 2, kind: input, shape index: {}]   ;;  %s907_s5 = inlined_call_operand.vmem [shape: bf16[34,384], index: 5, kind: output, shape index: {}]  }
   0x1   :  { %v26_v0 = vld [vmem:[%s902_s0 + $0x10] sm:$0xff]  ;;  %v24_v1 = vld [vmem:[%s902_s0] sm:$0xff]  ;;  %v27_v4 = vld [vmem:[%s902_s0 + $0x18] sm:$0xff]  ;;  %601 = vrcp.f32 %v613_v6 }
   0x2   :  { %33 = vadd.xlane.f32.xlu1 %v26_v0  ;;  %29 = vadd.xlane.f32.xlu0 %v24_v1  ;;  %v28_v2 = vld [vmem:[%s902_s0 + $0x20] sm:$0x3]  ;;  %v25_v5 = vld [vmem:[%s902_s0 + $0x8] sm:$0xff]  ;;  %v577_v35 = vld [vmem:[%s905_s1 + $0xb0] sm:$0xf0] }
   0x3   :  { %v38_v3 = vsel %vm37_vm0, %v28_v2, 0.0  ;;  %v543_v34 = vld [vmem:[%s905_s1 + $0xa8] sm:$0xf]  ;;  %v576_v36 = vld [vmem:[%s905_s1 + $0xac] sm:$0xf] }
   0x4   :  { %39 = vadd.xlane.f32.xlu2 %v38_v3  ;;  %v544_v37 = vor.u32 %v577_v35, %v543_v34  ;;  %v545_v38 = vld [vmem:[%s905_s1 + $0xb4] sm:$0xf0]  ;;  %v551_v39 = vld [vmem:[%s905_s1 + $0xb0] sm:$0xf]  ;;  %v578_v40 = vld [vmem:[%s905_s1 + $0xb8] sm:$0xf0] }
   0x5   :  { %v548_v41 = vor.u32 %v576_v36, %v545_v38  ;;  %v552_v42 = vor.u32 %v578_v40, %v551_v39  ;;  %v531_v43 = vld [vmem:[%s905_s1 + $0x90] sm:$0xf]  ;;  %v574_v44 = vld [vmem:[%s905_s1 + $0x98] sm:$0xf0]  ;;  %v573_v45 = vld [vmem:[%s905_s1 + $0x94] sm:$0xf] }
   0x6   :  { %356 = vmatpush.bf16.msra.mxu0 %v544_v37  ;;  %590 = vmatpush.bf16.msra.mxu3 %v544_v37  ;;  %v532_v46 = vor.u32 %v574_v44, %v531_v43  ;;  %v533_v47 = vld [vmem:[%s905_s1 + $0x9c] sm:$0xf0]  ;;  %v539_v48 = vld [vmem:[%s905_s1 + $0x98] sm:$0xf]  ;;  %v575_v49 = vld [vmem:[%s905_s1 + $0xa0] sm:$0xf0] }
   0x7   :  { %v602_v7 = vpop.eup %601  ;;  %379 = vmatpush.bf16.msra.mxu1 %v548_v41  ;;  %402 = vmatpush.bf16.msra.mxu2 %v552_v42  ;;  %v536_v50 = vor.u32 %v573_v45, %v533_v47  ;;  %v540_v51 = vor.u32 %v575_v49, %v539_v48  ;;  %v519_v52 = vld [vmem:[%s905_s1 + $0x78] sm:$0xf]  ;;  %v571_v53 = vld [vmem:[%s905_s1 + $0x80] sm:$0xf0]  ;;  %v570_v54 = vld [vmem:[%s905_s1 + $0x7c] sm:$0xf] }
   0x8   :  { %v42_v8 = vmul.f32 128.0, %v602_v7  ;;  %vm46_vm1 = vweird.f32 %v602_v7  ;;  %v520_v55 = vor.u32 %v571_v53, %v519_v52  ;;  %v521_v56 = vld [vmem:[%s905_s1 + $0x84] sm:$0xf0]  ;;  %v527_v57 = vld [vmem:[%s905_s1 + $0x80] sm:$0xf] }
   0x9   :  { %v572_v58 = vld [vmem:[%s905_s1 + $0x88] sm:$0xf0]  ;;  %v524_v59 = vor.u32 %v570_v54, %v521_v56  ;;  %v507_v61 = vld [vmem:[%s905_s1 + $0x60] sm:$0xf]  ;;  %v567_v63 = vld [vmem:[%s905_s1 + $0x64] sm:$0xf] }
   0xa   :  { %35 = vadd.xlane.f32.xlu1 %v27_v4  ;;  %31 = vadd.xlane.f32.xlu0 %v25_v5  ;;  %v43_v9 = vsub.f32 1.0, %v42_v8  ;;  %v528_v60 = vor.u32 %v572_v58, %v527_v57  ;;  %v568_v62 = vld [vmem:[%s905_s1 + $0x68] sm:$0xf0]  ;;  %v569_v3 = vld [vmem:[%s905_s1 + $0x70] sm:$0xf0] }
   0xb   :  { %357 = vmatpush.bf16.msra.mxu0 %v532_v46  ;;  %591 = vmatpush.bf16.msra.mxu3 %v532_v46  ;;  %v495_v6 = vld [vmem:[%s905_s1 + $0x48] sm:$0xf]  ;;  %v564_v8 = vld [vmem:[%s905_s1 + $0x4c] sm:$0xf]  ;;  %v471_v36 = vld [vmem:[%s905_s1 + $0x18] sm:$0xf] }
   0xc   :  { %v44_v10 = vmul.f32 %v602_v7, %v43_v9  ;;  %380 = vmatpush.bf16.msra.mxu1 %v536_v50  ;;  %403 = vmatpush.bf16.msra.mxu2 %v540_v51  ;;  %v559_v37 = vld [vmem:[%s905_s1 + $0x20] sm:$0xf0]  ;;  %v558_v38 = vld [vmem:[%s905_s1 + $0x1c] sm:$0xf]  ;;  %v473_v42 = vld [vmem:[%s905_s1 + $0x24] sm:$0xf0] }
   0xd   :  { %v472_v41 = vor.u32 %v559_v37, %v471_v36  ;;  %v479_v43 = vld [vmem:[%s905_s1 + $0x20] sm:$0xf]  ;;  %v560_v44 = vld [vmem:[%s905_s1 + $0x28] sm:$0xf0]  ;;  %v476_v47 = vor.u32 %v558_v38, %v473_v42  ;;  %v555_v56 = vld [vmem:[%s905_s1 + $0x4] sm:$0xf] }
   0xe   :  { %v45_v11 = vadd.f32 %v602_v7, %v44_v10  ;;  %v480_v48 = vor.u32 %v560_v44, %v479_v43  ;;  %v459_v52 = vld [vmem:[%s905_s1] sm:$0xf]  ;;  %v461_v57 = vld [vmem:[%s905_s1 + $0xc] sm:$0xf0] }
   0xf   :  { %358 = vmatpush.bf16.msra.mxu0 %v520_v55  ;;  %592 = vmatpush.bf16.msra.mxu3 %v520_v55  ;;  %v556_v55 = vld [vmem:[%s905_s1 + $0x8] sm:$0xf0]  ;;  %v600_v38 = vld [vmem:[%s904_s4] ss:$0 sm:$0xff] }
  0x10   :  { %v660_v12 = vsel %vm46_vm1, %v602_v7, %v45_v11  ;;  %381 = vmatpush.bf16.msra.mxu1 %v524_v59  ;;  %404 = vmatpush.bf16.msra.mxu2 %v528_v60  ;;  %v565_v7 = vld [vmem:[%s905_s1 + $0x50] sm:$0xf0]  ;;  %v467_v59 = vld [vmem:[%s905_s1 + $0x8] sm:$0xf] }
  0x11   :  { %v496_v11 = vor.u32 %v565_v7, %v495_v6  ;;  %v557_v60 = vld [vmem:[%s905_s1 + $0x10] sm:$0xf0] }
  0x75   :  { %v34_v13 = vpop.xlane.xlu1 %33  ;;  %v30_v14 = vpop.xlane.xlu0 %29 }
  0x76   :  { %v50_v15 = vmul.f32 %v660_v12, %v34_v13  ;;  %v48_v16 = vmul.f32 %v660_v12, %v30_v14  ;;  %v497_v13 = vld [vmem:[%s905_s1 + $0x54] sm:$0xf0]  ;;  %v503_v14 = vld [vmem:[%s905_s1 + $0x50] sm:$0xf] }
  0x77   :  { %v40_v21 = vpop.xlane.xlu2 %39 }
  0x78   :  { %v664_v17 = vsub.f32 %v26_v0, %v50_v15  ;;  %v666_v18 = vsub.f32 %v24_v1, %v48_v16  ;;  %v52_v24 = vmul.f32 %v660_v12, %v40_v21  ;;  %v508_v0 = vor.u32 %v568_v62, %v507_v61  ;;  %v509_v1 = vld [vmem:[%s905_s1 + $0x6c] sm:$0xf0]  ;;  %v566_v15 = vld [vmem:[%s905_s1 + $0x58] sm:$0xf0] }
  0x79   :  { %v504_v21 = vor.u32 %v566_v15, %v503_v14  ;;  %v460_v62 = vor.u32 %v556_v55, %v459_v52 }
  0x7a   :  { %v60_v19 = vmul.f32 %v664_v17, %v664_v17  ;;  %v58_v20 = vmul.f32 %v666_v18, %v666_v18  ;;  %v679_v29 = vsub.f32 %v28_v2, %v52_v24  ;;  %v515_v2 = vld [vmem:[%s905_s1 + $0x68] sm:$0xf]  ;;  %359 = vmatpush.bf16.msra.mxu0 %v508_v0  ;;  %593 = vmatpush.bf16.msra.mxu3 %v508_v0  ;;  %v483_v24 = vld [vmem:[%s905_s1 + $0x30] sm:$0xf] }
  0x7b   :  { %v464_v0 = vor.u32 %v555_v56, %v461_v57 }
  0x7c   :  { %67 = vadd.xlane.f32.xlu1 %v60_v19  ;;  %63 = vadd.xlane.f32.xlu2 %v58_v20  ;;  %v62_v32 = vmul.f32 %v679_v29, %v679_v29  ;;  %v500_v20 = vor.u32 %v564_v8, %v497_v13 }
  0x7d   :  { %v36_v22 = vpop.xlane.xlu1 %35  ;;  %v32_v23 = vpop.xlane.xlu0 %31 }
  0x7e   :  { %v51_v25 = vmul.f32 %v660_v12, %v36_v22  ;;  %v49_v26 = vmul.f32 %v660_v12, %v32_v23  ;;  %v71_v33 = vsel %vm37_vm0, %v62_v32, 0.0  ;;  %360 = vmatpush.bf16.msra.mxu0 %v496_v11  ;;  %594 = vmatpush.bf16.msra.mxu3 %v496_v11  ;;  %v491_v32 = vld [vmem:[%s905_s1 + $0x38] sm:$0xf] }
  0x80   :  { %v675_v27 = vsub.f32 %v27_v4, %v51_v25  ;;  %v677_v28 = vsub.f32 %v25_v5, %v49_v26  ;;  %v512_v4 = vor.u32 %v567_v63, %v509_v1  ;;  %v516_v5 = vor.u32 %v569_v3, %v515_v2  ;;  %v562_v25 = vld [vmem:[%s905_s1 + $0x38] sm:$0xf0]  ;;  %v561_v26 = vld [vmem:[%s905_s1 + $0x34] sm:$0xf] }
  0x81   :  { %v468_v1 = vor.u32 %v557_v60, %v467_v59 }
  0x82   :  { %v61_v30 = vmul.f32 %v675_v27, %v675_v27  ;;  %v59_v31 = vmul.f32 %v677_v28, %v677_v28  ;;  %382 = vmatpush.bf16.msra.mxu1 %v512_v4  ;;  %405 = vmatpush.bf16.msra.mxu2 %v516_v5 }
  0x84   :  { %69 = vadd.xlane.f32.xlu2 %v61_v30  ;;  %65 = vadd.xlane.f32.xlu0 %v59_v31  ;;  %v485_v30 = vld [vmem:[%s905_s1 + $0x3c] sm:$0xf0]  ;;  %v484_v31 = vor.u32 %v562_v25, %v483_v24 }
  0x85   :  { %v488_v34 = vor.u32 %v561_v26, %v485_v30  ;;  %v599_v30 = vld [vmem:[%s903_s3] ss:$0 sm:$0xff] }
  0x86   :  { %383 = vmatpush.bf16.msra.mxu1 %v500_v20  ;;  %406 = vmatpush.bf16.msra.mxu2 %v504_v21 }
  0x87   :  { %361 = vmatpush.bf16.msra.mxu0 %v484_v31  ;;  %595 = vmatpush.bf16.msra.mxu3 %v484_v31 }
  0x8a   :  { %384 = vmatpush.bf16.msra.mxu1 %v488_v34 }
  0x8b   :  { %362 = vmatpush.bf16.msra.mxu0 %v472_v41  ;;  %596 = vmatpush.bf16.msra.mxu3 %v472_v41 }
  0x8c   :  { %72 = vadd.xlane.f32.xlu0 %v71_v33  ;;  %v563_v33 = vld [vmem:[%s905_s1 + $0x40] sm:$0xf0] }
  0x8d   :  { %v492_v35 = vor.u32 %v563_v33, %v491_v32 }
  0x8e   :  { %385 = vmatpush.bf16.msra.mxu1 %v476_v47 }
  0x8f   :  { %407 = vmatpush.bf16.msra.mxu2 %v492_v35  ;;  %363 = vmatpush.bf16.msra.mxu0 %v460_v62 }
  0x90   :  { %597 = vmatpush.bf16.msra.mxu3 %v460_v62 }
  0x92   :  { %386 = vmatpush.bf16.msra.mxu1 %v464_v0 }
  0x93   :  { %408 = vmatpush.bf16.msra.mxu2 %v480_v48 }
  0x97   :  { %409 = vmatpush.bf16.msra.mxu2 %v468_v1 }
  0xef   :  { %v68_v9 = vpop.xlane.xlu1 %67  ;;  %v64_v10 = vpop.xlane.xlu2 %63 }
  0xf0   :  { %v76_v16 = vmul.f32 %v68_v9, %v660_v12  ;;  %v74_v19 = vmul.f32 %v64_v10, %v660_v12 }
  0xf2   :  { %v780_v22 = vadd.f32 1e-06, %v76_v16  ;;  %v782_v23 = vadd.f32 1e-06, %v74_v19 }
  0xf4   :  { %603 = vrsqrt.f32 %v780_v22  ;;  %vm110_vm2 = vweird.f32 %v780_v22  ;;  %vm90_vm6 = vweird.f32 %v782_v23 }
  0xf5   :  { %605 = vrsqrt.f32 %v782_v23 }
  0xf7   :  { %v70_v39 = vpop.xlane.xlu2 %69  ;;  %v66_v40 = vpop.xlane.xlu0 %65 }
  0xf8   :  { %v77_v45 = vmul.f32 %v70_v39, %v660_v12  ;;  %v75_v46 = vmul.f32 %v66_v40, %v660_v12 }
  0xfa   :  { %v604_v49 = vpop.eup %603  ;;  %v82_v50 = vadd.f32 1e-06, %v77_v45  ;;  %v824_v51 = vadd.f32 1e-06, %v75_v46 }
  0xfb   :  { %v606_v53 = vpop.eup %605  ;;  %v105_v54 = vmul.f32 %v604_v49, %v780_v22  ;;  %vm111_vm3 = vweird.f32 %v604_v49 }
  0xfc   :  { %v85_v58 = vmul.f32 %v606_v53, %v782_v23  ;;  %607 = vrsqrt.f32 %v82_v50  ;;  %vm849_vm4 = vmor %vm110_vm2, %vm111_vm3  ;;  %vm91_vm5 = vweird.f32 %v606_v53  ;;  %vm120_vm8 = vweird.f32 %v82_v50 }
  0xfd   :  { %v106_v61 = vmul.f32 %v604_v49, %v105_v54  ;;  %609 = vrsqrt.f32 %v824_v51  ;;  %vm92_vm7 = vmor %vm90_vm6, %vm91_vm5  ;;  %vm100_vm12 = vweird.f32 %v824_v51 }
  0xfe   :  { %v86_v63 = vmul.f32 %v606_v53, %v85_v58 }
  0xff   :  { %v107_v2 = vmul.f32 0.5, %v106_v61  ;;  %v73_v3 = vpop.xlane.xlu0 %72 }
 0x100   :  { %v87_v4 = vmul.f32 0.5, %v86_v63  ;;  %v78_v5 = vmul.f32 %v73_v3, %v660_v12 }
 0x101   :  { %v108_v6 = vsub.f32 1.5, %v107_v2 }
 0x102   :  { %v608_v7 = vpop.eup %607  ;;  %v88_v8 = vsub.f32 1.5, %v87_v4  ;;  %v83_v9 = vadd.f32 1e-06, %v78_v5 }
 0x103   :  { %v610_v10 = vpop.eup %609  ;;  %v109_v11 = vmul.f32 %v604_v49, %v108_v6  ;;  %v115_v13 = vmul.f32 %v608_v7, %v82_v50  ;;  %vm121_vm9 = vweird.f32 %v608_v7 }
 0x104   :  { %v89_v15 = vmul.f32 %v606_v53, %v88_v8  ;;  %v95_v12 = vmul.f32 %v610_v10, %v824_v51  ;;  %611 = vrsqrt.f32 %v83_v9  ;;  %vm122_vm10 = vmor %vm120_vm8, %vm121_vm9  ;;  %vm101_vm11 = vweird.f32 %v610_v10 }
 0x105   :  { %v116_v16 = vmul.f32 %v608_v7, %v115_v13  ;;  %v113_v20 = vsel %vm849_vm4, %v604_v49, %v109_v11  ;;  %vm102_vm13 = vmor %vm100_vm12, %vm101_vm11  ;;  %vm130_vm14 = vweird.f32 %v83_v9 }
 0x106   :  { %v96_v19 = vmul.f32 %v610_v10, %v95_v12  ;;  %v93_v22 = vsel %vm92_vm7, %v606_v53, %v89_v15  ;;  %v136_v31 = vmul.f32 %v113_v20, %v664_v17 }
 0x107   :  { %v117_v21 = vmul.f32 0.5, %v116_v16  ;;  %v134_v32 = vmul.f32 %v93_v22, %v666_v18 }
 0x108   :  { %v97_v24 = vmul.f32 0.5, %v96_v19  ;;  %v145_v39 = vmul.f32 %v599_v30, %v136_v31 }
 0x109   :  { %v118_v25 = vsub.f32 1.5, %v117_v21  ;;  %v143_v41 = vmul.f32 %v599_v30, %v134_v32 }
 0x10a   :  { %v612_v26 = vpop.eup %611  ;;  %v98_v23 = vsub.f32 1.5, %v97_v24  ;;  %v154_v46 = vadd.f32 %v600_v38, %v145_v39 }
 0x10b   :  { %v119_v33 = vmul.f32 %v608_v7, %v118_v25  ;;  %v125_v34 = vmul.f32 %v612_v26, %v83_v9  ;;  %vm131_vm15 = vweird.f32 %v612_v26  ;;  %v152_v48 = vadd.f32 %v600_v38, %v143_v41 }
 0x10c   :  { %v99_v35 = vmul.f32 %v610_v10, %v98_v23  ;;  %vm132_vm0 = vmor %vm130_vm14, %vm131_vm15 }
 0x10d   :  { %v123_v36 = vsel %vm122_vm10, %v608_v7, %v119_v33  ;;  %v126_v37 = vmul.f32 %v612_v26, %v125_v34 }
 0x10e   :  { %v137_v17 = vmul.f32 %v123_v36, %v675_v27  ;;  %v103_v40 = vsel %vm102_vm13, %v610_v10, %v99_v35 }
 0x10f   :  { %v135_v18 = vmul.f32 %v103_v40, %v677_v28  ;;  %v127_v42 = vmul.f32 0.5, %v126_v37 }
 0x110   :  { %v146_v43 = vmul.f32 %v599_v30, %v137_v17 }
 0x111   :  { %v144_v44 = vmul.f32 %v599_v30, %v135_v18  ;;  %v128_v45 = vsub.f32 1.5, %v127_v42 }
 0x112   :  { %v155_v47 = vadd.f32 %v600_v38, %v146_v43 }
 0x113   :  { %v153_v49 = vadd.f32 %v600_v38, %v144_v44  ;;  %v129_v50 = vmul.f32 %v612_v26, %v128_v45 }
 0x114   :  { %v587_v51 = vpack.c.bf16 %v155_v47, %v154_v46 }
 0x115   :  { %v582_v52 = vpack.c.bf16 %v153_v49, %v152_v48  ;;  %v133_v53 = vsel %vm132_vm0, %v612_v26, %v129_v50 }
 0x116   :  { %589 = vst [vmem:[#allocation2 + $0x8] sm:$0xff] %v587_v51   ;;  %v138_v27 = vmul.f32 %v133_v53, %v679_v29  ;;  %v204_v29 = vld [vmem:[%s906_s2] sm:$0x7] }
 0x117   :  { %583 = vst [vmem:[#allocation2] sm:$0xff] %v582_v52   ;;  %v206_v61 = vperm.slane %v204_v29, 0  ;;  %v207_v62 = vperm.slane %v204_v29, 1  ;;  %v208_v4 = vperm.slane %v204_v29, 2 }
 0x118   :  { %v147_v54 = vmul.f32 %v599_v30, %v138_v27 }
 0x11a   :  { %v156_v28 = vadd.f32 %v600_v38, %v147_v54 }
 0x11c   :  { %v161_v55 = vpack.c.bf16 %v156_v28, %v156_v28 }
 0x11d   :  { %v554_v56 = vld [vmem:[#allocation2 + $0x8] sm:$0xff] }
 0x11e   :  { %166 = vst [vmem:[#allocation2 + $0x10] sm:$0x1] %v161_v55  ;;  %v553_v57 = vld [vmem:[#allocation2] sm:$0xff]  ;;  %369 = vmatmul.bf16.vlgmr.msra.gmra.mxu3 %v554_v56 }
 0x11f   :  { %364 = vmatmul.bf16.vlgmr.msra.gmra.mxu0 %v553_v57  ;;  %387 = vmatmul.bf16.vlgmr.msra.gmra.mxu1 %v553_v57 }
 0x120   :  { %410 = vmatmul.bf16.vlgmr.msra.gmra.mxu2 %v553_v57 }
 0x125   :  { %v171_v58 = vld [vmem:[#allocation2 + $0x10] sm:$0x1] }
 0x126   :  { %v221_v59 = vunpack.c.l.b16 %v171_v58 }
 0x128   :  { %v224_v60 = vpack.c.b16 %v221_v59, %v221_v59 }
 0x12e   :  { %374 = vmatmul.bf16.gmra.mxu3 %v224_v60 }
 0x12f   :  { %392 = vmatmul.bf16.gmra.mxu1 %v554_v56 }
 0x130   :  { %415 = vmatmul.bf16.gmra.mxu2 %v554_v56 }
 0x13f   :  { %397 = vmatmul.bf16.gmra.mxu1 %v224_v60 }
 0x140   :  { %420 = vmatmul.bf16.gmra.mxu2 %v224_v60 }
 0x19c   :  { %v365_v63 = vpop.f32.mrf.mxu0  ;;  %v388_v0 = vpop.f32.mrf.mxu1 }
 0x19d   :  { %v366_v1 = vadd.f32 %v365_v63, %v206_v61  ;;  %v389_v2 = vadd.f32 %v388_v0, %v207_v62 }
 0x19f   :  { %v425_v3 = vpack.c.bf16 %v389_v2, %v366_v1 }
 0x1a1   :  { %435 = vst [vmem:[%s907_s5] sm:$0xff] %v425_v3  ;;  %v370_v5 = vpop.f32.mrf.mxu3 }
 0x1a2   :  { %v371_v20 = vadd.f32 %v370_v5, %v206_v61 }
 0x1a3   :  { %v411_v6 = vpop.f32.mrf.mxu2 }
 0x1a4   :  { %v412_v7 = vadd.f32 %v411_v6, %v208_v4  ;;  %v367_v8 = vpop.f32.mrf.mxu0  ;;  %v390_v9 = vpop.f32.mrf.mxu1 }
 0x1a5   :  { %v368_v10 = vadd.f32 %v367_v8, %v206_v61  ;;  %v391_v11 = vadd.f32 %v390_v9, %v207_v62 }
 0x1a6   :  { %v426_v13 = vpack.c.bf16 %v412_v7, %v412_v7 }
 0x1a7   :  { %v427_v14 = vpack.c.bf16 %v391_v11, %v368_v10 }
 0x1a8   :  { %436 = vst [vmem:[%s907_s5 + $0x8] sm:$0xf] %v426_v13 }
 0x1a9   :  { %437 = vst [vmem:[%s907_s5 + $0xc] sm:$0xff] %v427_v14  ;;  %v372_v15 = vpop.f32.mrf.mxu3 }
 0x1aa   :  { %v373_v23 = vadd.f32 %v372_v15, %v206_v61 }
 0x1ab   :  { %v413_v12 = vpop.f32.mrf.mxu2 }
 0x1ac   :  { %v414_v16 = vadd.f32 %v413_v12, %v208_v4  ;;  %v393_v19 = vpop.f32.mrf.mxu1 }
 0x1ad   :  { %v394_v21 = vadd.f32 %v393_v19, %v207_v62 }
 0x1ae   :  { %v428_v22 = vpack.c.bf16 %v414_v16, %v414_v16 }
 0x1af   :  { %v429_v24 = vpack.c.bf16 %v394_v21, %v371_v20 }
 0x1b0   :  { %438 = vst [vmem:[%s907_s5 + $0x14] sm:$0xf] %v428_v22 }
 0x1b1   :  { %439 = vst [vmem:[%s907_s5 + $0x18] sm:$0xff] %v429_v24  ;;  %v375_v25 = vpop.f32.mrf.mxu3 }
 0x1b2   :  { %v376_v39 = vadd.f32 %v375_v25, %v206_v61 }
 0x1b3   :  { %v416_v26 = vpop.f32.mrf.mxu2 }
 0x1b4   :  { %v417_v30 = vadd.f32 %v416_v26, %v208_v4  ;;  %v395_v31 = vpop.f32.mrf.mxu1 }
 0x1b5   :  { %v396_v32 = vadd.f32 %v395_v31, %v207_v62 }
 0x1b6   :  { %v430_v33 = vpack.c.bf16 %v417_v30, %v417_v30 }
 0x1b7   :  { %v431_v34 = vpack.c.bf16 %v396_v32, %v373_v23 }
 0x1b8   :  { %440 = vst [vmem:[%s907_s5 + $0x20] sm:$0xf] %v430_v33 }
 0x1b9   :  { %441 = vst [vmem:[%s907_s5 + $0x24] sm:$0xff] %v431_v34  ;;  %v377_v35 = vpop.f32.mrf.mxu3 }
 0x1bb   :  { %v418_v36 = vpop.f32.mrf.mxu2 }
 0x1bc   :  { %v419_v37 = vadd.f32 %v418_v36, %v208_v4  ;;  %v398_v38 = vpop.f32.mrf.mxu1 }
 0x1bd   :  { %v399_v17 = vadd.f32 %v398_v38, %v207_v62 }
 0x1be   :  { %v432_v40 = vpack.c.bf16 %v419_v37, %v419_v37 }
 0x1bf   :  { %v433_v41 = vpack.c.bf16 %v399_v17, %v376_v39 }
 0x1c0   :  { %442 = vst [vmem:[%s907_s5 + $0x2c] sm:$0xf] %v432_v40 }
 0x1c1   :  { %443 = vst [vmem:[%s907_s5 + $0x30] sm:$0x11] %v433_v41 }
 0x1c3   :  { %v421_v18 = vpop.f32.mrf.mxu2 }
 0x1c4   :  { %v422_v42 = vadd.f32 %v421_v18, %v208_v4  ;;  %v400_v43 = vpop.f32.mrf.mxu1 }
 0x1c6   :  { %v434_v44 = vpack.c.bf16 %v422_v42, %v422_v42 }
 0x1c8   :  { %444 = vst [vmem:[%s907_s5 + $0x38] sm:$0x1] %v434_v44 }
 0x1cb   :  { %v423_v45 = vpop.f32.mrf.mxu2 }

// kernel: visual_backbone_forward.16
= control target key start
LH: loop header
LB: loop body
LE: loop exit
PB: predicated region body
PF: predicated region fallthrough
CT: control target
= control target key end

     0   :  { %s806_s12 = smov 0   ;;  %s808_s13 = smov 0   ;;  %s894_s0 = inlined_call_operand.vmem [shape: bf16[4,17,64], index: 0, kind: input, shape index: {}]   ;;  %s895_s1 = inlined_call_operand.vmem [shape: bf16[4,17,64], index: 1, kind: input, shape index: {}]   ;;  %s896_s2 = inlined_call_operand.vmem [shape: bf16[4,17,64], index: 2, kind: input, shape index: {}]   ;;  %s897_s3 = inlined_call_operand.vmem [shape: bf16[4,17,64], index: 3, kind: output, shape index: {}]  }
   0x1   :  { %s810_s14 = smov 0  }
   0x2 LB: > { %s32_s15 = sadd.s32 1, %s777_s13  ;;  %p680_p0 = scmp.ge.s32.totalorder %s781_s14, 1  ;;  %s781_s14 = sphi %s810_s14, %s13_s14   ;;  %s777_s13 = sphi %s808_s13, %s899_s13   ;;  %s773_s12 = sphi %s806_s12, %s898_s12  }
   0x3   : > { %p34_p1 = scmp.ge.s32.totalorder %s32_s15, 4  ;;  %p199_p2 = scmp.lt.s32.totalorder %s781_s14, 5 }
   0x5   : > { %s901_s15 = smov (%p34_p1, %s32_s15), 0  ;;  %p200_p3 = pnand %p680_p0, %p199_p2 }
   0x6   : > { %p250_p4 = scmp.lt.s32.totalorder (!%p200_p3), %s773_s12, 3 }
   0x7   : > { %203 = sbr.rel (%p200_p3) target bundleno = 663 (0x297), region = 32 }
   0xc   : > { %vm302_vm0 = vcmask 523264   ;;  %v783_v0 = vmov 0.0   ;;  %s903_s12 = smov (!%p250_p4, %s773_s12), 3  ;;  %vm294_vm1 = vcmask 7168   ;;  %v784_v11 = vmov -inf  }
   0xd   : > { %303 = vst.msk [vmem:[#allocation4] sm:$0xff] %vm302_vm0, %v783_v0  ;;  %s828_s16 = smul.u32 12, %s903_s12  ;;  %vm366_vm2 = vcmask 138240   ;;  %vm373_vm3 = vcmask 131072   ;;  %v785_v19 = vmov 0   ;;  %vm297_vm4 = vcmask 0  }
   0xe   : > { %304 = vst.msk [vmem:[#allocation4 + $0x8] sm:$0xff] %vm302_vm0, %v783_v0  ;;  %738 = vset.pattern.permute.xlu1 %v785_v19  ;;  %739 = vset.pattern.permute.xlu2 %v785_v19  ;;  %vm474_vm5 = vcmask 1040384   ;;  %vm305_vm6 = vcmask 516096   ;;  %vm541_vm7 = vcmask 519168   ;;  %vm545_vm8 = vsmask.f32 256 }
   0xf   : > { %s267_s19 = scalar_lea.vmem %s895_s1, %s828_s16  ;;  %s257_s22 = scalar_lea.vmem %s894_s0, %s828_s16  ;;  %295 = vst.msk [vmem:[#allocation2] sm:$0xff] %vm294_vm1, %v784_v11  ;;  %740 = vset.pattern.permute.xlu0 %v785_v19  ;;  %v476_v39 = vsel %vm474_vm5, 65535, %v785_v19  ;;  %vm546_vm9 = vmand %vm305_vm6, %vm545_vm8 }
  0x10   : > { %v312_v1 = vld [vmem:[%s267_s19 + $0x8] sm:$0x1]  ;;  %v704_v5 = vld [vmem:[%s267_s19] sm:$0xff]  ;;  %296 = vst.msk [vmem:[#allocation2 + $0x8] sm:$0xff] %vm294_vm1, %v784_v11  ;;  %s277_s25 = scalar_lea.vmem %s896_s2, %s828_s16  ;;  %s287_s28 = scalar_lea.vmem %s897_s3, %s828_s16 }
  0x11   : > { %v329_v2 = vunpack.c.l.b16 %v312_v1  ;;  %v309_v6 = vld [vmem:[%s257_s22 + $0x8] sm:$0x1]  ;;  %v340_v7 = vsel %vm302_vm0, %v704_v5, 0  ;;  %v703_v9 = vld [vmem:[%s257_s22] sm:$0xff]  ;;  %299 = vst.msk [vmem:[#allocation3] sm:$0xff] %vm294_vm1, %v783_v0 }
  0x12   : > { %v321_v8 = vunpack.c.l.b16 %v309_v6  ;;  %300 = vst.msk [vmem:[#allocation3 + $0x8] sm:$0xff] %vm294_vm1, %v783_v0  ;;  %v315_v36 = vld [vmem:[%s277_s25 + $0x8] sm:$0x1]  ;;  %v705_v41 = vld [vmem:[%s277_s25] sm:$0xff] }
  0x13   : > { %v331_v3 = vpack.c.b16 %v329_v2, %v329_v2  ;;  %298 = vst.msk [vmem:[#allocation2 + $0x10] sm:$0x1] %vm297_vm4, %v784_v11  ;;  %v464_v37 = vunpack.c.l.b16 %v315_v36 }
  0x14   : > { %v323_v10 = vpack.c.b16 %v321_v8, %v321_v8  ;;  %301 = vst.msk [vmem:[#allocation3 + $0x10] sm:$0x1] %vm297_vm4, %v783_v0  ;;  %v436_v11 = vld [vmem:[#allocation4] sm:$0xff] }
  0x15   : > { %v343_v4 = vsel %vm302_vm0, %v331_v3, 0  ;;  %v466_v38 = vpack.c.b16 %v464_v37, %v464_v37  ;;  %306 = vst.msk [vmem:[#allocation4 + $0x10] sm:$0x1] %vm305_vm6, %v783_v0  ;;  %v437_v19 = vld [vmem:[#allocation4 + $0x8] sm:$0xff] }
  0x16   : > { %351 = vmatpush.bf16.xpose.msra.mxu0 %v343_v4  ;;  %706 = vmatpush.bf16.xpose.msra.mxu2 %v343_v4  ;;  %v363_v20 = vld [vmem:[#allocation2] sm:$0xff] }
  0x17   : > { %v364_v26 = vld [vmem:[#allocation2 + $0x8] sm:$0xff]  ;;  %v478_v40 = vand.u32 %v476_v39, %v466_v38 }
  0x18   : > { %v413_v3 = vld [vmem:[#allocation3] sm:$0xff]  ;;  %v547_v38 = vld [vmem:[%s287_s28 + $0x8] sm:$0x1] }
  0x19   : > { %708 = vmatpush.bf16.msra.mxu3 %v478_v40  ;;  %486 = vmatpush.bf16.msra.mxu1 %v478_v40  ;;  %v414_v2 = vld [vmem:[#allocation3 + $0x8] sm:$0xff] }
  0x1a   : > { %v365_v24 = vld [vmem:[#allocation2 + $0x10] sm:$0x1] }
  0x1b   : > { %v415_v61 = vld [vmem:[#allocation3 + $0x10] sm:$0x1] }
  0x1d   : > { %709 = vmatpush.bf16.msra.mxu3 %v705_v41  ;;  %487 = vmatpush.bf16.msra.mxu1 %v705_v41 }
  0x1e   : > { %352 = vmatpush.bf16.xpose.msra.mxu0 %v340_v7  ;;  %707 = vmatpush.bf16.xpose.msra.mxu2 %v340_v7 }
  0x25   : > { %693 = vmatmul.msk.bf16.vlgmr.msra.gmra.mxu0 %vm302_vm0, %v703_v9  ;;  %694 = vmatmul.msk.bf16.vlgmr.msra.gmra.mxu2 %vm302_vm0, %v323_v10 }
  0xa2   : > { %v848_v12 = vpop.f32.mrf.mxu0 }
  0xa3   : > { %v367_v13 = vsel %vm366_vm2, %v848_v12, -inf }
  0xa4   : > { %368 = vmax.xlane.f32.xlu0 %v367_v13 }
  0xa8   : > { %v359_v14 = vpop.f32.mrf.mxu2 }
  0xa9   : > { %v374_v15 = vsel %vm373_vm3, %v359_v14, -inf }
  0xaa   : > { %v356_v16 = vpop.f32.mrf.mxu0  ;;  %375 = vmax.xlane.f32.xlu1 %v374_v15 }
  0xab   : > { %v370_v17 = vsel %vm366_vm2, %v356_v16, -inf }
  0xac   : > { %371 = vmax.xlane.f32.xlu0 %v370_v17 }
  0xb0   : > { %v361_v18 = vpop.f32.mrf.mxu2 }
 0x117   : > { %v369_v21 = vpop.xlane.xlu0 %368 }
 0x118   : > { %v377_v22 = vmax.f32 %v363_v20, %v369_v21 }
 0x11a   : > { %v380_v23 = vsub.f32 %v363_v20, %v377_v22  ;;  %505 = vst.msk [vmem:[#allocation2] sm:$0xff] %vm294_vm1, %v377_v22  ;;  %391 = vperm.xlu1 %738, %v377_v22  }
 0x11c   : > { %v383_v25 = vmul.f32 1.442695, %v380_v23  ;;  %v438_v23 = vld [vmem:[#allocation4 + $0x10] sm:$0x1] }
 0x11d   : > { %v376_v27 = vpop.xlane.xlu1 %375 }
 0x11e   : > { %741 = vpow2.f32 %v383_v25  ;;  %v379_v28 = vmax.f32 %v365_v24, %v376_v27 }
 0x11f   : > { %v372_v29 = vpop.xlane.xlu0 %371 }
 0x120   : > { %v378_v30 = vmax.f32 %v364_v26, %v372_v29  ;;  %v382_v31 = vsub.f32 %v365_v24, %v379_v28  ;;  %507 = vst.msk [vmem:[#allocation2 + $0x10] sm:$0x1] %vm297_vm4, %v379_v28 }
 0x122   : > { %v381_v32 = vsub.f32 %v364_v26, %v378_v30  ;;  %506 = vst.msk [vmem:[#allocation2 + $0x8] sm:$0xff] %vm294_vm1, %v378_v30  ;;  %396 = vperm.xlu2 %739, %v378_v30   ;;  %v387_v59 = vmul.f32 1.442695, %v382_v31 }
 0x124   : > { %v742_v33 = vpop.eup %741  ;;  %v385_v34 = vmul.f32 1.442695, %v381_v32 }
 0x125   : > { %441 = vperm.xlu1 %738, %v742_v33   ;;  %v416_v5 = vmul.f32 %v742_v33, %v413_v3 }
 0x126   : > { %743 = vpow2.f32 %v385_v34 }
 0x12a   : > { %401 = vperm.xlu2 %739, %v379_v28  }
 0x12c   : > { %v744_v35 = vpop.eup %743 }
 0x12d   : > { %446 = vperm.xlu1 %738, %v744_v35   ;;  %v417_v4 = vmul.f32 %v744_v35, %v414_v2 }
 0x17c   : > { %v397_v42 = vpop.permute.xlu2 %396 }
 0x17d   : > { %v405_v45 = vsub.f32 %v356_v16, %v397_v42 }
 0x17f   : > { %v409_v47 = vmul.f32 1.442695, %v405_v45 }
 0x184   : > { %v402_v43 = vpop.permute.xlu2 %401 }
 0x185   : > { %v406_v44 = vsub.f32 %v359_v14, %v402_v43 }
 0x187   : > { %v411_v46 = vmul.f32 1.442695, %v406_v44 }
 0x189   : > { %745 = vpow2.f32 %v411_v46 }
 0x18a   : > { %747 = vpow2.f32 %v409_v47 }
 0x18c   : > { %v392_v48 = vpop.permute.xlu1 %391 }
 0x18d   : > { %v404_v49 = vsub.f32 %v848_v12, %v392_v48 }
 0x18f   : > { %v746_v50 = vpop.eup %745  ;;  %v407_v51 = vmul.f32 1.442695, %v404_v49 }
 0x190   : > { %v425_v52 = vsel %vm373_vm3, %v746_v50, 0.0  ;;  %v458_v53 = vpack.c.bf16 %v746_v50, %v746_v50  ;;  %v748_v54 = vpop.eup %747 }
 0x191   : > { %749 = vpow2.f32 %v407_v51  ;;  %426 = vadd.xlane.f32.xlu0 %v425_v52  ;;  %v422_v57 = vsel %vm366_vm2, %v748_v54, 0.0 }
 0x192   : > { %700 = vmatmul.msk.bf16.vlgmr.msra.gmra.mxu3 %vm366_vm2, %v458_v53  ;;  %751 = vpow2.f32 %v387_v59 }
 0x197   : > { %v750_v55 = vpop.eup %749  ;;  %v442_v0 = vpop.permute.xlu1 %441 }
 0x198   : > { %v419_v56 = vsel %vm366_vm2, %v750_v55, 0.0  ;;  %v457_v58 = vpack.c.bf16 %v748_v54, %v750_v55  ;;  %v752_v60 = vpop.eup %751  ;;  %v454_v14 = vmul.f32 %v442_v0, %v436_v11 }
 0x199   : > { %420 = vadd.xlane.f32.xlu2 %v419_v56  ;;  %423 = vadd.xlane.f32.xlu0 %v422_v57  ;;  %v418_v62 = vmul.f32 %v752_v60, %v415_v61 }
 0x19a   : > { %699 = vmatmul.msk.bf16.vlgmr.msra.gmra.mxu1 %vm366_vm2, %v457_v58 }
 0x19f   : > { %v447_v20 = vpop.permute.xlu1 %446 }
 0x1a0   : > { %v455_v25 = vmul.f32 %v447_v20, %v437_v19 }
 0x1ad   : > { %451 = vperm.xlu0 %740, %v752_v60  }
 0x204   : > { %v427_v63 = vpop.xlane.xlu0 %426 }
 0x205   : > { %v430_v1 = vadd.f32 %v427_v63, %v418_v62 }
 0x207   : > { %435 = vst.msk [vmem:[#allocation3 + $0x10] sm:$0x1] %vm297_vm4, %v430_v1 }
 0x20c   : > { %v424_v6 = vpop.xlane.xlu0 %423  ;;  %v421_v7 = vpop.xlane.xlu2 %420 }
 0x20d   : > { %v429_v8 = vadd.f32 %v424_v6, %v417_v4  ;;  %v428_v9 = vadd.f32 %v421_v7, %v416_v5 }
 0x20e   : > { %v513_v10 = vld [vmem:[#allocation3 + $0x10] sm:$0x1] }
 0x20f   : > { %433 = vst.msk [vmem:[#allocation3 + $0x8] sm:$0xff] %vm294_vm1, %v429_v8  ;;  %753 = vrcp.f32 %v513_v10 }
 0x210   : > { %432 = vst.msk [vmem:[#allocation3] sm:$0xff] %vm294_vm1, %v428_v9 }
 0x215   : > { %v754_v12 = vpop.eup %753  ;;  %v494_v13 = vpop.f32.mrf.mxu3 }
 0x216   : > { %532 = vperm.xlu1 %738, %v754_v12   ;;  %v512_v15 = vld [vmem:[#allocation3 + $0x8] sm:$0xff] }
 0x217   : > { %v489_v16 = vpop.f32.mrf.mxu1  ;;  %v511_v17 = vld [vmem:[#allocation3] sm:$0xff]  ;;  %755 = vrcp.f32 %v512_v15 }
 0x218   : > { %v498_v18 = vadd.f32 %v489_v16, %v454_v14  ;;  %757 = vrcp.f32 %v511_v17 }
 0x21a   : > { %501 = vst.msk [vmem:[#allocation4] sm:$0xff] %vm302_vm0, %v498_v18 }
 0x21d   : > { %v756_v21 = vpop.eup %755  ;;  %v496_v22 = vpop.f32.mrf.mxu3 }
 0x21e   : > { %v758_v24 = vpop.eup %757  ;;  %527 = vperm.xlu2 %739, %v756_v21  }
 0x21f   : > { %522 = vperm.xlu1 %738, %v758_v24   ;;  %v491_v26 = vpop.f32.mrf.mxu1  ;;  %v452_v27 = vpop.permute.xlu0 %451 }
 0x220   : > { %v499_v28 = vadd.f32 %v491_v26, %v455_v25  ;;  %v456_v29 = vmul.f32 %v452_v27, %v438_v23 }
 0x221   : > { %v517_v41 = vld [vmem:[#allocation4] sm:$0xff] }
 0x222   : > { %502 = vst.msk [vmem:[#allocation4 + $0x8] sm:$0xff] %vm302_vm0, %v499_v28  ;;  %v500_v30 = vadd.f32 %v494_v13, %v456_v29 }
 0x224   : > { %504 = vst.msk [vmem:[#allocation4 + $0x10] sm:$0x1] %vm305_vm6, %v500_v30 }
 0x229   : > { %v518_v31 = vld [vmem:[#allocation4 + $0x8] sm:$0xff] }
 0x22b   : > { %v519_v35 = vld [vmem:[#allocation4 + $0x10] sm:$0x1] }
 0x278   : > { %v528_v32 = vpop.permute.xlu2 %527 }
 0x279   : > { %v536_v33 = vmul.f32 %v528_v32, %v518_v31 }
 0x27b   : > { %v539_v34 = vpack.c.bf16 %v536_v33, %v536_v33 }
 0x27d   : > { %543 = vst.msk [vmem:[%s287_s28 + $0x4] sm:$0xf] %vm541_vm7, %v539_v34 }
 0x288   : > { %v533_v36 = vpop.permute.xlu1 %532 }
 0x289   : > { %v537_v37 = vmul.f32 %v533_v36, %v519_v35 }
 0x28b   : > { %v540_v39 = vpack.c.bf16 %v537_v37, %v537_v37 }
 0x28d   : > { %v548_v40 = vsel %vm546_vm9, %v540_v39, %v547_v38 }
 0x28e   : > { %549 = vst [vmem:[%s287_s28 + $0x8] sm:$0x1] %v548_v40 }
 0x291   : > { %v523_v42 = vpop.permute.xlu1 %522 }
 0x292   : > { %v535_v43 = vmul.f32 %v523_v42, %v517_v41 }
 0x294   : > { %v538_v44 = vpack.c.bf16 %v535_v43, %v535_v43 }
 0x296   : > { %542 = vst.msk [vmem:[%s287_s28] sm:$0xf] %vm541_vm7, %v538_v44 }
 0x297 PF: > { %s13_s14 = sadd.s32 1, %s781_s14   ;;  %s898_s12 = smov %s777_s13 }
 0x298   : > { %p10_p5 = scmp.ge.s32.totalorder %s13_s14, 6   ;;  %s899_s13 = smov %s901_s15 }
 0x29a   :  { %12 = sbr.rel (!%p10_p5) target bundleno = 2 (0x2), region = 76 }

// kernel: visual_backbone_forward.17
= control target key start
LH: loop header
LB: loop body
LE: loop exit
PB: predicated region body
PF: predicated region fallthrough
CT: control target
= control target key end

     0   :  { %s306_s1 = inlined_call_operand.vmem [shape: bf16[128,128], index: 1, kind: input, shape index: {}]   ;;  %s307_s2 = inlined_call_operand.vmem [shape: f32[1,128], index: 2, kind: input, shape index: {}]   ;;  %s308_s0 = inlined_call_operand.vmem [shape: bf16[34,128], index: 0, kind: input, shape index: {}]   ;;  %s309_s3 = inlined_call_operand.vmem [shape: f32[34,128], index: 3, kind: input, shape index: {}]   ;;  %s310_s4 = inlined_call_operand.vmem [shape: f32[34,128], index: 4, kind: output, shape index: {}]  }
   0x1   :  { %v197_v0 = vld [vmem:[%s306_s1 + $0x38] sm:$0xff]  ;;  %v196_v1 = vld [vmem:[%s306_s1 + $0x30] sm:$0xff]  ;;  %v195_v2 = vld [vmem:[%s306_s1 + $0x28] sm:$0xff] }
   0x2   :  { %106 = vmatpush.bf16.msra.mxu0 %v197_v0  ;;  %198 = vmatpush.bf16.msra.mxu1 %v197_v0  ;;  %v194_v3 = vld [vmem:[%s306_s1 + $0x20] sm:$0xff]  ;;  %v193_v4 = vld [vmem:[%s306_s1 + $0x18] sm:$0xff]  ;;  %v192_v5 = vld [vmem:[%s306_s1 + $0x10] sm:$0xff] }
   0x3   :  { %199 = vmatpush.bf16.msra.mxu2 %v197_v0  ;;  %v191_v6 = vld [vmem:[%s306_s1 + $0x8] sm:$0xff]  ;;  %v21_v7 = vld [vmem:[%s308_s0 + $0x10] sm:$0x1]  ;;  %v190_v8 = vld [vmem:[%s306_s1] sm:$0xff] }
   0x4   :  { %v51_v9 = vunpack.c.l.b16 %v21_v7  ;;  %v188_v10 = vld [vmem:[%s308_s0] sm:$0xff]  ;;  %v189_v11 = vld [vmem:[%s308_s0 + $0x8] sm:$0xff]  ;;  %v131_v17 = vld [vmem:[%s309_s3 + $0x10] sm:$0xff] }
   0x5   :  { %v214_v13 = vld [vmem:[%s307_s2] ss:$0 sm:$0xff]  ;;  %v130_v26 = vld [vmem:[%s309_s3 + $0x8] sm:$0xff]  ;;  %v132_v28 = vld [vmem:[%s309_s3 + $0x18] sm:$0xff] }
   0x6   :  { %107 = vmatpush.bf16.msra.mxu0 %v196_v1  ;;  %200 = vmatpush.bf16.msra.mxu1 %v196_v1  ;;  %v54_v12 = vpack.c.b16 %v51_v9, %v51_v9  ;;  %v129_v15 = vld [vmem:[%s309_s3] sm:$0xff] }
   0x7   :  { %201 = vmatpush.bf16.msra.mxu2 %v196_v1  ;;  %v133_v23 = vld [vmem:[%s309_s3 + $0x20] sm:$0x3] }
   0xa   :  { %108 = vmatpush.bf16.msra.mxu0 %v195_v2  ;;  %202 = vmatpush.bf16.msra.mxu1 %v195_v2 }
   0xb   :  { %203 = vmatpush.bf16.msra.mxu2 %v195_v2 }
   0xe   :  { %109 = vmatpush.bf16.msra.mxu0 %v194_v3  ;;  %204 = vmatpush.bf16.msra.mxu1 %v194_v3 }
   0xf   :  { %205 = vmatpush.bf16.msra.mxu2 %v194_v3 }
  0x12   :  { %110 = vmatpush.bf16.msra.mxu0 %v193_v4  ;;  %206 = vmatpush.bf16.msra.mxu1 %v193_v4 }
  0x13   :  { %207 = vmatpush.bf16.msra.mxu2 %v193_v4 }
  0x16   :  { %111 = vmatpush.bf16.msra.mxu0 %v192_v5  ;;  %208 = vmatpush.bf16.msra.mxu1 %v192_v5 }
  0x17   :  { %209 = vmatpush.bf16.msra.mxu2 %v192_v5 }
  0x1a   :  { %112 = vmatpush.bf16.msra.mxu0 %v191_v6  ;;  %210 = vmatpush.bf16.msra.mxu1 %v191_v6 }
  0x1b   :  { %211 = vmatpush.bf16.msra.mxu2 %v191_v6 }
  0x1e   :  { %113 = vmatpush.bf16.msra.mxu0 %v190_v8  ;;  %212 = vmatpush.bf16.msra.mxu1 %v190_v8 }
  0x1f   :  { %213 = vmatpush.bf16.msra.mxu2 %v190_v8 }
  0x21   :  { %114 = vmatmul.bf16.vlgmr.msra.gmra.mxu0 %v188_v10  ;;  %119 = vmatmul.bf16.vlgmr.msra.gmra.mxu1 %v189_v11 }
  0x22   :  { %124 = vmatmul.bf16.vlgmr.msra.gmra.mxu2 %v54_v12 }
  0x9e   :  { %v115_v14 = vpop.f32.mrf.mxu0  ;;  %v120_v16 = vpop.f32.mrf.mxu1 }
  0x9f   :  { %v116_v18 = vadd.f32 %v214_v13, %v115_v14  ;;  %v121_v19 = vadd.f32 %v214_v13, %v120_v16 }
  0xa1   :  { %v134_v20 = vadd.f32 %v129_v15, %v116_v18  ;;  %v136_v21 = vadd.f32 %v131_v17, %v121_v19 }
  0xa3   :  { %139 = vst [vmem:[%s310_s4] sm:$0xff] %v134_v20 }
  0xa4   :  { %141 = vst [vmem:[%s310_s4 + $0x10] sm:$0xff] %v136_v21 }
  0xa5   :  { %v125_v22 = vpop.f32.mrf.mxu2 }
  0xa6   :  { %v126_v24 = vadd.f32 %v214_v13, %v125_v22  ;;  %v117_v25 = vpop.f32.mrf.mxu0  ;;  %v122_v27 = vpop.f32.mrf.mxu1 }
  0xa7   :  { %v118_v29 = vadd.f32 %v214_v13, %v117_v25  ;;  %v123_v30 = vadd.f32 %v214_v13, %v122_v27 }
  0xa8   :  { %v138_v31 = vadd.f32 %v133_v23, %v126_v24 }
  0xa9   :  { %v135_v32 = vadd.f32 %v130_v26, %v118_v29  ;;  %v137_v33 = vadd.f32 %v132_v28, %v123_v30 }
  0xaa   :  { %143 = vst [vmem:[%s310_s4 + $0x20] sm:$0x3] %v138_v31 }
  0xab   :  { %140 = vst [vmem:[%s310_s4 + $0x8] sm:$0xff] %v135_v32 }
  0xac   :  { %142 = vst [vmem:[%s310_s4 + $0x18] sm:$0xff] %v137_v33 }
  0xad   :  { %v127_v34 = vpop.f32.mrf.mxu2 }

// kernel: visual_backbone_forward.18
= control target key start
LH: loop header
LB: loop body
LE: loop exit
PB: predicated region body
PF: predicated region fallthrough
CT: control target
= control target key end

     0   :  { %vm37_vm0 = vcmask 1041408   ;;  %v592_v6 = vmov 128.0   ;;  %s887_s0 = inlined_call_operand.vmem [shape: f32[34,128], index: 0, kind: input, shape index: {}]   ;;  %s888_s3 = inlined_call_operand.vmem [shape: f32[1,128], index: 3, kind: input, shape index: {}]   ;;  %s889_s4 = inlined_call_operand.vmem [shape: f32[1,128], index: 4, kind: input, shape index: {}]   ;;  %s890_s1 = inlined_call_operand.vmem [shape: bf16[128,256], index: 1, kind: input, shape index: {}]   ;;  %s891_s2 = inlined_call_operand.vmem [shape: f32[1,256], index: 2, kind: input, shape index: {}]   ;;  %s892_s5 = inlined_call_operand.vmem [shape: bf16[34,256], index: 5, kind: output, shape index: {}]  }
   0x1   :  { %v26_v0 = vld [vmem:[%s887_s0 + $0x10] sm:$0xff]  ;;  %v28_v1 = vld [vmem:[%s887_s0 + $0x20] sm:$0x3]  ;;  %v25_v3 = vld [vmem:[%s887_s0 + $0x8] sm:$0xff]  ;;  %560 = vrcp.f32 %v592_v6 }
   0x2   :  { %33 = vadd.xlane.f32.xlu0 %v26_v0  ;;  %v38_v2 = vsel %vm37_vm0, %v28_v1, 0.0  ;;  %31 = vadd.xlane.f32.xlu2 %v25_v3  ;;  %v27_v4 = vld [vmem:[%s887_s0 + $0x18] sm:$0xff]  ;;  %v24_v5 = vld [vmem:[%s887_s0] sm:$0xff]  ;;  %v506_v34 = vld [vmem:[%s890_s1 + $0x70] sm:$0xf] }
   0x3   :  { %39 = vadd.xlane.f32.xlu1 %v38_v2  ;;  %v529_v35 = vld [vmem:[%s890_s1 + $0x74] sm:$0xf0]  ;;  %v528_v36 = vld [vmem:[%s890_s1 + $0x74] sm:$0xf]  ;;  %v508_v38 = vld [vmem:[%s890_s1 + $0x78] sm:$0xf0] }
   0x4   :  { %v507_v37 = vor.u32 %v529_v35, %v506_v34  ;;  %v511_v39 = vor.u32 %v528_v36, %v508_v38  ;;  %v498_v40 = vld [vmem:[%s890_s1 + $0x60] sm:$0xf]  ;;  %v527_v41 = vld [vmem:[%s890_s1 + $0x64] sm:$0xf0]  ;;  %v526_v42 = vld [vmem:[%s890_s1 + $0x64] sm:$0xf] }
   0x5   :  { %v499_v43 = vor.u32 %v527_v41, %v498_v40  ;;  %v500_v44 = vld [vmem:[%s890_s1 + $0x68] sm:$0xf0]  ;;  %v490_v46 = vld [vmem:[%s890_s1 + $0x50] sm:$0xf]  ;;  %v525_v47 = vld [vmem:[%s890_s1 + $0x54] sm:$0xf0] }
   0x6   :  { %541 = vmatpush.bf16.msra.mxu2 %v507_v37  ;;  %290 = vmatpush.bf16.msra.mxu0 %v507_v37  ;;  %v503_v45 = vor.u32 %v526_v42, %v500_v44  ;;  %v524_v48 = vld [vmem:[%s890_s1 + $0x54] sm:$0xf]  ;;  %v491_v49 = vor.u32 %v525_v47, %v490_v46  ;;  %v492_v50 = vld [vmem:[%s890_s1 + $0x58] sm:$0xf0]  ;;  %v482_v52 = vld [vmem:[%s890_s1 + $0x40] sm:$0xf] }
   0x7   :  { %v561_v7 = vpop.eup %560  ;;  %549 = vmatpush.bf16.msra.mxu3 %v511_v39  ;;  %313 = vmatpush.bf16.msra.mxu1 %v511_v39  ;;  %v495_v51 = vor.u32 %v524_v48, %v492_v50  ;;  %v523_v53 = vld [vmem:[%s890_s1 + $0x44] sm:$0xf0]  ;;  %v522_v54 = vld [vmem:[%s890_s1 + $0x44] sm:$0xf]  ;;  %v484_v56 = vld [vmem:[%s890_s1 + $0x48] sm:$0xf0] }
   0x8   :  { %v42_v8 = vmul.f32 128.0, %v561_v7  ;;  %vm46_vm1 = vweird.f32 %v561_v7  ;;  %v483_v55 = vor.u32 %v523_v53, %v482_v52  ;;  %v487_v57 = vor.u32 %v522_v54, %v484_v56  ;;  %v474_v58 = vld [vmem:[%s890_s1 + $0x30] sm:$0xf]  ;;  %v521_v59 = vld [vmem:[%s890_s1 + $0x34] sm:$0xf0] }
   0x9   :  { %v520_v60 = vld [vmem:[%s890_s1 + $0x34] sm:$0xf]  ;;  %v475_v62 = vor.u32 %v521_v59, %v474_v58  ;;  %v476_v63 = vld [vmem:[%s890_s1 + $0x38] sm:$0xf0]  ;;  %v518_v6 = vld [vmem:[%s890_s1 + $0x24] sm:$0xf] }
   0xa   :  { %35 = vadd.xlane.f32.xlu0 %v27_v4  ;;  %v43_v9 = vsub.f32 1.0, %v42_v8  ;;  %542 = vmatpush.bf16.msra.mxu2 %v499_v43  ;;  %v514_v34 = vld [vmem:[%s890_s1 + $0x4] sm:$0xf]  ;;  %v452_v36 = vld [vmem:[%s890_s1 + $0x8] sm:$0xf0] }
   0xb   :  { %29 = vadd.xlane.f32.xlu1 %v24_v5  ;;  %291 = vmatpush.bf16.msra.mxu0 %v499_v43  ;;  %v455_v38 = vor.u32 %v514_v34, %v452_v36  ;;  %v558_v59 = vld [vmem:[%s888_s3] ss:$0 sm:$0xff] }
   0xc   :  { %v44_v10 = vmul.f32 %v561_v7, %v43_v9  ;;  %550 = vmatpush.bf16.msra.mxu3 %v503_v45  ;;  %314 = vmatpush.bf16.msra.mxu1 %v503_v45  ;;  %v458_v9 = vld [vmem:[%s890_s1 + $0x10] sm:$0xf] }
   0xe   :  { %v45_v11 = vadd.f32 %v561_v7, %v44_v10  ;;  %543 = vmatpush.bf16.msra.mxu2 %v491_v49  ;;  %v517_v10 = vld [vmem:[%s890_s1 + $0x14] sm:$0xf0] }
   0xf   :  { %292 = vmatpush.bf16.msra.mxu0 %v491_v49 }
  0x10   :  { %v639_v12 = vsel %vm46_vm1, %v561_v7, %v45_v11  ;;  %551 = vmatpush.bf16.msra.mxu3 %v495_v51  ;;  %315 = vmatpush.bf16.msra.mxu1 %v495_v51  ;;  %v468_v7 = vld [vmem:[%s890_s1 + $0x28] sm:$0xf0]  ;;  %v516_v11 = vld [vmem:[%s890_s1 + $0x14] sm:$0xf] }
  0x11   :  { %v471_v8 = vor.u32 %v518_v6, %v468_v7 }
  0x12   :  { %544 = vmatpush.bf16.msra.mxu2 %v483_v55 }
  0x13   :  { %293 = vmatpush.bf16.msra.mxu0 %v483_v55 }
  0x14   :  { %552 = vmatpush.bf16.msra.mxu3 %v487_v57  ;;  %316 = vmatpush.bf16.msra.mxu1 %v487_v57 }
  0x16   :  { %545 = vmatpush.bf16.msra.mxu2 %v475_v62 }
  0x17   :  { %294 = vmatpush.bf16.msra.mxu0 %v475_v62 }
  0x75   :  { %v34_v13 = vpop.xlane.xlu0 %33  ;;  %v32_v16 = vpop.xlane.xlu2 %31 }
  0x76   :  { %v50_v14 = vmul.f32 %v639_v12, %v34_v13  ;;  %v40_v15 = vpop.xlane.xlu1 %39  ;;  %v49_v18 = vmul.f32 %v639_v12, %v32_v16  ;;  %v460_v16 = vld [vmem:[%s890_s1 + $0x18] sm:$0xf0] }
  0x77   :  { %v52_v21 = vmul.f32 %v639_v12, %v40_v15  ;;  %v459_v15 = vor.u32 %v517_v10, %v458_v9 }
  0x78   :  { %v642_v17 = vsub.f32 %v26_v0, %v50_v14  ;;  %v647_v20 = vsub.f32 %v25_v3, %v49_v18  ;;  %v466_v3 = vld [vmem:[%s890_s1 + $0x20] sm:$0xf] }
  0x79   :  { %v656_v28 = vsub.f32 %v28_v1, %v52_v21  ;;  %v479_v1 = vor.u32 %v520_v60, %v476_v63 }
  0x7a   :  { %v60_v19 = vmul.f32 %v642_v17, %v642_v17  ;;  %v59_v27 = vmul.f32 %v647_v20, %v647_v20 }
  0x7b   :  { %v62_v32 = vmul.f32 %v656_v28, %v656_v28  ;;  %553 = vmatpush.bf16.msra.mxu3 %v479_v1  ;;  %317 = vmatpush.bf16.msra.mxu1 %v479_v1 }
  0x7c   :  { %67 = vadd.xlane.f32.xlu2 %v60_v19 }
  0x7d   :  { %v36_v22 = vpop.xlane.xlu0 %35  ;;  %v71_v33 = vsel %vm37_vm0, %v62_v32, 0.0 }
  0x7e   :  { %v51_v23 = vmul.f32 %v639_v12, %v36_v22  ;;  %v30_v24 = vpop.xlane.xlu1 %29  ;;  %v463_v22 = vor.u32 %v516_v11, %v460_v16 }
  0x7f   :  { %v48_v25 = vmul.f32 %v639_v12, %v30_v24  ;;  %554 = vmatpush.bf16.msra.mxu3 %v471_v8  ;;  %318 = vmatpush.bf16.msra.mxu1 %v471_v8 }
  0x80   :  { %v652_v26 = vsub.f32 %v27_v4, %v51_v23  ;;  %v519_v4 = vld [vmem:[%s890_s1 + $0x24] sm:$0xf0] }
  0x81   :  { %v658_v29 = vsub.f32 %v24_v5, %v48_v25  ;;  %v467_v5 = vor.u32 %v519_v4, %v466_v3 }
  0x82   :  { %v61_v30 = vmul.f32 %v652_v26, %v652_v26 }
  0x83   :  { %v58_v31 = vmul.f32 %v658_v29, %v658_v29  ;;  %546 = vmatpush.bf16.msra.mxu2 %v467_v5  ;;  %295 = vmatpush.bf16.msra.mxu0 %v467_v5  ;;  %v559_v5 = vld [vmem:[%s889_s4] ss:$0 sm:$0xff] }
  0x84   :  { %69 = vadd.xlane.f32.xlu0 %v61_v30  ;;  %65 = vadd.xlane.f32.xlu2 %v59_v27  ;;  %v450_v30 = vld [vmem:[%s890_s1] sm:$0xf] }
  0x85   :  { %63 = vadd.xlane.f32.xlu1 %v58_v31  ;;  %555 = vmatpush.bf16.msra.mxu3 %v463_v22 }
  0x86   :  { %319 = vmatpush.bf16.msra.mxu1 %v463_v22 }
  0x87   :  { %547 = vmatpush.bf16.msra.mxu2 %v459_v15  ;;  %296 = vmatpush.bf16.msra.mxu0 %v459_v15 }
  0x89   :  { %556 = vmatpush.bf16.msra.mxu3 %v455_v38 }
  0x8a   :  { %320 = vmatpush.bf16.msra.mxu1 %v455_v38 }
  0x8c   :  { %72 = vadd.xlane.f32.xlu0 %v71_v33  ;;  %v515_v33 = vld [vmem:[%s890_s1 + $0x4] sm:$0xf0] }
  0x8d   :  { %v451_v35 = vor.u32 %v515_v33, %v450_v30 }
  0x8f   :  { %548 = vmatpush.bf16.msra.mxu2 %v451_v35  ;;  %297 = vmatpush.bf16.msra.mxu0 %v451_v35 }
  0xef   :  { %v68_v61 = vpop.xlane.xlu2 %67 }
  0xf0   :  { %v76_v0 = vmul.f32 %v68_v61, %v639_v12 }
  0xf2   :  { %v728_v2 = vadd.f32 1e-06, %v76_v0 }
  0xf4   :  { %562 = vrsqrt.f32 %v728_v2  ;;  %vm110_vm3 = vweird.f32 %v728_v2 }
  0xf7   :  { %v70_v13 = vpop.xlane.xlu0 %69  ;;  %v66_v14 = vpop.xlane.xlu2 %65 }
  0xf8   :  { %v77_v18 = vmul.f32 %v70_v13, %v639_v12  ;;  %v75_v19 = vmul.f32 %v66_v14, %v639_v12  ;;  %v64_v21 = vpop.xlane.xlu1 %63 }
  0xf9   :  { %v74_v23 = vmul.f32 %v64_v21, %v639_v12 }
  0xfa   :  { %v563_v24 = vpop.eup %562  ;;  %v82_v25 = vadd.f32 1e-06, %v77_v18  ;;  %v80_v27 = vadd.f32 1e-06, %v75_v19 }
  0xfb   :  { %v105_v31 = vmul.f32 %v563_v24, %v728_v2  ;;  %v79_v32 = vadd.f32 1e-06, %v74_v23  ;;  %vm111_vm2 = vweird.f32 %v563_v24 }
  0xfc   :  { %564 = vrsqrt.f32 %v82_v25  ;;  %vm112_vm4 = vmor %vm110_vm3, %vm111_vm2  ;;  %vm100_vm5 = vweird.f32 %v80_v27  ;;  %vm120_vm8 = vweird.f32 %v82_v25 }
  0xfd   :  { %v106_v37 = vmul.f32 %v563_v24, %v105_v31  ;;  %566 = vrsqrt.f32 %v80_v27  ;;  %vm90_vm9 = vweird.f32 %v79_v32 }
  0xfe   :  { %568 = vrsqrt.f32 %v79_v32 }
  0xff   :  { %v107_v39 = vmul.f32 0.5, %v106_v37  ;;  %v73_v40 = vpop.xlane.xlu0 %72 }
 0x100   :  { %v78_v41 = vmul.f32 %v73_v40, %v639_v12 }
 0x101   :  { %v108_v42 = vsub.f32 1.5, %v107_v39 }
 0x102   :  { %v565_v43 = vpop.eup %564  ;;  %v83_v44 = vadd.f32 1e-06, %v78_v41 }
 0x103   :  { %v567_v45 = vpop.eup %566  ;;  %v109_v46 = vmul.f32 %v563_v24, %v108_v42  ;;  %v115_v47 = vmul.f32 %v565_v43, %v82_v25  ;;  %vm121_vm7 = vweird.f32 %v565_v43 }
 0x104   :  { %v569_v48 = vpop.eup %568  ;;  %v95_v49 = vmul.f32 %v567_v45, %v80_v27  ;;  %570 = vrsqrt.f32 %v83_v44  ;;  %vm101_vm6 = vweird.f32 %v567_v45  ;;  %vm122_vm12 = vmor %vm120_vm8, %vm121_vm7  ;;  %vm130_vm15 = vweird.f32 %v83_v44 }
 0x105   :  { %v116_v50 = vmul.f32 %v565_v43, %v115_v47  ;;  %v85_v51 = vmul.f32 %v569_v48, %v79_v32  ;;  %v113_v53 = vsel %vm112_vm4, %v563_v24, %v109_v46  ;;  %vm102_vm10 = vmor %vm100_vm5, %vm101_vm6  ;;  %vm91_vm11 = vweird.f32 %v569_v48 }
 0x106   :  { %v96_v52 = vmul.f32 %v567_v45, %v95_v49  ;;  %v136_v60 = vmul.f32 %v113_v53, %v642_v17  ;;  %vm92_vm13 = vmor %vm90_vm9, %vm91_vm11 }
 0x107   :  { %v117_v54 = vmul.f32 0.5, %v116_v50  ;;  %v86_v55 = vmul.f32 %v569_v48, %v85_v51 }
 0x108   :  { %v97_v12 = vmul.f32 0.5, %v96_v52  ;;  %v145_v6 = vmul.f32 %v558_v59, %v136_v60 }
 0x109   :  { %v118_v56 = vsub.f32 1.5, %v117_v54  ;;  %v87_v57 = vmul.f32 0.5, %v86_v55 }
 0x10a   :  { %v571_v58 = vpop.eup %570  ;;  %v98_v61 = vsub.f32 1.5, %v97_v12  ;;  %v154_v16 = vadd.f32 %v559_v5, %v145_v6 }
 0x10b   :  { %v119_v62 = vmul.f32 %v565_v43, %v118_v56  ;;  %v88_v63 = vsub.f32 1.5, %v87_v57  ;;  %v125_v0 = vmul.f32 %v571_v58, %v83_v44  ;;  %vm131_vm14 = vweird.f32 %v571_v58 }
 0x10c   :  { %v99_v1 = vmul.f32 %v567_v45, %v98_v61  ;;  %vm132_vm0 = vmor %vm130_vm15, %vm131_vm14 }
 0x10d   :  { %v123_v2 = vsel %vm122_vm12, %v565_v43, %v119_v62  ;;  %v89_v3 = vmul.f32 %v569_v48, %v88_v63  ;;  %v126_v4 = vmul.f32 %v571_v58, %v125_v0 }
 0x10e   :  { %v137_v17 = vmul.f32 %v123_v2, %v652_v26  ;;  %v103_v7 = vsel %vm102_vm10, %v567_v45, %v99_v1 }
 0x10f   :  { %v135_v8 = vmul.f32 %v103_v7, %v647_v20  ;;  %v93_v9 = vsel %vm92_vm13, %v569_v48, %v89_v3  ;;  %v127_v10 = vmul.f32 0.5, %v126_v4 }
 0x110   :  { %v146_v11 = vmul.f32 %v558_v59, %v137_v17  ;;  %v134_v13 = vmul.f32 %v93_v9, %v658_v29 }
 0x111   :  { %v144_v14 = vmul.f32 %v558_v59, %v135_v8  ;;  %v128_v15 = vsub.f32 1.5, %v127_v10 }
 0x112   :  { %v155_v18 = vadd.f32 %v559_v5, %v146_v11  ;;  %v143_v19 = vmul.f32 %v558_v59, %v134_v13 }
 0x113   :  { %v153_v21 = vadd.f32 %v559_v5, %v144_v14  ;;  %v129_v22 = vmul.f32 %v571_v58, %v128_v15 }
 0x114   :  { %v538_v26 = vpack.c.bf16 %v155_v18, %v154_v16  ;;  %v152_v23 = vadd.f32 %v559_v5, %v143_v19 }
 0x115   :  { %v133_v24 = vsel %vm132_vm0, %v571_v58, %v129_v22 }
 0x116   :  { %540 = vst [vmem:[#allocation2 + $0x8] sm:$0xff] %v538_v26   ;;  %v533_v20 = vpack.c.bf16 %v153_v21, %v152_v23  ;;  %v138_v25 = vmul.f32 %v133_v24, %v656_v28  ;;  %v188_v28 = vld [vmem:[%s891_s2] sm:$0x3] }
 0x117   :  { %v788_v36 = vperm.slane %v188_v28, 0  ;;  %v790_v37 = vperm.slane %v188_v28, 1 }
 0x118   :  { %534 = vst [vmem:[#allocation2] sm:$0xff] %v533_v20   ;;  %v147_v27 = vmul.f32 %v558_v59, %v138_v25 }
 0x11a   :  { %v156_v29 = vadd.f32 %v559_v5, %v147_v27 }
 0x11c   :  { %v161_v30 = vpack.c.bf16 %v156_v29, %v156_v29 }
 0x11d   :  { %v513_v31 = vld [vmem:[#allocation2 + $0x8] sm:$0xff] }
 0x11e   :  { %166 = vst [vmem:[#allocation2 + $0x10] sm:$0x1] %v161_v30  ;;  %303 = vmatmul.bf16.vlgmr.msra.gmra.mxu2 %v513_v31  ;;  %326 = vmatmul.bf16.vlgmr.msra.gmra.mxu3 %v513_v31 }
 0x11f   :  { %v512_v32 = vld [vmem:[#allocation2] sm:$0xff] }
 0x120   :  { %298 = vmatmul.bf16.vlgmr.msra.gmra.mxu0 %v512_v32  ;;  %321 = vmatmul.bf16.vlgmr.msra.gmra.mxu1 %v512_v32 }
 0x125   :  { %v171_v33 = vld [vmem:[#allocation2 + $0x10] sm:$0x1] }
 0x126   :  { %v203_v34 = vunpack.c.l.b16 %v171_v33 }
 0x128   :  { %v206_v35 = vpack.c.b16 %v203_v34, %v203_v34 }
 0x12e   :  { %308 = vmatmul.bf16.gmra.mxu2 %v206_v35  ;;  %331 = vmatmul.bf16.gmra.mxu3 %v206_v35 }
 0x19d   :  { %v299_v38 = vpop.f32.mrf.mxu0  ;;  %v322_v39 = vpop.f32.mrf.mxu1 }
 0x19e   :  { %v793_v40 = vadd.f32 %v299_v38, %v788_v36  ;;  %v796_v41 = vadd.f32 %v322_v39, %v790_v37 }
 0x1a0   :  { %v336_v42 = vmul.f32 %v793_v40, %v793_v40  ;;  %v337_v43 = vmul.f32 %v796_v41, %v796_v41 }
 0x1a1   :  { %v304_v44 = vpop.f32.mrf.mxu2  ;;  %v327_v45 = vpop.f32.mrf.mxu3 }
 0x1a2   :  { %v346_v46 = vmul.f32 %v336_v42, %v793_v40  ;;  %v347_v47 = vmul.f32 %v337_v43, %v796_v41  ;;  %v805_v48 = vadd.f32 %v304_v44, %v788_v36  ;;  %v808_v49 = vadd.f32 %v327_v45, %v790_v37 }
 0x1a4   :  { %v356_v50 = vmul.f32 0.044715, %v346_v46  ;;  %v357_v51 = vmul.f32 0.044715, %v347_v47  ;;  %v340_v52 = vmul.f32 %v805_v48, %v805_v48  ;;  %v341_v53 = vmul.f32 %v808_v49, %v808_v49 }
 0x1a5   :  { %v301_v54 = vpop.f32.mrf.mxu0  ;;  %v324_v55 = vpop.f32.mrf.mxu1 }
 0x1a6   :  { %v366_v12 = vadd.f32 %v356_v50, %v793_v40  ;;  %v367_v56 = vadd.f32 %v357_v51, %v796_v41  ;;  %v350_v57 = vmul.f32 %v340_v52, %v805_v48  ;;  %v351_v58 = vmul.f32 %v341_v53, %v808_v49 }
 0x1a7   :  { %v819_v59 = vadd.f32 %v301_v54, %v788_v36  ;;  %v822_v60 = vadd.f32 %v324_v55, %v790_v37 }
 0x1a8   :  { %v376_v61 = vmul.f32 0.7978846, %v366_v12  ;;  %v377_v62 = vmul.f32 0.7978846, %v367_v56  ;;  %v360_v63 = vmul.f32 0.044715, %v350_v57 }
 0x1a9   :  { %v361_v0 = vmul.f32 0.044715, %v351_v58  ;;  %v338_v1 = vmul.f32 %v819_v59, %v819_v59  ;;  %v339_v2 = vmul.f32 %v822_v60, %v822_v60  ;;  %v306_v3 = vpop.f32.mrf.mxu2  ;;  %v329_v4 = vpop.f32.mrf.mxu3 }
 0x1aa   :  { %572 = vtanh.f32 %v376_v61  ;;  %v370_v5 = vadd.f32 %v360_v63, %v805_v48  ;;  %v830_v6 = vadd.f32 %v306_v3, %v788_v36  ;;  %v833_v17 = vadd.f32 %v329_v4, %v790_v37 }
 0x1ab   :  { %574 = vtanh.f32 %v377_v62  ;;  %v371_v7 = vadd.f32 %v361_v0, %v808_v49  ;;  %v348_v8 = vmul.f32 %v338_v1, %v819_v59  ;;  %v349_v9 = vmul.f32 %v339_v2, %v822_v60 }
 0x1ac   :  { %v380_v10 = vmul.f32 0.7978846, %v370_v5  ;;  %v342_v11 = vmul.f32 %v830_v6, %v830_v6  ;;  %v343_v13 = vmul.f32 %v833_v17, %v833_v17 }
 0x1ad   :  { %v381_v14 = vmul.f32 0.7978846, %v371_v7  ;;  %v358_v15 = vmul.f32 0.044715, %v348_v8  ;;  %v359_v16 = vmul.f32 0.044715, %v349_v9 }
 0x1ae   :  { %576 = vtanh.f32 %v380_v10  ;;  %v352_v18 = vmul.f32 %v342_v11, %v830_v6  ;;  %v353_v19 = vmul.f32 %v343_v13, %v833_v17 }
 0x1af   :  { %578 = vtanh.f32 %v381_v14  ;;  %v368_v21 = vadd.f32 %v358_v15, %v819_v59  ;;  %v369_v22 = vadd.f32 %v359_v16, %v822_v60 }
 0x1b0   :  { %v573_v26 = vpop.eup %572  ;;  %v362_v23 = vmul.f32 0.044715, %v352_v18  ;;  %v363_v24 = vmul.f32 0.044715, %v353_v19 }
 0x1b1   :  { %v575_v20 = vpop.eup %574  ;;  %v396_v25 = vadd.f32 1.0, %v573_v26  ;;  %v378_v27 = vmul.f32 0.7978846, %v368_v21  ;;  %v379_v29 = vmul.f32 0.7978846, %v369_v22  ;;  %v309_v30 = vpop.f32.mrf.mxu2 }
 0x1b2   :  { %v332_v31 = vpop.f32.mrf.mxu3  ;;  %v397_v32 = vadd.f32 1.0, %v575_v20  ;;  %v372_v33 = vadd.f32 %v362_v23, %v830_v6  ;;  %v373_v34 = vadd.f32 %v363_v24, %v833_v17  ;;  %v849_v35 = vadd.f32 %v309_v30, %v788_v36 }
 0x1b3   :  { %v406_v28 = vmul.f32 0.5, %v396_v25  ;;  %580 = vtanh.f32 %v378_v27  ;;  %v852_v38 = vadd.f32 %v332_v31, %v790_v37 }
 0x1b4   :  { %v577_v39 = vpop.eup %576  ;;  %v407_v42 = vmul.f32 0.5, %v397_v32  ;;  %582 = vtanh.f32 %v379_v29  ;;  %v382_v43 = vmul.f32 0.7978846, %v372_v33  ;;  %v383_v44 = vmul.f32 0.7978846, %v373_v34 }
 0x1b5   :  { %v579_v45 = vpop.eup %578  ;;  %v416_v46 = vmul.f32 %v406_v28, %v793_v40  ;;  %v400_v47 = vadd.f32 1.0, %v577_v39  ;;  %v344_v50 = vmul.f32 %v849_v35, %v849_v35  ;;  %v345_v36 = vmul.f32 %v852_v38, %v852_v38 }
 0x1b6   :  { %v417_v51 = vmul.f32 %v407_v42, %v796_v41  ;;  %v401_v52 = vadd.f32 1.0, %v579_v45  ;;  %584 = vtanh.f32 %v382_v43 }
 0x1b7   :  { %v410_v37 = vmul.f32 0.5, %v400_v47  ;;  %586 = vtanh.f32 %v383_v44  ;;  %v354_v53 = vmul.f32 %v344_v50, %v849_v35  ;;  %v355_v54 = vmul.f32 %v345_v36, %v852_v38 }
 0x1b8   :  { %v426_v55 = vpack.c.bf16 %v417_v51, %v416_v46  ;;  %v411_v12 = vmul.f32 0.5, %v401_v52 }
 0x1b9   :  { %v581_v40 = vpop.eup %580  ;;  %v420_v56 = vmul.f32 %v410_v37, %v805_v48  ;;  %v364_v57 = vmul.f32 0.044715, %v354_v53  ;;  %v365_v58 = vmul.f32 0.044715, %v355_v54  ;;  %v311_v61 = vpop.f32.mrf.mxu2 }
 0x1ba   :  { %v334_v62 = vpop.f32.mrf.mxu3  ;;  %v583_v63 = vpop.eup %582  ;;  %431 = vst [vmem:[%s892_s5] sm:$0xff] %v426_v55  ;;  %v421_v41 = vmul.f32 %v411_v12, %v808_v49  ;;  %v398_v0 = vadd.f32 1.0, %v581_v40 }
 0x1bb   :  { %v399_v1 = vadd.f32 1.0, %v583_v63  ;;  %v374_v2 = vadd.f32 %v364_v57, %v849_v35  ;;  %v375_v3 = vadd.f32 %v365_v58, %v852_v38 }
 0x1bc   :  { %v585_v4 = vpop.eup %584  ;;  %v428_v5 = vpack.c.bf16 %v421_v41, %v420_v56  ;;  %v408_v48 = vmul.f32 0.5, %v398_v0 }
 0x1bd   :  { %v587_v7 = vpop.eup %586  ;;  %v409_v8 = vmul.f32 0.5, %v399_v1  ;;  %v402_v9 = vadd.f32 1.0, %v585_v4  ;;  %v384_v10 = vmul.f32 0.7978846, %v374_v2  ;;  %v385_v11 = vmul.f32 0.7978846, %v375_v3 }
 0x1be   :  { %433 = vst [vmem:[%s892_s5 + $0x10] sm:$0xff] %v428_v5  ;;  %v418_v49 = vmul.f32 %v408_v48, %v819_v59  ;;  %v403_v13 = vadd.f32 1.0, %v587_v7 }
 0x1bf   :  { %v419_v14 = vmul.f32 %v409_v8, %v822_v60  ;;  %v412_v15 = vmul.f32 0.5, %v402_v9  ;;  %588 = vtanh.f32 %v384_v10 }
 0x1c0   :  { %v413_v16 = vmul.f32 0.5, %v403_v13  ;;  %590 = vtanh.f32 %v385_v11 }
 0x1c1   :  { %v427_v18 = vpack.c.bf16 %v419_v14, %v418_v49  ;;  %v422_v19 = vmul.f32 %v412_v15, %v830_v6 }
 0x1c2   :  { %v423_v21 = vmul.f32 %v413_v16, %v833_v17 }
 0x1c3   :  { %432 = vst [vmem:[%s892_s5 + $0x8] sm:$0xff] %v427_v18 }
 0x1c4   :  { %v429_v22 = vpack.c.bf16 %v423_v21, %v422_v19 }
 0x1c5   :  { %v589_v26 = vpop.eup %588 }
 0x1c6   :  { %v591_v23 = vpop.eup %590  ;;  %434 = vst [vmem:[%s892_s5 + $0x18] sm:$0xff] %v429_v22  ;;  %v404_v59 = vadd.f32 1.0, %v589_v26 }
 0x1c7   :  { %v405_v60 = vadd.f32 1.0, %v591_v23 }
 0x1c8   :  { %v414_v24 = vmul.f32 0.5, %v404_v59 }
 0x1c9   :  { %v415_v20 = vmul.f32 0.5, %v405_v60 }
 0x1ca   :  { %v424_v25 = vmul.f32 %v414_v24, %v849_v35 }
 0x1cb   :  { %v425_v6 = vmul.f32 %v415_v20, %v852_v38 }
 0x1cd   :  { %v430_v17 = vpack.c.bf16 %v425_v6, %v424_v25 }
 0x1cf   :  { %435 = vst [vmem:[%s892_s5 + $0x20] sm:$0x11] %v430_v17 }

// kernel: visual_backbone_forward.25
= control target key start
LH: loop header
LB: loop body
LE: loop exit
PB: predicated region body
PF: predicated region fallthrough
CT: control target
= control target key end

     0   :  { %vm27_vm0 = vcmask 1041408   ;;  %v171_v6 = vmov 128.0   ;;  %s250_s0 = inlined_call_operand.vmem [shape: f32[34,128], index: 0, kind: input, shape index: {}]   ;;  %s251_s1 = inlined_call_operand.vmem [shape: f32[1,128], index: 1, kind: input, shape index: {}]   ;;  %s252_s2 = inlined_call_operand.vmem [shape: f32[1,128], index: 2, kind: input, shape index: {}]   ;;  %s253_s3 = inlined_call_operand.vmem [shape: f32[34,128], index: 3, kind: output, shape index: {}]  }
   0x1   :  { %v15_v0 = vld [vmem:[%s250_s0 + $0x8] sm:$0xff]  ;;  %v18_v1 = vld [vmem:[%s250_s0 + $0x20] sm:$0x3]  ;;  %v17_v3 = vld [vmem:[%s250_s0 + $0x18] sm:$0xff]  ;;  %159 = vrcp.f32 %v171_v6 }
   0x2   :  { %21 = vadd.xlane.f32.xlu1 %v15_v0  ;;  %v28_v2 = vsel %vm27_vm0, %v18_v1, 0.0  ;;  %25 = vadd.xlane.f32.xlu2 %v17_v3  ;;  %v16_v4 = vld [vmem:[%s250_s0 + $0x10] sm:$0xff]  ;;  %v14_v5 = vld [vmem:[%s250_s0] sm:$0xff] }
   0x3   :  { %29 = vadd.xlane.f32.xlu0 %v28_v2  ;;  %v157_v59 = vld [vmem:[%s251_s1] ss:$0 sm:$0xff] }
   0x7   :  { %v160_v7 = vpop.eup %159 }
   0x8   :  { %v32_v8 = vmul.f32 128.0, %v160_v7  ;;  %vm36_vm1 = vweird.f32 %v160_v7 }
   0xa   :  { %23 = vadd.xlane.f32.xlu1 %v16_v4  ;;  %v33_v9 = vsub.f32 1.0, %v32_v8 }
   0xb   :  { %19 = vadd.xlane.f32.xlu0 %v14_v5 }
   0xc   :  { %v34_v10 = vmul.f32 %v160_v7, %v33_v9 }
   0xe   :  { %v35_v11 = vadd.f32 %v160_v7, %v34_v10 }
  0x10   :  { %v37_v12 = vsel %vm36_vm1, %v160_v7, %v35_v11 }
  0x75   :  { %v22_v13 = vpop.xlane.xlu1 %21  ;;  %v26_v23 = vpop.xlane.xlu2 %25 }
  0x76   :  { %v39_v14 = vmul.f32 %v37_v12, %v22_v13  ;;  %v30_v15 = vpop.xlane.xlu0 %29  ;;  %v41_v28 = vmul.f32 %v37_v12, %v26_v23 }
  0x77   :  { %v42_v16 = vmul.f32 %v37_v12, %v30_v15 }
  0x78   :  { %v44_v17 = vsub.f32 %v15_v0, %v39_v14  ;;  %v221_v32 = vsub.f32 %v17_v3, %v41_v28  ;;  %v158_v0 = vld [vmem:[%s252_s2] ss:$0 sm:$0xff] }
  0x79   :  { %v208_v19 = vsub.f32 %v18_v1, %v42_v16 }
  0x7a   :  { %v49_v18 = vmul.f32 %v44_v17, %v44_v17  ;;  %v51_v33 = vmul.f32 %v221_v32, %v221_v32 }
  0x7b   :  { %v52_v25 = vmul.f32 %v208_v19, %v208_v19 }
  0x7c   :  { %55 = vadd.xlane.f32.xlu0 %v49_v18 }
  0x7d   :  { %v24_v20 = vpop.xlane.xlu1 %23  ;;  %v61_v30 = vsel %vm27_vm0, %v52_v25, 0.0 }
  0x7e   :  { %v40_v21 = vmul.f32 %v37_v12, %v24_v20  ;;  %v20_v22 = vpop.xlane.xlu0 %19 }
  0x7f   :  { %v38_v24 = vmul.f32 %v37_v12, %v20_v22 }
  0x80   :  { %v212_v26 = vsub.f32 %v16_v4, %v40_v21 }
  0x81   :  { %v214_v27 = vsub.f32 %v14_v5, %v38_v24 }
  0x82   :  { %v50_v29 = vmul.f32 %v212_v26, %v212_v26 }
  0x83   :  { %v48_v31 = vmul.f32 %v214_v27, %v214_v27 }
  0x84   :  { %57 = vadd.xlane.f32.xlu1 %v50_v29  ;;  %62 = vadd.xlane.f32.xlu0 %v61_v30 }
  0x85   :  { %53 = vadd.xlane.f32.xlu2 %v48_v31 }
  0x8d   :  { %59 = vadd.xlane.f32.xlu2 %v51_v33 }
  0xef   :  { %v56_v34 = vpop.xlane.xlu0 %55 }
  0xf0   :  { %v65_v35 = vmul.f32 %v56_v34, %v37_v12 }
  0xf2   :  { %v70_v36 = vadd.f32 1e-06, %v65_v35 }
  0xf4   :  { %161 = vrsqrt.f32 %v70_v36  ;;  %vm90_vm2 = vweird.f32 %v70_v36 }
  0xf7   :  { %v58_v37 = vpop.xlane.xlu1 %57  ;;  %v63_v38 = vpop.xlane.xlu0 %62 }
  0xf8   :  { %v66_v39 = vmul.f32 %v58_v37, %v37_v12  ;;  %v68_v40 = vmul.f32 %v63_v38, %v37_v12  ;;  %v54_v41 = vpop.xlane.xlu2 %53 }
  0xf9   :  { %v64_v42 = vmul.f32 %v54_v41, %v37_v12 }
  0xfa   :  { %v162_v43 = vpop.eup %161  ;;  %v71_v44 = vadd.f32 1e-06, %v66_v39  ;;  %v73_v45 = vadd.f32 1e-06, %v68_v40 }
  0xfb   :  { %v85_v46 = vmul.f32 %v162_v43, %v70_v36  ;;  %v69_v47 = vadd.f32 1e-06, %v64_v42  ;;  %vm91_vm3 = vweird.f32 %v162_v43 }
  0xfc   :  { %163 = vrsqrt.f32 %v71_v44  ;;  %vm92_vm4 = vmor %vm90_vm2, %vm91_vm3  ;;  %vm100_vm5 = vweird.f32 %v71_v44  ;;  %vm120_vm10 = vweird.f32 %v73_v45 }
  0xfd   :  { %v86_v48 = vmul.f32 %v162_v43, %v85_v46  ;;  %165 = vrsqrt.f32 %v73_v45  ;;  %vm80_vm12 = vweird.f32 %v69_v47 }
  0xfe   :  { %167 = vrsqrt.f32 %v69_v47 }
  0xff   :  { %v87_v49 = vmul.f32 0.5, %v86_v48 }
 0x100   :  { %v60_v50 = vpop.xlane.xlu2 %59 }
 0x101   :  { %v88_v51 = vsub.f32 1.5, %v87_v49  ;;  %v67_v52 = vmul.f32 %v60_v50, %v37_v12 }
 0x102   :  { %v164_v53 = vpop.eup %163 }
 0x103   :  { %v166_v54 = vpop.eup %165  ;;  %v89_v55 = vmul.f32 %v162_v43, %v88_v51  ;;  %v95_v56 = vmul.f32 %v164_v53, %v71_v44  ;;  %v72_v57 = vadd.f32 1e-06, %v67_v52  ;;  %vm101_vm6 = vweird.f32 %v164_v53 }
 0x104   :  { %v168_v58 = vpop.eup %167  ;;  %v115_v60 = vmul.f32 %v166_v54, %v73_v45  ;;  %vm121_vm7 = vweird.f32 %v166_v54  ;;  %vm102_vm9 = vmor %vm100_vm5, %vm101_vm6 }
 0x105   :  { %v93_v61 = vsel %vm92_vm4, %v162_v43, %v89_v55  ;;  %v96_v62 = vmul.f32 %v164_v53, %v95_v56  ;;  %v75_v63 = vmul.f32 %v168_v58, %v69_v47  ;;  %169 = vrsqrt.f32 %v72_v57  ;;  %vm122_vm11 = vmor %vm120_vm10, %vm121_vm7 }
 0x106   :  { %v125_v1 = vmul.f32 %v93_v61, %v44_v17  ;;  %v116_v2 = vmul.f32 %v166_v54, %v115_v60  ;;  %vm81_vm8 = vweird.f32 %v168_v58  ;;  %vm110_vm15 = vweird.f32 %v72_v57 }
 0x107   :  { %v97_v3 = vmul.f32 0.5, %v96_v62  ;;  %v76_v4 = vmul.f32 %v168_v58, %v75_v63  ;;  %vm82_vm13 = vmor %vm80_vm12, %vm81_vm8 }
 0x108   :  { %v134_v5 = vmul.f32 %v157_v59, %v125_v1  ;;  %v117_v6 = vmul.f32 0.5, %v116_v2 }
 0x109   :  { %v98_v7 = vsub.f32 1.5, %v97_v3  ;;  %v77_v8 = vmul.f32 0.5, %v76_v4 }
 0x10a   :  { %v143_v9 = vadd.f32 %v158_v0, %v134_v5  ;;  %v118_v10 = vsub.f32 1.5, %v117_v6 }
 0x10b   :  { %v99_v11 = vmul.f32 %v164_v53, %v98_v7  ;;  %v78_v12 = vsub.f32 1.5, %v77_v8  ;;  %v170_v13 = vpop.eup %169 }
 0x10c   :  { %148 = vst [vmem:[%s253_s3 + $0x8] sm:$0xff] %v143_v9  ;;  %v119_v14 = vmul.f32 %v166_v54, %v118_v10  ;;  %v105_v17 = vmul.f32 %v170_v13, %v72_v57  ;;  %vm111_vm14 = vweird.f32 %v170_v13 }
 0x10d   :  { %v103_v15 = vsel %vm102_vm9, %v164_v53, %v99_v11  ;;  %v79_v16 = vmul.f32 %v168_v58, %v78_v12  ;;  %vm112_vm0 = vmor %vm110_vm15, %vm111_vm14 }
 0x10e   :  { %v126_v18 = vmul.f32 %v103_v15, %v212_v26  ;;  %v123_v20 = vsel %vm122_vm11, %v166_v54, %v119_v14  ;;  %v106_v23 = vmul.f32 %v170_v13, %v105_v17 }
 0x10f   :  { %v128_v21 = vmul.f32 %v123_v20, %v208_v19  ;;  %v83_v22 = vsel %vm82_vm13, %v168_v58, %v79_v16 }
 0x110   :  { %v135_v24 = vmul.f32 %v157_v59, %v126_v18  ;;  %v124_v25 = vmul.f32 %v83_v22, %v214_v27  ;;  %v107_v29 = vmul.f32 0.5, %v106_v23 }
 0x111   :  { %v137_v28 = vmul.f32 %v157_v59, %v128_v21 }
 0x112   :  { %v144_v30 = vadd.f32 %v158_v0, %v135_v24  ;;  %v133_v31 = vmul.f32 %v157_v59, %v124_v25  ;;  %v108_v34 = vsub.f32 1.5, %v107_v29 }
 0x113   :  { %v146_v33 = vadd.f32 %v158_v0, %v137_v28 }
 0x114   :  { %149 = vst [vmem:[%s253_s3 + $0x10] sm:$0xff] %v144_v30  ;;  %v142_v26 = vadd.f32 %v158_v0, %v133_v31  ;;  %v109_v19 = vmul.f32 %v170_v13, %v108_v34 }
 0x115   :  { %151 = vst [vmem:[%s253_s3 + $0x20] sm:$0x3] %v146_v33 }
 0x116   :  { %147 = vst [vmem:[%s253_s3] sm:$0xff] %v142_v26  ;;  %v113_v27 = vsel %vm112_vm0, %v170_v13, %v109_v19 }
 0x117   :  { %v127_v35 = vmul.f32 %v113_v27, %v221_v32 }
 0x119   :  { %v136_v36 = vmul.f32 %v157_v59, %v127_v35 }
 0x11b   :  { %v145_v37 = vadd.f32 %v158_v0, %v136_v36 }
 0x11d   :  { %150 = vst [vmem:[%s253_s3 + $0x18] sm:$0xff] %v145_v37 }

// kernel: visual_backbone_forward.19
= control target key start
LH: loop header
LB: loop body
LE: loop exit
PB: predicated region body
PF: predicated region fallthrough
CT: control target
= control target key end

     0   :  { %s496_s1 = inlined_call_operand.vmem [shape: bf16[256,128], index: 1, kind: input, shape index: {}]   ;;  %s497_s2 = inlined_call_operand.vmem [shape: f32[1,128], index: 2, kind: input, shape index: {}]   ;;  %s498_s0 = inlined_call_operand.vmem [shape: bf16[34,256], index: 0, kind: input, shape index: {}]   ;;  %s499_s3 = inlined_call_operand.vmem [shape: f32[34,128], index: 3, kind: input, shape index: {}]   ;;  %s500_s4 = inlined_call_operand.vmem [shape: f32[34,128], index: 4, kind: output, shape index: {}]  }
   0x1   :  { %v337_v0 = vld [vmem:[%s496_s1 + $0x38] sm:$0xff]  ;;  %v336_v2 = vld [vmem:[%s496_s1 + $0x30] sm:$0xff]  ;;  %v335_v4 = vld [vmem:[%s496_s1 + $0x28] sm:$0xff] }
   0x2   :  { %v345_v1 = vld [vmem:[%s496_s1 + $0x78] sm:$0xff]  ;;  %346 = vmatpush.bf16.msra.mxu2 %v337_v0  ;;  %v344_v3 = vld [vmem:[%s496_s1 + $0x70] sm:$0xff]  ;;  %181 = vmatpush.bf16.msra.mxu0 %v337_v0  ;;  %v343_v5 = vld [vmem:[%s496_s1 + $0x68] sm:$0xff] }
   0x3   :  { %354 = vmatpush.bf16.msra.mxu3 %v345_v1  ;;  %204 = vmatpush.bf16.msra.mxu1 %v345_v1  ;;  %v334_v6 = vld [vmem:[%s496_s1 + $0x20] sm:$0xff]  ;;  %v333_v8 = vld [vmem:[%s496_s1 + $0x18] sm:$0xff]  ;;  %v332_v10 = vld [vmem:[%s496_s1 + $0x10] sm:$0xff] }
   0x4   :  { %v342_v7 = vld [vmem:[%s496_s1 + $0x60] sm:$0xff]  ;;  %v341_v9 = vld [vmem:[%s496_s1 + $0x58] sm:$0xff]  ;;  %v340_v11 = vld [vmem:[%s496_s1 + $0x50] sm:$0xff] }
   0x5   :  { %v331_v12 = vld [vmem:[%s496_s1 + $0x8] sm:$0xff]  ;;  %v330_v14 = vld [vmem:[%s496_s1] sm:$0xff]  ;;  %v256_v16 = vld [vmem:[%s498_s0 + $0x10] sm:$0xf] }
   0x6   :  { %347 = vmatpush.bf16.msra.mxu2 %v336_v2  ;;  %182 = vmatpush.bf16.msra.mxu0 %v336_v2  ;;  %v339_v13 = vld [vmem:[%s496_s1 + $0x48] sm:$0xff]  ;;  %v338_v15 = vld [vmem:[%s496_s1 + $0x40] sm:$0xff]  ;;  %v329_v17 = vld [vmem:[%s498_s0 + $0x14] sm:$0xf0] }
   0x7   :  { %355 = vmatpush.bf16.msra.mxu3 %v344_v3  ;;  %205 = vmatpush.bf16.msra.mxu1 %v344_v3  ;;  %v328_v18 = vld [vmem:[%s498_s0 + $0x14] sm:$0xf]  ;;  %v258_v19 = vld [vmem:[%s498_s0 + $0x18] sm:$0xf0]  ;;  %v248_v20 = vld [vmem:[%s498_s0] sm:$0xf]  ;;  %v257_v24 = vor.u32 %v329_v17, %v256_v16 }
   0x8   :  { %v327_v21 = vld [vmem:[%s498_s0 + $0x4] sm:$0xf0]  ;;  %v326_v22 = vld [vmem:[%s498_s0 + $0x4] sm:$0xf]  ;;  %v250_v23 = vld [vmem:[%s498_s0 + $0x8] sm:$0xf0]  ;;  %v261_v25 = vor.u32 %v328_v18, %v258_v19 }
   0x9   :  { %v249_v26 = vor.u32 %v327_v21, %v248_v20  ;;  %v253_v27 = vor.u32 %v326_v22, %v250_v23  ;;  %v21_v28 = vld [vmem:[%s498_s0 + $0x20] sm:$0x11]  ;;  %v229_v43 = vld [vmem:[%s499_s3 + $0x10] sm:$0xff]  ;;  %v228_v49 = vld [vmem:[%s499_s3 + $0x8] sm:$0xff] }
   0xa   :  { %348 = vmatpush.bf16.msra.mxu2 %v335_v4  ;;  %183 = vmatpush.bf16.msra.mxu0 %v335_v4  ;;  %v71_v29 = vunpack.c.l.b16 %v21_v28  ;;  %v72_v30 = vunpack.c.h.b16 %v21_v28  ;;  %v362_v33 = vld [vmem:[%s497_s2] ss:$0 sm:$0xff]  ;;  %v230_v55 = vld [vmem:[%s499_s3 + $0x18] sm:$0xff] }
   0xb   :  { %356 = vmatpush.bf16.msra.mxu3 %v343_v5  ;;  %206 = vmatpush.bf16.msra.mxu1 %v343_v5  ;;  %v227_v37 = vld [vmem:[%s499_s3] sm:$0xff] }
   0xc   :  { %v77_v31 = vpack.c.b16 %v71_v29, %v71_v29  ;;  %v78_v32 = vpack.c.b16 %v72_v30, %v72_v30  ;;  %v231_v61 = vld [vmem:[%s499_s3 + $0x20] sm:$0x3] }
   0xe   :  { %349 = vmatpush.bf16.msra.mxu2 %v334_v6  ;;  %184 = vmatpush.bf16.msra.mxu0 %v334_v6 }
   0xf   :  { %357 = vmatpush.bf16.msra.mxu3 %v342_v7  ;;  %207 = vmatpush.bf16.msra.mxu1 %v342_v7 }
  0x12   :  { %350 = vmatpush.bf16.msra.mxu2 %v333_v8  ;;  %185 = vmatpush.bf16.msra.mxu0 %v333_v8 }
  0x13   :  { %358 = vmatpush.bf16.msra.mxu3 %v341_v9  ;;  %208 = vmatpush.bf16.msra.mxu1 %v341_v9 }
  0x16   :  { %351 = vmatpush.bf16.msra.mxu2 %v332_v10  ;;  %186 = vmatpush.bf16.msra.mxu0 %v332_v10 }
  0x17   :  { %359 = vmatpush.bf16.msra.mxu3 %v340_v11  ;;  %209 = vmatpush.bf16.msra.mxu1 %v340_v11 }
  0x1a   :  { %352 = vmatpush.bf16.msra.mxu2 %v331_v12  ;;  %187 = vmatpush.bf16.msra.mxu0 %v331_v12 }
  0x1b   :  { %360 = vmatpush.bf16.msra.mxu3 %v339_v13  ;;  %210 = vmatpush.bf16.msra.mxu1 %v339_v13 }
  0x1e   :  { %353 = vmatpush.bf16.msra.mxu2 %v330_v14  ;;  %188 = vmatpush.bf16.msra.mxu0 %v330_v14 }
  0x1f   :  { %361 = vmatpush.bf16.msra.mxu3 %v338_v15  ;;  %211 = vmatpush.bf16.msra.mxu1 %v338_v15 }
  0x21   :  { %194 = vmatmul.bf16.vlgmr.msra.gmra.mxu2 %v257_v24  ;;  %189 = vmatmul.bf16.vlgmr.msra.gmra.mxu0 %v249_v26 }
  0x22   :  { %217 = vmatmul.bf16.vlgmr.msra.gmra.mxu3 %v261_v25  ;;  %212 = vmatmul.bf16.vlgmr.msra.gmra.mxu1 %v253_v27 }
  0x31   :  { %199 = vmatmul.bf16.gmra.mxu2 %v77_v31 }
  0x32   :  { %222 = vmatmul.bf16.gmra.mxu3 %v78_v32 }
  0x9e   :  { %v190_v34 = vpop.f32.mrf.mxu0 }
  0x9f   :  { %v213_v35 = vpop.f32.mrf.mxu1  ;;  %v191_v36 = vadd.f32 %v362_v33, %v190_v34 }
  0xa1   :  { %v214_v38 = vadd.f32 %v213_v35, %v191_v36 }
  0xa3   :  { %v232_v41 = vadd.f32 %v227_v37, %v214_v38 }
  0xa4   :  { %v195_v39 = vpop.f32.mrf.mxu2 }
  0xa5   :  { %v218_v40 = vpop.f32.mrf.mxu3  ;;  %v196_v42 = vadd.f32 %v362_v33, %v195_v39  ;;  %237 = vst [vmem:[%s500_s4] sm:$0xff] %v232_v41 }
  0xa6   :  { %v192_v45 = vpop.f32.mrf.mxu0 }
  0xa7   :  { %v219_v44 = vadd.f32 %v218_v40, %v196_v42  ;;  %v215_v46 = vpop.f32.mrf.mxu1  ;;  %v193_v47 = vadd.f32 %v362_v33, %v192_v45 }
  0xa9   :  { %v234_v48 = vadd.f32 %v229_v43, %v219_v44  ;;  %v216_v50 = vadd.f32 %v215_v46, %v193_v47 }
  0xab   :  { %239 = vst [vmem:[%s500_s4 + $0x10] sm:$0xff] %v234_v48  ;;  %v233_v53 = vadd.f32 %v228_v49, %v216_v50 }
  0xac   :  { %v197_v51 = vpop.f32.mrf.mxu2 }
  0xad   :  { %v220_v52 = vpop.f32.mrf.mxu3  ;;  %v198_v54 = vadd.f32 %v362_v33, %v197_v51  ;;  %238 = vst [vmem:[%s500_s4 + $0x8] sm:$0xff] %v233_v53 }
  0xaf   :  { %v221_v56 = vadd.f32 %v220_v52, %v198_v54 }
  0xb1   :  { %v235_v57 = vadd.f32 %v230_v55, %v221_v56 }
  0xb3   :  { %240 = vst [vmem:[%s500_s4 + $0x18] sm:$0xff] %v235_v57 }
  0xb4   :  { %v200_v58 = vpop.f32.mrf.mxu2 }
  0xb5   :  { %v223_v59 = vpop.f32.mrf.mxu3  ;;  %v201_v60 = vadd.f32 %v362_v33, %v200_v58 }
  0xb7   :  { %v224_v62 = vadd.f32 %v223_v59, %v201_v60 }
  0xb9   :  { %v236_v63 = vadd.f32 %v231_v61, %v224_v62 }
  0xbb   :  { %241 = vst [vmem:[%s500_s4 + $0x20] sm:$0x3] %v236_v63 }
  0xbc   :  { %v202_v0 = vpop.f32.mrf.mxu2 }
  0xbd   :  { %v225_v1 = vpop.f32.mrf.mxu3 }

</bundles_post_ra>
